<compile_context>
chip_gen: v5e
topology: v5e:2x2
jax: 0.10.0
libtpu: 0.0.40
codegen_flags: <defaults>
</compile_context>

<pallas_src>
import functools

import jax
import jax.numpy as jnp
from jax.experimental import pallas as pl
from jax.experimental.pallas import tpu as pltpu


NEG_SLOPE = 0.01  # nn.LeakyReLU default negative_slope


def _round_up(n, m):
    return (n + m - 1) // m * m


def _cdiv(a, b):
    return -(-a // b)


def vae_kernel(
    x_ref, eps_ref,
    w1_ref, w2_ref, w3_ref, wh_ref,           # encoder + fused (lane-aligned) mu|logvar head
    wd1_ref, wd2_ref, wd3_ref, wd4_ref,       # decoder
    bias_ref,                                 # packed, 128-lane-aligned biases
    recon_ref, mu_ref, logvar_ref,            # three direct outputs (no concat)
    *, latent_dims, lat_pad, bias_offsets, bias_widths,
):
    def bias(idx):
        off = bias_offsets[idx]
        return bias_ref[:, off:off + bias_widths[idx]]   # (1, n) f32, static slice

    def dense(h, w_ref, bidx):
        # operand dtype follows w_ref (bf16 body layers, f32 head); f32 accumulation.
        return jnp.dot(h, w_ref[...], preferred_element_type=jnp.float32) + bias(bidx)

    def act_bf16(v):
        # LeakyReLU in f32 (v5e has no bf16 VALU), stored as bf16 so the big
        # (tb,1024)/(tb,256) intermediates feed the MXU at half width.
        return jnp.where(v > 0, v, NEG_SLOPE * v).astype(jnp.bfloat16)

    x = x_ref[...].astype(jnp.bfloat16)

    # ---- encoder: features -> 1024 -> 256 -> 64, LeakyReLU after each ----
    h = act_bf16(dense(x, w1_ref, 0))
    h = act_bf16(dense(h, w2_ref, 1))
    h3 = dense(h, w3_ref, 2)
    h3 = jnp.where(h3 > 0, h3, NEG_SLOPE * h3)   # stays f32: feeds the f32 head

    # ---- fused lane-aligned mu/logvar head (f32 matmul; tiny) ----
    head = dense(h3, wh_ref, 3)                  # (tb, 2*lat_pad)
    mu = head[:, :latent_dims]                   # lane offset 0
    logvar = head[:, lat_pad:lat_pad + latent_dims]   # lane-aligned offset (128)

    # ---- reparameterize: z = mu + eps * exp(0.5 * logvar) (f32) ----
    z = mu + eps_ref[...] * jnp.exp(0.5 * logvar)

    # ---- decoder: latents -> 64 -> 256 -> 1024 -> features ----
    d = act_bf16(dense(z.astype(jnp.bfloat16), wd1_ref, 4))
    d = act_bf16(dense(d, wd2_ref, 5))
    d = act_bf16(dense(d, wd3_ref, 6))
    recon = dense(d, wd4_ref, 7)

    recon_ref[...] = recon
    mu_ref[...] = mu
    logvar_ref[...] = logvar


def init_params(key, feature_dims, latent_dims):
    """Deterministic init mimicking PyTorch nn.Linear (uniform +/- 1/sqrt(fan_in)).

    Weights are stored transposed: (in_dim, out_dim). Biases are (1, out_dim)."""
    dims = [
        (feature_dims, 1024), (1024, 256), (256, 64),   # encoder
        (64, latent_dims), (64, latent_dims),           # mu, logvar
        (latent_dims, 64), (64, 256), (256, 1024), (1024, feature_dims),  # decoder
    ]
    params = []
    for (fan_in, fan_out) in dims:
        key, kw, kb = jax.random.split(key, 3)
        bound = 1.0 / jnp.sqrt(fan_in)
        w = jax.random.uniform(kw, (fan_in, fan_out), jnp.float32, -bound, bound)
        b = jax.random.uniform(kb, (1, fan_out), jnp.float32, -bound, bound)
        params.append(w)
        params.append(b)
    return params


def _pack_biases(biases):
    """Concatenate bias vectors into one (1, N) slab with 128-lane-aligned offsets."""
    offsets, widths, segs = [], [], []
    off = 0
    for b in biases:
        n = b.shape[-1]
        offsets.append(off)
        widths.append(n)
        seg = _round_up(n, 128)
        pad = seg - n
        piece = b.reshape(1, n)
        if pad:
            piece = jnp.concatenate([piece, jnp.zeros((1, pad), jnp.float32)], axis=-1)
        segs.append(piece)
        off += seg
    return jnp.concatenate(segs, axis=-1), tuple(offsets), tuple(widths)


def _choose_batch_tiling(batch, block_batch):
    """Equal-sized, 8-aligned batch blocks; at least 2 (and an even number of)
    grid steps so the 'parallel' axis feeds both v7x TensorCores."""
    nblocks = max(1, _cdiv(batch, block_batch))
    if nblocks == 1:
        nblocks = 2
    elif nblocks % 2:
        nblocks += 1
    tb = _round_up(_cdiv(batch, nblocks), 8)
    padded = tb * nblocks
    return tb, padded, nblocks


def vae_forward(x, eps, params, *, block_batch=256):
    batch, feature_dims = x.shape
    latent_dims = eps.shape[1]

    (w1, b1, w2, b2, w3, b3, wmu, bmu, wlv, blv,
     wd1, bd1, wd2, bd2, wd3, bd3, wd4, bd4) = params

    # ---- lane-aligned fused mu/logvar head (kept f32 for accuracy; tiny) ----
    lat_pad = _round_up(latent_dims, 128)
    head_width = 2 * lat_pad
    wh = jnp.zeros((w3.shape[1], head_width), jnp.float32)
    wh = wh.at[:, :latent_dims].set(wmu)
    wh = wh.at[:, lat_pad:lat_pad + latent_dims].set(wlv)
    bh = jnp.zeros((1, head_width), jnp.float32)
    bh = bh.at[:, :latent_dims].set(bmu)
    bh = bh.at[:, lat_pad:lat_pad + latent_dims].set(blv)

    bf16 = jnp.bfloat16
    weights = [w1.astype(bf16), w2.astype(bf16), w3.astype(bf16), wh,   # wh stays f32
               wd1.astype(bf16), wd2.astype(bf16), wd3.astype(bf16), wd4.astype(bf16)]
    biases = [b1, b2, b3, bh, bd1, bd2, bd3, bd4]                       # stay f32
    bias_pack, bias_offsets, bias_widths = _pack_biases(biases)

    # ---- batch tiling: equal-size blocks, no fat zero-padded tail block ----
    tb, padded, nblocks = _choose_batch_tiling(batch, block_batch)
    if padded != batch:
        x = jnp.pad(x, ((0, padded - batch), (0, 0)))
        eps = jnp.pad(eps, ((0, padded - batch), (0, 0)))
    grid = (nblocks,)

    kernel = functools.partial(
        vae_kernel,
        latent_dims=latent_dims, lat_pad=lat_pad,
        bias_offsets=bias_offsets, bias_widths=bias_widths)

    # advisory cost estimate for XLA scheduling
    flops = 2 * padded * (feature_dims * 1024 + 1024 * 256 + 256 * 64
                          + 64 * head_width
                          + latent_dims * 64 + 64 * 256 + 256 * 1024
                          + 1024 * feature_dims)
    bytes_accessed = (sum(int(w.size) * int(w.dtype.itemsize) for w in weights)
                      + int(bias_pack.size) * 4
                      + (int(x.size) + int(eps.size)) * 4
                      + padded * (feature_dims + 2 * latent_dims) * 4)
    cost = pl.CostEstimate(flops=flops,
                           transcendentals=padded * latent_dims,
                           bytes_accessed=bytes_accessed)

    def resident(shape):
        # constant index_map -> stays VMEM-resident across all grid steps
        return pl.BlockSpec(shape, lambda i: (0, 0))

    recon, mu, logvar = pl.pallas_call(
        kernel,
        out_shape=(jax.ShapeDtypeStruct((padded, feature_dims), jnp.float32),
                   jax.ShapeDtypeStruct((padded, latent_dims), jnp.float32),
                   jax.ShapeDtypeStruct((padded, latent_dims), jnp.float32)),
        grid=grid,
        in_specs=[
            pl.BlockSpec((tb, feature_dims), lambda i: (i, 0)),   # x
            pl.BlockSpec((tb, latent_dims), lambda i: (i, 0)),    # eps
            *[resident(tuple(w.shape)) for w in weights],
            resident(tuple(bias_pack.shape)),
        ],
        out_specs=(pl.BlockSpec((tb, feature_dims), lambda i: (i, 0)),
                   pl.BlockSpec((tb, latent_dims), lambda i: (i, 0)),
                   pl.BlockSpec((tb, latent_dims), lambda i: (i, 0))),
        compiler_params=pltpu.CompilerParams(
            dimension_semantics=("parallel",)),
        cost_estimate=cost,
    )(x, eps, *weights, bias_pack)

    return recon[:batch], mu[:batch], logvar[:batch]


def vae_forward_ref(x, eps, params):
    """Pure-JAX f32 reference for verification."""
    (w1, b1, w2, b2, w3, b3, wmu, bmu, wlv, blv,
     wd1, bd1, wd2, bd2, wd3, bd3, wd4, bd4) = params
    lrelu = lambda v: jnp.where(v > 0, v, NEG_SLOPE * v)
    h = lrelu(x @ w1 + b1)
    h = lrelu(h @ w2 + b2)
    h = lrelu(h @ w3 + b3)
    mu = h @ wmu + bmu
    logvar = h @ wlv + blv
    z = mu + eps * jnp.exp(0.5 * logvar)
    d = lrelu(z @ wd1 + bd1)
    d = lrelu(d @ wd2 + bd2)
    d = lrelu(d @ wd3 + bd3)
    recon = d @ wd4 + bd4
    return recon, mu, logvar


def _check(x, eps, params, block_batch):
    recon, mu, logvar = vae_forward(x, eps, params, block_batch=block_batch)
    jax.block_until_ready((recon, mu, logvar))
    r_ref, mu_ref, lv_ref = vae_forward_ref(x, eps, params)
    # bf16 matmul operands -> loosened tolerances vs the f32 reference.
    assert jnp.allclose(recon, r_ref, atol=5e-2, rtol=5e-2)
    assert jnp.allclose(mu, mu_ref, atol=5e-2, rtol=5e-2)
    assert jnp.allclose(logvar, lv_ref, atol=5e-2, rtol=5e-2)


if __name__ == "__main__":
    feature_dims = 32
    latent_dims = 8

    root = jax.random.PRNGKey(0)
    k_params, k_x, k_eps = jax.random.split(root, 3)
    params = init_params(k_params, feature_dims, latent_dims)

    # small batch: forced 2-step even grid (2 blocks of 8 rows)
    batch = 8
    x = jax.random.normal(k_x, (batch, feature_dims), jnp.float32)
    eps = jax.random.normal(k_eps, (batch, latent_dims), jnp.float32)
    _check(x, eps, params, block_batch=256)

    # larger, non-multiple batch: 2 equal blocks of 152 rows (padded 304),
    # exercising resident weights across steps and tail-row zero padding.
    batch2 = 300
    k_x2, k_eps2 = jax.random.split(jax.random.PRNGKey(1))
    x2 = jax.random.normal(k_x2, (batch2, feature_dims), jnp.float32)
    eps2 = jax.random.normal(k_eps2, (batch2, latent_dims), jnp.float32)
    _check(x2, eps2, params, block_batch=256)

    print("KERNEL_OK")
</pallas_src>

<mosaic_0001>
module attributes {stable_mosaic.version = 11 : i64} {
  func.func @vae_kernel(%arg0: i32, %arg1: memref<8x32xf32, #tpu.memory_space<vmem>>, %arg2: memref<8x8xf32, #tpu.memory_space<vmem>>, %arg3: memref<32x1024xbf16, #tpu.memory_space<vmem>>, %arg4: memref<1024x256xbf16, #tpu.memory_space<vmem>>, %arg5: memref<256x64xbf16, #tpu.memory_space<vmem>>, %arg6: memref<64x256xf32, #tpu.memory_space<vmem>>, %arg7: memref<8x64xbf16, #tpu.memory_space<vmem>>, %arg8: memref<64x256xbf16, #tpu.memory_space<vmem>>, %arg9: memref<256x1024xbf16, #tpu.memory_space<vmem>>, %arg10: memref<1024x32xbf16, #tpu.memory_space<vmem>>, %arg11: memref<1x3200xf32, #tpu.memory_space<vmem>>, %arg12: memref<8x32xf32, #tpu.memory_space<vmem>>, %arg13: memref<8x8xf32, #tpu.memory_space<vmem>>, %arg14: memref<8x8xf32, #tpu.memory_space<vmem>>) attributes {dimension_semantics = [#tpu.dimension_semantics<parallel>], iteration_bounds = array<i64: 2>, scalar_prefetch = 0 : i64, scratch_operands = 0 : i64, tpu.core_type = #tpu.core_type<tc>, window_params = [{transform_indices = @transform_0, window_bounds = array<i64: 8, 32>}, {transform_indices = @transform_1, window_bounds = array<i64: 8, 8>}, {pipeline_mode = #tpu.pipeline_mode<synchronous>, transform_indices = @transform_2, window_bounds = array<i64: 32, 1024>}, {pipeline_mode = #tpu.pipeline_mode<synchronous>, transform_indices = @transform_3, window_bounds = array<i64: 1024, 256>}, {pipeline_mode = #tpu.pipeline_mode<synchronous>, transform_indices = @transform_4, window_bounds = array<i64: 256, 64>}, {pipeline_mode = #tpu.pipeline_mode<synchronous>, transform_indices = @transform_5, window_bounds = array<i64: 64, 256>}, {pipeline_mode = #tpu.pipeline_mode<synchronous>, transform_indices = @transform_6, window_bounds = array<i64: 8, 64>}, {pipeline_mode = #tpu.pipeline_mode<synchronous>, transform_indices = @transform_7, window_bounds = array<i64: 64, 256>}, {pipeline_mode = #tpu.pipeline_mode<synchronous>, transform_indices = @transform_8, window_bounds = array<i64: 256, 1024>}, {pipeline_mode = #tpu.pipeline_mode<synchronous>, transform_indices = @transform_9, window_bounds = array<i64: 1024, 32>}, {pipeline_mode = #tpu.pipeline_mode<synchronous>, transform_indices = @transform_10, window_bounds = array<i64: 1, 3200>}, {transform_indices = @transform_11, window_bounds = array<i64: 8, 32>}, {transform_indices = @transform_12, window_bounds = array<i64: 8, 8>}, {transform_indices = @transform_13, window_bounds = array<i64: 8, 8>}]} {
    %c0 = arith.constant 0 : index
    %c0_0 = arith.constant 0 : index
    %0 = vector.load %arg1[%c0, %c0_0] : memref<8x32xf32, #tpu.memory_space<vmem>>, vector<8x32xf32>
    %1 = arith.truncf %0 : vector<8x32xf32> to vector<8x32xbf16>
    %c0_1 = arith.constant 0 : index
    %c0_2 = arith.constant 0 : index
    %2 = vector.load %arg3[%c0_1, %c0_2] : memref<32x1024xbf16, #tpu.memory_space<vmem>>, vector<32x1024xbf16>
    %cst = arith.constant dense<0.000000e+00> : vector<8x1024xf32>
    %3 = tpu.matmul %1, %2, %cst {dimension_numbers = #tpu.dot_dimension_numbers<[1], [0], [0], [1], [0, 0, 1, 1], [], []>} : vector<8x32xbf16>, vector<32x1024xbf16>, vector<8x1024xf32> -> vector<8x1024xf32>
    %c0_3 = arith.constant 0 : index
    %c0_4 = arith.constant 0 : index
    %4 = vector.load %arg11[%c0_3, %c0_4] : memref<1x3200xf32, #tpu.memory_space<vmem>>, vector<1x1024xf32>
    %5 = vector.broadcast %4 : vector<1x1024xf32> to vector<8x1024xf32>
    %6 = arith.addf %3, %5 : vector<8x1024xf32>
    %cst_5 = arith.constant 0.000000e+00 : f32
    %7 = vector.broadcast %cst_5 : f32 to vector<8x1024xf32>
    %8 = arith.cmpf ogt, %6, %7 : vector<8x1024xf32>
    %cst_6 = arith.constant 0.00999999977 : f32
    %9 = vector.broadcast %cst_6 : f32 to vector<8x1024xf32>
    %10 = arith.mulf %9, %6 : vector<8x1024xf32>
    %11 = arith.select %8, %6, %10 : vector<8x1024xi1>, vector<8x1024xf32>
    %12 = arith.truncf %11 : vector<8x1024xf32> to vector<8x1024xbf16>
    %c0_7 = arith.constant 0 : index
    %c0_8 = arith.constant 0 : index
    %13 = vector.load %arg4[%c0_7, %c0_8] : memref<1024x256xbf16, #tpu.memory_space<vmem>>, vector<1024x256xbf16>
    %cst_9 = arith.constant dense<0.000000e+00> : vector<8x256xf32>
    %14 = tpu.matmul %12, %13, %cst_9 {dimension_numbers = #tpu.dot_dimension_numbers<[1], [0], [0], [1], [0, 0, 1, 1], [], []>} : vector<8x1024xbf16>, vector<1024x256xbf16>, vector<8x256xf32> -> vector<8x256xf32>
    %c0_10 = arith.constant 0 : index
    %c1024 = arith.constant 1024 : index
    %15 = vector.load %arg11[%c0_10, %c1024] : memref<1x3200xf32, #tpu.memory_space<vmem>>, vector<1x256xf32>
    %16 = vector.broadcast %15 : vector<1x256xf32> to vector<8x256xf32>
    %17 = arith.addf %14, %16 : vector<8x256xf32>
    %cst_11 = arith.constant 0.000000e+00 : f32
    %18 = vector.broadcast %cst_11 : f32 to vector<8x256xf32>
    %19 = arith.cmpf ogt, %17, %18 : vector<8x256xf32>
    %cst_12 = arith.constant 0.00999999977 : f32
    %20 = vector.broadcast %cst_12 : f32 to vector<8x256xf32>
    %21 = arith.mulf %20, %17 : vector<8x256xf32>
    %22 = arith.select %19, %17, %21 : vector<8x256xi1>, vector<8x256xf32>
    %23 = arith.truncf %22 : vector<8x256xf32> to vector<8x256xbf16>
    %c0_13 = arith.constant 0 : index
    %c0_14 = arith.constant 0 : index
    %24 = vector.load %arg5[%c0_13, %c0_14] : memref<256x64xbf16, #tpu.memory_space<vmem>>, vector<256x64xbf16>
    %cst_15 = arith.constant dense<0.000000e+00> : vector<8x64xf32>
    %25 = tpu.matmul %23, %24, %cst_15 {dimension_numbers = #tpu.dot_dimension_numbers<[1], [0], [0], [1], [0, 0, 1, 1], [], []>} : vector<8x256xbf16>, vector<256x64xbf16>, vector<8x64xf32> -> vector<8x64xf32>
    %c0_16 = arith.constant 0 : index
    %c1280 = arith.constant 1280 : index
    %26 = vector.load %arg11[%c0_16, %c1280] : memref<1x3200xf32, #tpu.memory_space<vmem>>, vector<1x64xf32>
    %27 = vector.broadcast %26 : vector<1x64xf32> to vector<8x64xf32>
    %28 = arith.addf %25, %27 : vector<8x64xf32>
    %cst_17 = arith.constant 0.000000e+00 : f32
    %29 = vector.broadcast %cst_17 : f32 to vector<8x64xf32>
    %30 = arith.cmpf ogt, %28, %29 : vector<8x64xf32>
    %cst_18 = arith.constant 0.00999999977 : f32
    %31 = vector.broadcast %cst_18 : f32 to vector<8x64xf32>
    %32 = arith.mulf %31, %28 : vector<8x64xf32>
    %33 = arith.select %30, %28, %32 : vector<8x64xi1>, vector<8x64xf32>
    %c0_19 = arith.constant 0 : index
    %c0_20 = arith.constant 0 : index
    %34 = vector.load %arg6[%c0_19, %c0_20] : memref<64x256xf32, #tpu.memory_space<vmem>>, vector<64x256xf32>
    %cst_21 = arith.constant dense<0.000000e+00> : vector<8x256xf32>
    %35 = tpu.matmul %33, %34, %cst_21 {dimension_numbers = #tpu.dot_dimension_numbers<[1], [0], [0], [1], [0, 0, 1, 1], [], []>} : vector<8x64xf32>, vector<64x256xf32>, vector<8x256xf32> -> vector<8x256xf32>
    %c0_22 = arith.constant 0 : index
    %c1408 = arith.constant 1408 : index
    %36 = vector.load %arg11[%c0_22, %c1408] : memref<1x3200xf32, #tpu.memory_space<vmem>>, vector<1x256xf32>
    %37 = vector.broadcast %36 : vector<1x256xf32> to vector<8x256xf32>
    %38 = arith.addf %35, %37 : vector<8x256xf32>
    %39 = vector.extract_strided_slice %38 {offsets = [0, 0], sizes = [8, 8], strides = [1, 1]} : vector<8x256xf32> to vector<8x8xf32>
    %40 = vector.extract_strided_slice %38 {offsets = [0, 128], sizes = [8, 8], strides = [1, 1]} : vector<8x256xf32> to vector<8x8xf32>
    %c0_23 = arith.constant 0 : index
    %c0_24 = arith.constant 0 : index
    %41 = vector.load %arg2[%c0_23, %c0_24] : memref<8x8xf32, #tpu.memory_space<vmem>>, vector<8x8xf32>
    %cst_25 = arith.constant 5.000000e-01 : f32
    %42 = vector.broadcast %cst_25 : f32 to vector<8x8xf32>
    %43 = arith.mulf %42, %40 : vector<8x8xf32>
    %44 = math.exp %43 : vector<8x8xf32>
    %45 = arith.mulf %41, %44 : vector<8x8xf32>
    %46 = arith.addf %39, %45 : vector<8x8xf32>
    %47 = arith.truncf %46 : vector<8x8xf32> to vector<8x8xbf16>
    %c0_26 = arith.constant 0 : index
    %c0_27 = arith.constant 0 : index
    %48 = vector.load %arg7[%c0_26, %c0_27] : memref<8x64xbf16, #tpu.memory_space<vmem>>, vector<8x64xbf16>
    %cst_28 = arith.constant dense<0.000000e+00> : vector<8x64xf32>
    %49 = tpu.matmul %47, %48, %cst_28 {dimension_numbers = #tpu.dot_dimension_numbers<[1], [0], [0], [1], [0, 0, 1, 1], [], []>} : vector<8x8xbf16>, vector<8x64xbf16>, vector<8x64xf32> -> vector<8x64xf32>
    %c0_29 = arith.constant 0 : index
    %c1664 = arith.constant 1664 : index
    %50 = vector.load %arg11[%c0_29, %c1664] : memref<1x3200xf32, #tpu.memory_space<vmem>>, vector<1x64xf32>
    %51 = vector.broadcast %50 : vector<1x64xf32> to vector<8x64xf32>
    %52 = arith.addf %49, %51 : vector<8x64xf32>
    %cst_30 = arith.constant 0.000000e+00 : f32
    %53 = vector.broadcast %cst_30 : f32 to vector<8x64xf32>
    %54 = arith.cmpf ogt, %52, %53 : vector<8x64xf32>
    %cst_31 = arith.constant 0.00999999977 : f32
    %55 = vector.broadcast %cst_31 : f32 to vector<8x64xf32>
    %56 = arith.mulf %55, %52 : vector<8x64xf32>
    %57 = arith.select %54, %52, %56 : vector<8x64xi1>, vector<8x64xf32>
    %58 = arith.truncf %57 : vector<8x64xf32> to vector<8x64xbf16>
    %c0_32 = arith.constant 0 : index
    %c0_33 = arith.constant 0 : index
    %59 = vector.load %arg8[%c0_32, %c0_33] : memref<64x256xbf16, #tpu.memory_space<vmem>>, vector<64x256xbf16>
    %cst_34 = arith.constant dense<0.000000e+00> : vector<8x256xf32>
    %60 = tpu.matmul %58, %59, %cst_34 {dimension_numbers = #tpu.dot_dimension_numbers<[1], [0], [0], [1], [0, 0, 1, 1], [], []>} : vector<8x64xbf16>, vector<64x256xbf16>, vector<8x256xf32> -> vector<8x256xf32>
    %c0_35 = arith.constant 0 : index
    %c1792 = arith.constant 1792 : index
    %61 = vector.load %arg11[%c0_35, %c1792] : memref<1x3200xf32, #tpu.memory_space<vmem>>, vector<1x256xf32>
    %62 = vector.broadcast %61 : vector<1x256xf32> to vector<8x256xf32>
    %63 = arith.addf %60, %62 : vector<8x256xf32>
    %cst_36 = arith.constant 0.000000e+00 : f32
    %64 = vector.broadcast %cst_36 : f32 to vector<8x256xf32>
    %65 = arith.cmpf ogt, %63, %64 : vector<8x256xf32>
    %cst_37 = arith.constant 0.00999999977 : f32
    %66 = vector.broadcast %cst_37 : f32 to vector<8x256xf32>
    %67 = arith.mulf %66, %63 : vector<8x256xf32>
    %68 = arith.select %65, %63, %67 : vector<8x256xi1>, vector<8x256xf32>
    %69 = arith.truncf %68 : vector<8x256xf32> to vector<8x256xbf16>
    %c0_38 = arith.constant 0 : index
    %c0_39 = arith.constant 0 : index
    %70 = vector.load %arg9[%c0_38, %c0_39] : memref<256x1024xbf16, #tpu.memory_space<vmem>>, vector<256x1024xbf16>
    %cst_40 = arith.constant dense<0.000000e+00> : vector<8x1024xf32>
    %71 = tpu.matmul %69, %70, %cst_40 {dimension_numbers = #tpu.dot_dimension_numbers<[1], [0], [0], [1], [0, 0, 1, 1], [], []>} : vector<8x256xbf16>, vector<256x1024xbf16>, vector<8x1024xf32> -> vector<8x1024xf32>
    %c0_41 = arith.constant 0 : index
    %c2048 = arith.constant 2048 : index
    %72 = vector.load %arg11[%c0_41, %c2048] : memref<1x3200xf32, #tpu.memory_space<vmem>>, vector<1x1024xf32>
    %73 = vector.broadcast %72 : vector<1x1024xf32> to vector<8x1024xf32>
    %74 = arith.addf %71, %73 : vector<8x1024xf32>
    %cst_42 = arith.constant 0.000000e+00 : f32
    %75 = vector.broadcast %cst_42 : f32 to vector<8x1024xf32>
    %76 = arith.cmpf ogt, %74, %75 : vector<8x1024xf32>
    %cst_43 = arith.constant 0.00999999977 : f32
    %77 = vector.broadcast %cst_43 : f32 to vector<8x1024xf32>
    %78 = arith.mulf %77, %74 : vector<8x1024xf32>
    %79 = arith.select %76, %74, %78 : vector<8x1024xi1>, vector<8x1024xf32>
    %80 = arith.truncf %79 : vector<8x1024xf32> to vector<8x1024xbf16>
    %c0_44 = arith.constant 0 : index
    %c0_45 = arith.constant 0 : index
    %81 = vector.load %arg10[%c0_44, %c0_45] : memref<1024x32xbf16, #tpu.memory_space<vmem>>, vector<1024x32xbf16>
    %cst_46 = arith.constant dense<0.000000e+00> : vector<8x32xf32>
    %82 = tpu.matmul %80, %81, %cst_46 {dimension_numbers = #tpu.dot_dimension_numbers<[1], [0], [0], [1], [0, 0, 1, 1], [], []>} : vector<8x1024xbf16>, vector<1024x32xbf16>, vector<8x32xf32> -> vector<8x32xf32>
    %c0_47 = arith.constant 0 : index
    %c3072 = arith.constant 3072 : index
    %83 = vector.load %arg11[%c0_47, %c3072] : memref<1x3200xf32, #tpu.memory_space<vmem>>, vector<1x32xf32>
    %84 = vector.broadcast %83 : vector<1x32xf32> to vector<8x32xf32>
    %85 = arith.addf %82, %84 : vector<8x32xf32>
    %c0_48 = arith.constant 0 : index
    %c0_49 = arith.constant 0 : index
    %86 = vector.load %arg12[%c0_48, %c0_49] : memref<8x32xf32, #tpu.memory_space<vmem>>, vector<8x32xf32>
    tpu.vector_store %arg12[%c0_48, %c0_49], %85 {strides = array<i32>} : memref<8x32xf32, #tpu.memory_space<vmem>>, vector<8x32xf32>,
    %c0_50 = arith.constant 0 : index
    %c0_51 = arith.constant 0 : index
    %87 = vector.load %arg13[%c0_50, %c0_51] : memref<8x8xf32, #tpu.memory_space<vmem>>, vector<8x8xf32>
    tpu.vector_store %arg13[%c0_50, %c0_51], %39 {strides = array<i32>} : memref<8x8xf32, #tpu.memory_space<vmem>>, vector<8x8xf32>,
    %c0_52 = arith.constant 0 : index
    %c0_53 = arith.constant 0 : index
    %88 = vector.load %arg14[%c0_52, %c0_53] : memref<8x8xf32, #tpu.memory_space<vmem>>, vector<8x8xf32>
    tpu.vector_store %arg14[%c0_52, %c0_53], %40 {strides = array<i32>} : memref<8x8xf32, #tpu.memory_space<vmem>>, vector<8x8xf32>,
    return
  }
  func.func @transform_0(%arg0: i32) -> (i32, i32) {
    %c0_i32 = arith.constant 0 : i32
    %c0_i32_0 = arith.constant 0 : i32
    return %arg0, %c0_i32 : i32, i32
  }
  func.func @transform_1(%arg0: i32) -> (i32, i32) {
    %c0_i32 = arith.constant 0 : i32
    %c0_i32_0 = arith.constant 0 : i32
    return %arg0, %c0_i32 : i32, i32
  }
  func.func @transform_2(%arg0: i32) -> (i32, i32) {
    %c0_i32 = arith.constant 0 : i32
    %c0_i32_0 = arith.constant 0 : i32
    %c0_i32_1 = arith.constant 0 : i32
    return %c0_i32, %c0_i32_0 : i32, i32
  }
  func.func @transform_3(%arg0: i32) -> (i32, i32) {
    %c0_i32 = arith.constant 0 : i32
    %c0_i32_0 = arith.constant 0 : i32
    %c0_i32_1 = arith.constant 0 : i32
    return %c0_i32, %c0_i32_0 : i32, i32
  }
  func.func @transform_4(%arg0: i32) -> (i32, i32) {
    %c0_i32 = arith.constant 0 : i32
    %c0_i32_0 = arith.constant 0 : i32
    %c0_i32_1 = arith.constant 0 : i32
    return %c0_i32, %c0_i32_0 : i32, i32
  }
  func.func @transform_5(%arg0: i32) -> (i32, i32) {
    %c0_i32 = arith.constant 0 : i32
    %c0_i32_0 = arith.constant 0 : i32
    %c0_i32_1 = arith.constant 0 : i32
    return %c0_i32, %c0_i32_0 : i32, i32
  }
  func.func @transform_6(%arg0: i32) -> (i32, i32) {
    %c0_i32 = arith.constant 0 : i32
    %c0_i32_0 = arith.constant 0 : i32
    %c0_i32_1 = arith.constant 0 : i32
    return %c0_i32, %c0_i32_0 : i32, i32
  }
  func.func @transform_7(%arg0: i32) -> (i32, i32) {
    %c0_i32 = arith.constant 0 : i32
    %c0_i32_0 = arith.constant 0 : i32
    %c0_i32_1 = arith.constant 0 : i32
    return %c0_i32, %c0_i32_0 : i32, i32
  }
  func.func @transform_8(%arg0: i32) -> (i32, i32) {
    %c0_i32 = arith.constant 0 : i32
    %c0_i32_0 = arith.constant 0 : i32
    %c0_i32_1 = arith.constant 0 : i32
    return %c0_i32, %c0_i32_0 : i32, i32
  }
  func.func @transform_9(%arg0: i32) -> (i32, i32) {
    %c0_i32 = arith.constant 0 : i32
    %c0_i32_0 = arith.constant 0 : i32
    %c0_i32_1 = arith.constant 0 : i32
    return %c0_i32, %c0_i32_0 : i32, i32
  }
  func.func @transform_10(%arg0: i32) -> (i32, i32) {
    %c0_i32 = arith.constant 0 : i32
    %c0_i32_0 = arith.constant 0 : i32
    %c0_i32_1 = arith.constant 0 : i32
    return %c0_i32, %c0_i32_0 : i32, i32
  }
  func.func @transform_11(%arg0: i32) -> (i32, i32) {
    %c0_i32 = arith.constant 0 : i32
    %c0_i32_0 = arith.constant 0 : i32
    return %arg0, %c0_i32 : i32, i32
  }
  func.func @transform_12(%arg0: i32) -> (i32, i32) {
    %c0_i32 = arith.constant 0 : i32
    %c0_i32_0 = arith.constant 0 : i32
    return %arg0, %c0_i32 : i32, i32
  }
  func.func @transform_13(%arg0: i32) -> (i32, i32) {
    %c0_i32 = arith.constant 0 : i32
    %c0_i32_0 = arith.constant 0 : i32
    return %arg0, %c0_i32 : i32, i32
  }
}

</mosaic_0001>

<bundles_post_ra>
// kernel: tpu_custom_call.1
= control target key start
LH: loop header
LB: loop body
LE: loop exit
PB: predicated region body
PF: predicated region fallthrough
CT: control target
= control target key end

     0   :  { %s6716_s0 = inlined_call_operand.vmem [shape: f32[16,32], index: 0, kind: input, shape index: {}]   ;;  %s6717_s1 = inlined_call_operand.vmem [shape: f32[16,8], index: 1, kind: input, shape index: {}]   ;;  %s6718_s2 = inlined_call_operand.vmem [shape: bf16[32,1024], index: 2, kind: input, shape index: {}]   ;;  %s6719_s3 = inlined_call_operand.hbm [shape: bf16[1024,256], index: 3, kind: input, shape index: {}]   ;;  %s6720_s4 = inlined_call_operand.vmem [shape: bf16[256,64], index: 4, kind: input, shape index: {}]   ;;  %s6721_s5 = inlined_call_operand.vmem [shape: f32[64,256], index: 5, kind: input, shape index: {}]   ;;  %s6722_s6 = inlined_call_operand.vmem [shape: bf16[8,64], index: 6, kind: input, shape index: {}]   ;;  %s6723_s7 = inlined_call_operand.vmem [shape: bf16[64,256], index: 7, kind: input, shape index: {}]   ;;  %s6724_s8 = inlined_call_operand.hbm [shape: bf16[256,1024], index: 8, kind: input, shape index: {}]   ;;  %s6725_s9 = inlined_call_operand.vmem [shape: bf16[1024,32], index: 9, kind: input, shape index: {}]   ;;  %s6726_s10 = inlined_call_operand.vmem [shape: f32[1,3200], index: 10, kind: input, shape index: {}]   ;;  %s6727_s11 = inlined_call_operand.hbm [shape: f32[16,32], index: 11, kind: output, shape index: {0}]   ;;  %s6728_s12 = inlined_call_operand.vmem [shape: f32[16,8], index: 12, kind: output, shape index: {1}]   ;;  %s6729_s13 = inlined_call_operand.vmem [shape: f32[16,8], index: 13, kind: output, shape index: {2}]  }
   0x1   :  { %6734 = sst [smem:[#allocation15_spill]] %s6719_s3 }
   0x2   :  { %19 = vsyncpa [#allocation3], 0 }
   0x3   :  { %20 = vsyncpa [#allocation6], 0 }
   0x4   :  { %21 = vsyncpa [#allocation4], 0 }
   0x5   :  { %23 = vsyncpa [#allocation4 + $0x1], 0  ;;  %s6037_s25 = smov 0   ;;  %s6039_s26 = smov 0  }
   0x6   :  { %s6041_s27 = smov 0   ;;  %s6043_s28 = smov 0  }
   0x7 LB: > { %6735 = sst [smem:[#allocation11_spill]] %s5955_s27  ;;  %s6058_s29 = sadd.s32 4294967295, %s5959_s28   ;;  %s5959_s28 = sphi %s6043_s28, %s6744_s28   ;;  %s5955_s27 = sphi %s6041_s27, %s6746_s27   ;;  %s5951_s26 = sphi %s6039_s26, %s6748_s26   ;;  %s5947_s25 = sphi %s6037_s25, %s6747_s25  }
   0x8   : > { %s3930_s30 = sadd.s32 4294967294, %s5959_s28   ;;  %s6062_s14 = sadd.s32 1, %s5959_s28  }
   0x9   : > { %6736 = sst [smem:[#allocation12_spill]] %s6062_s14  ;;  %s277_s15 = sadd.s32 1, %s5955_s27 }
   0xa   : > { %s274_s16 = ssub.s32 %s5959_s28, %s6062_s14  ;;  %p287_p0 = scmp.ne.s32.totalorder %s5955_s27, %s5951_s26 }
   0xb   : > { %p275_p1 = scmp.eq.s32.totalorder %s274_s16, 0  ;;  %p288_p2 = scmp.eq.s32.totalorder %s6058_s29, 1 }
   0xc   : > { %p293_p3 = scmp.ne.s32.totalorder %s5951_s26, %s5947_s25  ;;  %p294_p4 = scmp.eq.s32.totalorder %s3930_s30, 1 }
   0xd   : > { %s6073_s17 = scalar_select %p275_p1, %s5955_s27, %s277_s15  }
   0xe   : > { %p6075_p5 = por %p288_p2, %p287_p0  ;;  %p6079_p6 = por %p294_p4, %p293_p3 }
   0xf   : > { %6737 = sst [smem:[#allocation13_spill]] %s6073_s17  ;;  %p3931_p7 = scmp.ge.s32.totalorder %s5959_s28, 1 }
  0x10   : > { %s6739_s19 = scalar_select %p6079_p6, 1, 0 }
  0x11   : > { %p353_p8 = scmp.lt.s32.totalorder %s5959_s28, 3  ;;  %p5781_p9 = scmp.eq.s32.totalorder %s6058_s29, 0 }
  0x12   : > { %6740 = sst [smem:[#allocation14_spill]] %s6739_s19  ;;  %s5961_s24 = smov [#allocation2]  }
  0x13   : > { %p6086_p10 = pnand %p3931_p7, %p353_p8  ;;  %s6742_s3 = sld [smem:[#allocation15_spill]] }
  0x14   : > { %s369_s30 = sshll.u32 %s5961_s24, 4  ;;  %s393_s17 = sshll.u32 %s6724_s8, 4  ;;  %s370_s30 = int_to_ptr.vmem [resolvable:$true] %s369_s30  ;;  %s394_s17 = int_to_ptr.hbm [resolvable:$true] %s393_s17 }
  0x15   : > { %p5770_p11 = pneg %p6086_p10  ;;  %s5962_s27 = smov 128  }
  0x16   : > { %s5963_s14 = smov 8   ;;  %s5964_s19 = smov [#allocation5]  }
  0x17   : > { %p5771_p12 = pnand %p5781_p9, %p5770_p11  ;;  %s395_s21 = sshll.u32 %s5964_s19, 4  ;;  %s396_s21 = int_to_ptr.vmem [resolvable:$true] %s395_s21 }
  0x18   : > { %s5965_s22 = smov 512   ;;  %431 = sbr.rel (%p6086_p10) target bundleno = 1297 (0x511), region = 64 }
  0x19   : > { %s367_s23 = sshll.u32 %s6742_s3, 4  ;;  %s5966_s3 = smov 32   ;;  %s368_s23 = int_to_ptr.hbm [resolvable:$true] %s367_s23 }
  0x1a   : > { %5773 = dma.hbm_to_vmem [thread:$0]  (!%p5771_p12), %s368_s23, 16384, %s370_s30, [#allocation3], %s5962_s27, %s5962_s27, %s5963_s14  }
  0x1b   : > { %5776 = dma.hbm_to_vmem [thread:$0]  (!%p5771_p12), %s394_s17, 16384, %s396_s21, [#allocation6], %s5965_s22, %s5965_s22, %s5966_s3  }
  0x1d   : > { %5934 = dma.done.wait (%p5781_p9), [#allocation3], 16384  }
  0x1e   : > { %5936 = vsyncadd (%p5781_p9), [#allocation3], 4294950912 }
  0x1f   : > { %5938 = dma.done.wait (%p5781_p9), [#allocation6], 16384  }
  0x20   : > { %5940 = vsyncadd (%p5781_p9), [#allocation6], 4294950912  ;;  %p492_p13 = scmp.lt.s32.totalorder %s6058_s29, 1  ;;  %v3977_v0 = vld [vmem:[%s6718_s2 + $0x40] sm:$0xf]  ;;  %vm625_vm0 = vcmask 261120  }
  0x21   : > { %v5412_v1 = vld [vmem:[%s6718_s2 + $0x5c] sm:$0xf0]  ;;  %v5408_v2 = vld [vmem:[%s6718_s2 + $0x44] sm:$0xf]  ;;  %v3985_v5 = vld [vmem:[%s6718_s2 + $0x48] sm:$0xf] }
  0x22   : > { %s493_s27 = scalar_select %p492_p13, %s6058_s29, 1  ;;  %v3978_v3 = vor.u32 %v5412_v1, %v3977_v0  ;;  %v3979_v4 = vld [vmem:[%s6718_s2 + $0x60] sm:$0xf0]  ;;  %v5413_v6 = vld [vmem:[%s6718_s2 + $0x64] sm:$0xf0]  ;;  %vm1938_vm12 = vcmask 523264  }
  0x23   : > { %v3982_v7 = vor.u32 %v5408_v2, %v3979_v4  ;;  %v3986_v8 = vor.u32 %v5413_v6, %v3985_v5  ;;  %v5409_v9 = vld [vmem:[%s6718_s2 + $0x4c] sm:$0xf]  ;;  %v3945_v11 = vld [vmem:[%s6718_s2] sm:$0xf]  ;;  %v5400_v14 = vld [vmem:[%s6718_s2 + $0x4] sm:$0xf] }
  0x24   : > { %s6112_s3 = sshll.u32 %s493_s27, 3  ;;  %v3987_v10 = vld [vmem:[%s6718_s2 + $0x68] sm:$0xf0]  ;;  %635 = vmatpush.bf16.msra.mxu0 %v3978_v3  ;;  %v5404_v13 = vld [vmem:[%s6718_s2 + $0x1c] sm:$0xf0]  ;;  %vm1998_vm13 = vcmask 1043456  }
  0x25   : > { %s495_s16 = scalar_lea.vmem %s6716_s0, %s6112_s3  ;;  %v3990_v12 = vor.u32 %v5409_v9, %v3987_v10  ;;  %v3947_v15 = vld [vmem:[%s6718_s2 + $0x20] sm:$0xf0]  ;;  %648 = vmatpush.bf16.msra.mxu1 %v3982_v7  ;;  %661 = vmatpush.bf16.msra.mxu2 %v3986_v8  ;;  %v3946_v16 = vor.u32 %v5404_v13, %v3945_v11  ;;  %v3953_v18 = vld [vmem:[%s6718_s2 + $0x8] sm:$0xf]  ;;  %v5401_v20 = vld [vmem:[%s6718_s2 + $0xc] sm:$0xf]  ;;  %s503_s23 = scalar_lea.vmem %s6728_s12, %s6112_s3 }
  0x26   : > { %v3950_v17 = vor.u32 %v5400_v14, %v3947_v15  ;;  %v5405_v19 = vld [vmem:[%s6718_s2 + $0x24] sm:$0xf0]  ;;  %v3955_v22 = vld [vmem:[%s6718_s2 + $0x28] sm:$0xf0]  ;;  %v509_v23 = vld [vmem:[%s495_s16] sm:$0xff]  ;;  %vm1994_vm14 = vcmask 64512   ;;  %s507_s15 = scalar_lea.vmem %s6729_s13, %s6112_s3  ;;  %s499_s22 = scalar_lea.vmem %s6717_s1, %s6112_s3 }
  0x27   : > { %674 = vmatpush.bf16.msra.mxu3 %v3990_v12  ;;  %v3954_v21 = vor.u32 %v5405_v19, %v3953_v18  ;;  %v3993_v24 = vld [vmem:[%s6718_s2 + $0x50] sm:$0xf]  ;;  %v3958_v25 = vor.u32 %v5401_v20, %v3955_v22  ;;  %v6169_v26 = vpack.c.bf16 %v509_v23, %v509_v23  ;;  %v5410_v28 = vld [vmem:[%s6718_s2 + $0x54] sm:$0xf]  ;;  %v4001_v32 = vld [vmem:[%s6718_s2 + $0x58] sm:$0xf] }
  0x28   : > { %v5414_v27 = vld [vmem:[%s6718_s2 + $0x6c] sm:$0xf0]  ;;  %v3995_v29 = vld [vmem:[%s6718_s2 + $0x70] sm:$0xf0]  ;;  %636 = vmatpush.bf16.msra.mxu0 %v3946_v16  ;;  %v5415_v33 = vld [vmem:[%s6718_s2 + $0x74] sm:$0xf0] }
  0x29   : > { %v3994_v30 = vor.u32 %v5414_v27, %v3993_v24  ;;  %v3998_v31 = vor.u32 %v5410_v28, %v3995_v29  ;;  %v5411_v34 = vld [vmem:[%s6718_s2 + $0x5c] sm:$0xf]  ;;  %649 = vmatpush.bf16.msra.mxu1 %v3950_v17  ;;  %662 = vmatpush.bf16.msra.mxu2 %v3954_v21  ;;  %v4002_v35 = vor.u32 %v5415_v33, %v4001_v32  ;;  %v3961_v37 = vld [vmem:[%s6718_s2 + $0x10] sm:$0xf]  ;;  %v5402_v41 = vld [vmem:[%s6718_s2 + $0x14] sm:$0xf] }
  0x2a   : > { %v4003_v36 = vld [vmem:[%s6718_s2 + $0x78] sm:$0xf0]  ;;  %v5406_v38 = vld [vmem:[%s6718_s2 + $0x2c] sm:$0xf0]  ;;  %v3963_v42 = vld [vmem:[%s6718_s2 + $0x30] sm:$0xf0] }
  0x2b   : > { %675 = vmatpush.bf16.msra.mxu3 %v3958_v25  ;;  %v4006_v39 = vor.u32 %v5411_v34, %v4003_v36  ;;  %v3962_v40 = vor.u32 %v5406_v38, %v3961_v37  ;;  %v3969_v43 = vld [vmem:[%s6718_s2 + $0x18] sm:$0xf]  ;;  %4007 = vmatmul.msk.bf16.vlgmr.msra.gmra.mxu0 %vm625_vm0, %v6169_v26  ;;  %v3966_v44 = vor.u32 %v5402_v41, %v3963_v42  ;;  %v5403_v46 = vld [vmem:[%s6718_s2 + $0x1c] sm:$0xf]  ;;  %v4073_v48 = vld [vmem:[#allocation2 + $0x70] sm:$0xf] }
  0x2c   : > { %687 = vmatpush.bf16.msrb.mxu0 %v3994_v30  ;;  %v5407_v45 = vld [vmem:[%s6718_s2 + $0x34] sm:$0xf0]  ;;  %v3971_v47 = vld [vmem:[%s6718_s2 + $0x38] sm:$0xf0]  ;;  %4008 = vmatmul.msk.bf16.vlgmr.msra.gmra.mxu1 %vm625_vm0, %v6169_v26  ;;  %v4137_v50 = vld [vmem:[#allocation2 + $0xf0] sm:$0xf] }
  0x2d   : > { %700 = vmatpush.bf16.msrb.mxu1 %v3998_v31  ;;  %4009 = vmatmul.msk.bf16.vlgmr.msra.gmra.mxu2 %vm625_vm0, %v6169_v26  ;;  %v5431_v49 = vld [vmem:[#allocation2 + $0x74] sm:$0xf0]  ;;  %v3970_v51 = vor.u32 %v5407_v45, %v3969_v43  ;;  %v4065_v54 = vld [vmem:[#allocation2 + $0x60] sm:$0xf]  ;;  %v5429_v55 = vld [vmem:[#allocation2 + $0x64] sm:$0xf0]  ;;  %v3974_v56 = vor.u32 %v5403_v46, %v3971_v47 }
  0x2e   : > { %4010 = vmatmul.msk.bf16.vlgmr.msra.gmra.mxu3 %vm625_vm0, %v6169_v26  ;;  %713 = vmatpush.bf16.msrb.mxu2 %v4002_v35  ;;  %v4074_v52 = vor.u32 %v5431_v49, %v4073_v48  ;;  %v5447_v53 = vld [vmem:[#allocation2 + $0xf4] sm:$0xf0]  ;;  %v4129_v58 = vld [vmem:[#allocation2 + $0xe0] sm:$0xf]  ;;  %v5445_v59 = vld [vmem:[#allocation2 + $0xe4] sm:$0xf0]  ;;  %v4066_v61 = vor.u32 %v5429_v55, %v4065_v54 }
  0x2f   : > { %726 = vmatpush.bf16.msrb.mxu3 %v4006_v39  ;;  %v4138_v57 = vor.u32 %v5447_v53, %v4137_v50  ;;  %v4201_v60 = vld [vmem:[#allocation2 + $0x170] sm:$0xf]  ;;  %v5463_v62 = vld [vmem:[#allocation2 + $0x174] sm:$0xf0]  ;;  %v4130_v1 = vor.u32 %v5445_v59, %v4129_v58  ;;  %v4193_v8 = vld [vmem:[#allocation2 + $0x160] sm:$0xf] }
  0x30   : > { %688 = vmatpush.bf16.msrb.mxu0 %v3962_v40  ;;  %v4265_v63 = vld [vmem:[#allocation2 + $0x1f0] sm:$0xf]  ;;  %v5479_v0 = vld [vmem:[#allocation2 + $0x1f4] sm:$0xf0]  ;;  %v4202_v2 = vor.u32 %v5463_v62, %v4201_v60  ;;  %v5461_v9 = vld [vmem:[#allocation2 + $0x164] sm:$0xf0] }
  0x31   : > { %701 = vmatpush.bf16.msrb.mxu1 %v3966_v44  ;;  %v4266_v3 = vor.u32 %v5479_v0, %v4265_v63  ;;  %v4057_v4 = vld [vmem:[#allocation2 + $0x50] sm:$0xf]  ;;  %v5427_v5 = vld [vmem:[#allocation2 + $0x54] sm:$0xf0]  ;;  %v4194_v10 = vor.u32 %v5461_v9, %v4193_v8  ;;  %v4257_v11 = vld [vmem:[#allocation2 + $0x1e0] sm:$0xf] }
  0x32   : > { %v4121_v6 = vld [vmem:[#allocation2 + $0xd0] sm:$0xf]  ;;  %714 = vmatpush.bf16.msrb.mxu2 %v3970_v51  ;;  %v5443_v7 = vld [vmem:[#allocation2 + $0xd4] sm:$0xf0]  ;;  %v5477_v12 = vld [vmem:[#allocation2 + $0x1e4] sm:$0xf0]  ;;  %v4058_v13 = vor.u32 %v5427_v5, %v4057_v4 }
  0x33   : > { %727 = vmatpush.bf16.msrb.mxu3 %v3974_v56  ;;  %v4258_v14 = vor.u32 %v5477_v12, %v4257_v11  ;;  %v4122_v15 = vor.u32 %v5443_v7, %v4121_v6  ;;  %v4185_v16 = vld [vmem:[#allocation2 + $0x150] sm:$0xf]  ;;  %v5459_v17 = vld [vmem:[#allocation2 + $0x154] sm:$0xf0]  ;;  %v4049_v20 = vld [vmem:[#allocation2 + $0x40] sm:$0xf] }
  0x34   : > { %1539 = vmatpush.bf16.msra.mxu0 %v4074_v52  ;;  %v4249_v18 = vld [vmem:[#allocation2 + $0x1d0] sm:$0xf]  ;;  %v5475_v19 = vld [vmem:[#allocation2 + $0x1d4] sm:$0xf0]  ;;  %v5425_v21 = vld [vmem:[#allocation2 + $0x44] sm:$0xf0]  ;;  %v4186_v23 = vor.u32 %v5459_v17, %v4185_v16 }
  0x35   : > { %1552 = vmatpush.bf16.msra.mxu1 %v4138_v57  ;;  %v4113_v22 = vld [vmem:[#allocation2 + $0xc0] sm:$0xf]  ;;  %v5441_v24 = vld [vmem:[#allocation2 + $0xc4] sm:$0xf0]  ;;  %v4250_v25 = vor.u32 %v5475_v19, %v4249_v18  ;;  %v4050_v31 = vor.u32 %v5425_v21, %v4049_v20  ;;  %v4041_v33 = vld [vmem:[#allocation2 + $0x30] sm:$0xf] }
  0x36   : > { %1565 = vmatpush.bf16.msra.mxu2 %v4202_v2  ;;  %v4177_v27 = vld [vmem:[#allocation2 + $0x140] sm:$0xf]  ;;  %v5457_v28 = vld [vmem:[#allocation2 + $0x144] sm:$0xf0]  ;;  %v4114_v32 = vor.u32 %v5441_v24, %v4113_v22  ;;  %v5423_v34 = vld [vmem:[#allocation2 + $0x34] sm:$0xf0] }
  0x37   : > { %1578 = vmatpush.bf16.msra.mxu3 %v4266_v3  ;;  %v4241_v29 = vld [vmem:[#allocation2 + $0x1c0] sm:$0xf]  ;;  %v5473_v30 = vld [vmem:[#allocation2 + $0x1c4] sm:$0xf0]  ;;  %v4105_v35 = vld [vmem:[#allocation2 + $0xb0] sm:$0xf]  ;;  %v4178_v36 = vor.u32 %v5457_v28, %v4177_v27  ;;  %v4042_v43 = vor.u32 %v5423_v34, %v4041_v33 }
  0x38   : > { %1540 = vmatpush.bf16.msra.mxu0 %v4066_v61  ;;  %v5439_v37 = vld [vmem:[#allocation2 + $0xb4] sm:$0xf0]  ;;  %v4242_v38 = vor.u32 %v5473_v30, %v4241_v29  ;;  %v4169_v39 = vld [vmem:[#allocation2 + $0x130] sm:$0xf]  ;;  %v4033_v45 = vld [vmem:[#allocation2 + $0x20] sm:$0xf] }
  0x39   : > { %1553 = vmatpush.bf16.msra.mxu1 %v4130_v1  ;;  %v5455_v40 = vld [vmem:[#allocation2 + $0x134] sm:$0xf0]  ;;  %v4233_v41 = vld [vmem:[#allocation2 + $0x1b0] sm:$0xf]  ;;  %v4106_v44 = vor.u32 %v5439_v37, %v4105_v35  ;;  %v5421_v46 = vld [vmem:[#allocation2 + $0x24] sm:$0xf0] }
  0x3a   : > { %1566 = vmatpush.bf16.msra.mxu2 %v4194_v10  ;;  %v5471_v42 = vld [vmem:[#allocation2 + $0x1b4] sm:$0xf0]  ;;  %v4097_v47 = vld [vmem:[#allocation2 + $0xa0] sm:$0xf]  ;;  %v4170_v48 = vor.u32 %v5455_v40, %v4169_v39  ;;  %v5437_v49 = vld [vmem:[#allocation2 + $0xa4] sm:$0xf0]  ;;  %v4034_v55 = vor.u32 %v5421_v46, %v4033_v45 }
  0x3b   : > { %1579 = vmatpush.bf16.msra.mxu3 %v4258_v14  ;;  %4011 = vmatmul.msk.bf16.vlgmr.msrb.gmra.mxu0 %vm625_vm0, %v6169_v26  ;;  %v4234_v50 = vor.u32 %v5471_v42, %v4233_v41  ;;  %v4161_v51 = vld [vmem:[#allocation2 + $0x120] sm:$0xf]  ;;  %v5453_v52 = vld [vmem:[#allocation2 + $0x124] sm:$0xf0]  ;;  %v4025_v56 = vld [vmem:[#allocation2 + $0x10] sm:$0xf] }
  0x3c   : > { %1541 = vmatpush.bf16.msra.mxu0 %v4058_v13  ;;  %4012 = vmatmul.msk.bf16.vlgmr.msrb.gmra.mxu1 %vm625_vm0, %v6169_v26  ;;  %v4225_v53 = vld [vmem:[#allocation2 + $0x1a0] sm:$0xf]  ;;  %v5469_v54 = vld [vmem:[#allocation2 + $0x1a4] sm:$0xf0]  ;;  %v5419_v57 = vld [vmem:[#allocation2 + $0x14] sm:$0xf0]  ;;  %v4162_v59 = vor.u32 %v5453_v52, %v4161_v51 }
  0x3d   : > { %1554 = vmatpush.bf16.msra.mxu1 %v4122_v15  ;;  %4013 = vmatmul.msk.bf16.vlgmr.msrb.gmra.mxu2 %vm625_vm0, %v6169_v26  ;;  %v4089_v58 = vld [vmem:[#allocation2 + $0x90] sm:$0xf]  ;;  %v5435_v60 = vld [vmem:[#allocation2 + $0x94] sm:$0xf0]  ;;  %v4226_v61 = vor.u32 %v5469_v54, %v4225_v53  ;;  %v4026_v2 = vor.u32 %v5419_v57, %v4025_v56  ;;  %v4017_v3 = vld [vmem:[#allocation2] sm:$0xf] }
  0x3e   : > { %1567 = vmatpush.bf16.msra.mxu2 %v4186_v23  ;;  %4014 = vmatmul.msk.bf16.vlgmr.msrb.gmra.mxu3 %vm625_vm0, %v6169_v26  ;;  %v4098_v26 = vor.u32 %v5437_v49, %v4097_v47  ;;  %v4153_v62 = vld [vmem:[#allocation2 + $0x110] sm:$0xf]  ;;  %v5451_v63 = vld [vmem:[#allocation2 + $0x114] sm:$0xf0]  ;;  %v5417_v4 = vld [vmem:[#allocation2 + $0x4] sm:$0xf0]  ;;  %v4090_v5 = vor.u32 %v5435_v60, %v4089_v58 }
  0x3f   : > { %1580 = vmatpush.bf16.msra.mxu3 %v4250_v25  ;;  %v4217_v0 = vld [vmem:[#allocation2 + $0x190] sm:$0xf]  ;;  %v5467_v1 = vld [vmem:[#allocation2 + $0x194] sm:$0xf0]  ;;  %v4081_v6 = vld [vmem:[#allocation2 + $0x80] sm:$0xf]  ;;  %v4154_v9 = vor.u32 %v5451_v63, %v4153_v62  ;;  %v4018_v17 = vor.u32 %v5417_v4, %v4017_v3 }
  0x40   : > { %1542 = vmatpush.bf16.msra.mxu0 %v4050_v31  ;;  %v5433_v7 = vld [vmem:[#allocation2 + $0x84] sm:$0xf0]  ;;  %v4329_v8 = vld [vmem:[#allocation2 + $0x270] sm:$0xf]  ;;  %v5495_v10 = vld [vmem:[#allocation2 + $0x274] sm:$0xf0]  ;;  %v4218_v13 = vor.u32 %v5467_v1, %v4217_v0 }
  0x41   : > { %1555 = vmatpush.bf16.msra.mxu1 %v4114_v32  ;;  %v4393_v11 = vld [vmem:[#allocation2 + $0x2f0] sm:$0xf]  ;;  %v5511_v12 = vld [vmem:[#allocation2 + $0x2f4] sm:$0xf0]  ;;  %v4145_v14 = vld [vmem:[#allocation2 + $0x100] sm:$0xf]  ;;  %v4082_v21 = vor.u32 %v5433_v7, %v4081_v6  ;;  %v4330_v22 = vor.u32 %v5495_v10, %v4329_v8 }
  0x42   : > { %1568 = vmatpush.bf16.msra.mxu2 %v4178_v36  ;;  %v5449_v15 = vld [vmem:[#allocation2 + $0x104] sm:$0xf0]  ;;  %v4209_v16 = vld [vmem:[#allocation2 + $0x180] sm:$0xf]  ;;  %v4457_v19 = vld [vmem:[#allocation2 + $0x370] sm:$0xf]  ;;  %v4394_v25 = vor.u32 %v5511_v12, %v4393_v11 }
  0x43   : > { %1581 = vmatpush.bf16.msra.mxu3 %v4242_v38  ;;  %v5465_v18 = vld [vmem:[#allocation2 + $0x184] sm:$0xf0]  ;;  %v5527_v20 = vld [vmem:[#allocation2 + $0x374] sm:$0xf0]  ;;  %v4521_v23 = vld [vmem:[#allocation2 + $0x3f0] sm:$0xf]  ;;  %v4146_v29 = vor.u32 %v5449_v15, %v4145_v14 }
  0x44   : > { %1543 = vmatpush.bf16.msra.mxu0 %v4042_v43  ;;  %v5543_v24 = vld [vmem:[#allocation2 + $0x3f4] sm:$0xf0]  ;;  %v4321_v27 = vld [vmem:[#allocation2 + $0x260] sm:$0xf]  ;;  %v5493_v28 = vld [vmem:[#allocation2 + $0x264] sm:$0xf0]  ;;  %v4210_v32 = vor.u32 %v5465_v18, %v4209_v16  ;;  %v4458_v33 = vor.u32 %v5527_v20, %v4457_v19 }
  0x45   : > { %1556 = vmatpush.bf16.msra.mxu1 %v4106_v44  ;;  %v4385_v30 = vld [vmem:[#allocation2 + $0x2e0] sm:$0xf]  ;;  %v5509_v31 = vld [vmem:[#allocation2 + $0x2e4] sm:$0xf0]  ;;  %v4522_v34 = vor.u32 %v5543_v24, %v4521_v23  ;;  %v4322_v37 = vor.u32 %v5493_v28, %v4321_v27  ;;  %v4313_v38 = vld [vmem:[#allocation2 + $0x250] sm:$0xf] }
  0x46   : > { %1569 = vmatpush.bf16.msra.mxu2 %v4170_v48  ;;  %v4449_v35 = vld [vmem:[#allocation2 + $0x360] sm:$0xf]  ;;  %v5525_v36 = vld [vmem:[#allocation2 + $0x364] sm:$0xf0]  ;;  %v4386_v41 = vor.u32 %v5509_v31, %v4385_v30  ;;  %v5491_v42 = vld [vmem:[#allocation2 + $0x254] sm:$0xf0] }
  0x47   : > { %1582 = vmatpush.bf16.msra.mxu3 %v4234_v50  ;;  %v4513_v39 = vld [vmem:[#allocation2 + $0x3e0] sm:$0xf]  ;;  %v5541_v40 = vld [vmem:[#allocation2 + $0x3e4] sm:$0xf0]  ;;  %v4377_v43 = vld [vmem:[#allocation2 + $0x2d0] sm:$0xf]  ;;  %v4450_v45 = vor.u32 %v5525_v36, %v4449_v35  ;;  %v4314_v49 = vor.u32 %v5491_v42, %v4313_v38 }
  0x48   : > { %1544 = vmatpush.bf16.msra.mxu0 %v4034_v55  ;;  %v5507_v44 = vld [vmem:[#allocation2 + $0x2d4] sm:$0xf0]  ;;  %v4514_v46 = vor.u32 %v5541_v40, %v4513_v39  ;;  %v4441_v47 = vld [vmem:[#allocation2 + $0x350] sm:$0xf]  ;;  %v4305_v53 = vld [vmem:[#allocation2 + $0x240] sm:$0xf] }
  0x49   : > { %1557 = vmatpush.bf16.msra.mxu1 %v4098_v26  ;;  %v5523_v48 = vld [vmem:[#allocation2 + $0x354] sm:$0xf0]  ;;  %v4505_v50 = vld [vmem:[#allocation2 + $0x3d0] sm:$0xf]  ;;  %v4378_v52 = vor.u32 %v5507_v44, %v4377_v43  ;;  %v5489_v54 = vld [vmem:[#allocation2 + $0x244] sm:$0xf0] }
  0x4a   : > { %1570 = vmatpush.bf16.msra.mxu2 %v4162_v59  ;;  %v5539_v51 = vld [vmem:[#allocation2 + $0x3d4] sm:$0xf0]  ;;  %v4369_v55 = vld [vmem:[#allocation2 + $0x2c0] sm:$0xf]  ;;  %v5505_v26 = vld [vmem:[#allocation2 + $0x2c4] sm:$0xf0]  ;;  %v4442_v56 = vor.u32 %v5523_v48, %v4441_v47  ;;  %v4306_v60 = vor.u32 %v5489_v54, %v4305_v53 }
  0x4b   : > { %1583 = vmatpush.bf16.msra.mxu3 %v4226_v61  ;;  %v4506_v57 = vor.u32 %v5539_v51, %v4505_v50  ;;  %v4433_v58 = vld [vmem:[#allocation2 + $0x340] sm:$0xf]  ;;  %v5521_v59 = vld [vmem:[#allocation2 + $0x344] sm:$0xf0]  ;;  %v4370_v63 = vor.u32 %v5505_v26, %v4369_v55  ;;  %v4297_v0 = vld [vmem:[#allocation2 + $0x230] sm:$0xf] }
  0x4c   : > { %1545 = vmatpush.bf16.msra.mxu0 %v4026_v2  ;;  %v4497_v61 = vld [vmem:[#allocation2 + $0x3c0] sm:$0xf]  ;;  %v5537_v62 = vld [vmem:[#allocation2 + $0x3c4] sm:$0xf0]  ;;  %v5487_v1 = vld [vmem:[#allocation2 + $0x234] sm:$0xf0]  ;;  %v4434_v4 = vor.u32 %v5521_v59, %v4433_v58 }
  0x4d   : > { %1558 = vmatpush.bf16.msra.mxu1 %v4090_v5  ;;  %v4361_v2 = vld [vmem:[#allocation2 + $0x2b0] sm:$0xf]  ;;  %v5503_v3 = vld [vmem:[#allocation2 + $0x2b4] sm:$0xf0]  ;;  %v4498_v5 = vor.u32 %v5537_v62, %v4497_v61  ;;  %v4298_v6 = vor.u32 %v5487_v1, %v4297_v0  ;;  %v4289_v8 = vld [vmem:[#allocation2 + $0x220] sm:$0xf] }
  0x4e   : > { %1571 = vmatpush.bf16.msra.mxu2 %v4154_v9  ;;  %v4362_v7 = vor.u32 %v5503_v3, %v4361_v2  ;;  %v5485_v9 = vld [vmem:[#allocation2 + $0x224] sm:$0xf0]  ;;  %v4353_v10 = vld [vmem:[#allocation2 + $0x2a0] sm:$0xf]  ;;  %v4425_v14 = vld [vmem:[#allocation2 + $0x330] sm:$0xf] }
  0x4f   : > { %1584 = vmatpush.bf16.msra.mxu3 %v4218_v13  ;;  %v5501_v11 = vld [vmem:[#allocation2 + $0x2a4] sm:$0xf0]  ;;  %v4290_v12 = vor.u32 %v5485_v9, %v4289_v8  ;;  %v5519_v15 = vld [vmem:[#allocation2 + $0x334] sm:$0xf0]  ;;  %v4489_v16 = vld [vmem:[#allocation2 + $0x3b0] sm:$0xf] }
  0x50   : > { %1546 = vmatpush.bf16.msra.mxu0 %v4018_v17  ;;  %v4354_v13 = vor.u32 %v5501_v11, %v4353_v10  ;;  %v4426_v17 = vor.u32 %v5519_v15, %v4425_v14  ;;  %v5535_v18 = vld [vmem:[#allocation2 + $0x3b4] sm:$0xf0]  ;;  %v4281_v20 = vld [vmem:[#allocation2 + $0x210] sm:$0xf]  ;;  %v4417_v27 = vld [vmem:[#allocation2 + $0x320] sm:$0xf] }
  0x51   : > { %1559 = vmatpush.bf16.msra.mxu1 %v4082_v21  ;;  %v4490_v19 = vor.u32 %v5535_v18, %v4489_v16  ;;  %v5483_v21 = vld [vmem:[#allocation2 + $0x214] sm:$0xf0]  ;;  %v5517_v28 = vld [vmem:[#allocation2 + $0x324] sm:$0xf0]  ;;  %v4337_v35 = vld [vmem:[#allocation2 + $0x280] sm:$0xf] }
  0x52   : > { %1572 = vmatpush.bf16.msra.mxu2 %v4146_v29  ;;  %v4282_v23 = vor.u32 %v5483_v21, %v4281_v20  ;;  %v5499_v24 = vld [vmem:[#allocation2 + $0x294] sm:$0xf0]  ;;  %v4481_v29 = vld [vmem:[#allocation2 + $0x3a0] sm:$0xf]  ;;  %v4418_v30 = vor.u32 %v5517_v28, %v4417_v27  ;;  %v5533_v31 = vld [vmem:[#allocation2 + $0x3a4] sm:$0xf0] }
  0x53   : > { %1585 = vmatpush.bf16.msra.mxu3 %v4210_v32  ;;  %v4482_v32 = vor.u32 %v5533_v31, %v4481_v29  ;;  %v4409_v39 = vld [vmem:[#allocation2 + $0x310] sm:$0xf]  ;;  %v5515_v40 = vld [vmem:[#allocation2 + $0x314] sm:$0xf0]  ;;  %v4465_v48 = vld [vmem:[#allocation2 + $0x380] sm:$0xf] }
  0x54   : > { %1591 = vmatpush.bf16.msrb.mxu0 %v4330_v22  ;;  %v4345_v22 = vld [vmem:[#allocation2 + $0x290] sm:$0xf]  ;;  %v4410_v42 = vor.u32 %v5515_v40, %v4409_v39  ;;  %v5531_v43 = vld [vmem:[#allocation2 + $0x394] sm:$0xf0]  ;;  %v6235_v51 = vld [vmem:[%s6726_s10] sm:$0xff]  ;;  %s5397_s16 = sshll.u32 %s6058_s29, 3 }
  0x55   : > { %1604 = vmatpush.bf16.msrb.mxu1 %v4394_v25  ;;  %v4346_v25 = vor.u32 %v5499_v24, %v4345_v22  ;;  %v530_v53 = vperm.slane %v6235_v51, 1  ;;  %v4075_v58 = vld [vmem:[#allocation2 + $0x78] sm:$0xf0]  ;;  %v5446_v59 = vld [vmem:[#allocation2 + $0xf4] sm:$0xf]  ;;  %v532_v1 = vperm.slane %v6235_v51, 3  ;;  %s3778_s14 = scalar_lea.hbm %s6727_s11, %s5397_s16 }
  0x56   : > { %1617 = vmatpush.bf16.msrb.mxu2 %v4458_v33  ;;  %v4273_v33 = vld [vmem:[#allocation2 + $0x200] sm:$0xf]  ;;  %v4139_v61 = vld [vmem:[#allocation2 + $0xf8] sm:$0xf0]  ;;  %v5444_v10 = vld [vmem:[#allocation2 + $0xe4] sm:$0xf] }
  0x57   : > { %1630 = vmatpush.bf16.msrb.mxu3 %v4522_v34  ;;  %v5481_v34 = vld [vmem:[#allocation2 + $0x204] sm:$0xf0]  ;;  %v4131_v11 = vld [vmem:[#allocation2 + $0xe8] sm:$0xf0]  ;;  %v5462_v15 = vld [vmem:[#allocation2 + $0x174] sm:$0xf] }
  0x58   : > { %1592 = vmatpush.bf16.msrb.mxu0 %v4322_v37  ;;  %v4274_v36 = vor.u32 %v5481_v34, %v4273_v33  ;;  %v5497_v37 = vld [vmem:[#allocation2 + $0x284] sm:$0xf0]  ;;  %v4203_v16 = vld [vmem:[#allocation2 + $0x178] sm:$0xf0]  ;;  %v5426_v22 = vld [vmem:[#allocation2 + $0x54] sm:$0xf] }
  0x59   : > { %1605 = vmatpush.bf16.msrb.mxu1 %v4386_v41  ;;  %v4338_v38 = vor.u32 %v5497_v37, %v4337_v35  ;;  %v4473_v41 = vld [vmem:[#allocation2 + $0x390] sm:$0xf]  ;;  %v4267_v21 = vld [vmem:[#allocation2 + $0x1f8] sm:$0xf0]  ;;  %v5442_v27 = vld [vmem:[#allocation2 + $0xd4] sm:$0xf]  ;;  %v4206_v31 = vor.u32 %v5462_v15, %v4203_v16 }
  0x5a   : > { %1618 = vmatpush.bf16.msrb.mxu2 %v4450_v45  ;;  %v4474_v44 = vor.u32 %v5531_v43, %v4473_v41  ;;  %v4401_v45 = vld [vmem:[#allocation2 + $0x300] sm:$0xf]  ;;  %v4123_v29 = vld [vmem:[#allocation2 + $0xd8] sm:$0xf0]  ;;  %v534_v33 = vperm.slane %v6235_v51, 5  ;;  %s3782_s20 = sshll.u32 %s3778_s14, 4  ;;  %s3783_s20 = int_to_ptr.hbm [resolvable:$true] %s3782_s20 }
  0x5b   : > { %1631 = vmatpush.bf16.msrb.mxu3 %v4514_v46  ;;  %v5513_v46 = vld [vmem:[#allocation2 + $0x304] sm:$0xf0]  ;;  %v4195_v39 = vld [vmem:[#allocation2 + $0x168] sm:$0xf0]  ;;  %v5476_v40 = vld [vmem:[#allocation2 + $0x1e4] sm:$0xf] }
  0x5c   : > { %1593 = vmatpush.bf16.msrb.mxu0 %v4314_v49  ;;  %v4402_v47 = vor.u32 %v5513_v46, %v4401_v45  ;;  %v5529_v49 = vld [vmem:[#allocation2 + $0x384] sm:$0xf0]  ;;  %v4259_v43 = vld [vmem:[#allocation2 + $0x1e8] sm:$0xf0]  ;;  %s5909_s16 = scalar_lea.hbm %s6727_s11, 16 }
  0x5d   : > { %1606 = vmatpush.bf16.msrb.mxu1 %v4378_v52  ;;  %v4466_v50 = vor.u32 %v5529_v49, %v4465_v48  ;;  %v529_v52 = vperm.slane %v6235_v51, 0  ;;  %v4051_v45 = vld [vmem:[#allocation2 + $0x48] sm:$0xf0] }
  0x5e   : > { %1619 = vmatpush.bf16.msrb.mxu2 %v4442_v56  ;;  %v4115_v48 = vld [vmem:[#allocation2 + $0xc8] sm:$0xf0] }
  0x5f   : > { %1632 = vmatpush.bf16.msrb.mxu3 %v4506_v57  ;;  %v5430_v57 = vld [vmem:[#allocation2 + $0x74] sm:$0xf] }
  0x60   : > { %1594 = vmatpush.bf16.msrb.mxu0 %v4306_v60  ;;  %v4078_v2 = vor.u32 %v5430_v57, %v4075_v58  ;;  %v4187_v57 = vld [vmem:[#allocation2 + $0x158] sm:$0xf0]  ;;  %v5474_v58 = vld [vmem:[#allocation2 + $0x1d4] sm:$0xf] }
  0x61   : > { %1607 = vmatpush.bf16.msrb.mxu1 %v4370_v63  ;;  %v531_v63 = vperm.slane %v6235_v51, 2 }
  0x62   : > { %1620 = vmatpush.bf16.msrb.mxu2 %v4434_v4 }
  0x63   : > { %1633 = vmatpush.bf16.msrb.mxu3 %v4498_v5  ;;  %v4142_v5 = vor.u32 %v5446_v59, %v4139_v61  ;;  %v4251_v59 = vld [vmem:[#allocation2 + $0x1d8] sm:$0xf0] }
  0x64   : > { %1595 = vmatpush.bf16.msrb.mxu0 %v4298_v6  ;;  %v5428_v6 = vld [vmem:[#allocation2 + $0x64] sm:$0xf] }
  0x65   : > { %1608 = vmatpush.bf16.msrb.mxu1 %v4362_v7  ;;  %v4067_v7 = vld [vmem:[#allocation2 + $0x68] sm:$0xf0] }
  0x66   : > { %1621 = vmatpush.bf16.msrb.mxu2 %v4426_v17  ;;  %v5478_v17 = vld [vmem:[#allocation2 + $0x1f4] sm:$0xf]  ;;  %v4070_v20 = vor.u32 %v5428_v6, %v4067_v7 }
  0x67   : > { %1634 = vmatpush.bf16.msrb.mxu3 %v4490_v19 }
  0x68   : > { %1596 = vmatpush.bf16.msrb.mxu0 %v4290_v12 }
  0x69   : > { %1609 = vmatpush.bf16.msrb.mxu1 %v4354_v13 }
  0x6a   : > { %1622 = vmatpush.bf16.msrb.mxu2 %v4418_v30 }
  0x6b   : > { %1635 = vmatpush.bf16.msrb.mxu3 %v4482_v32  ;;  %v533_v32 = vperm.slane %v6235_v51, 4 }
  0x6c   : > { %1597 = vmatpush.bf16.msrb.mxu0 %v4282_v23  ;;  %v4059_v23 = vld [vmem:[#allocation2 + $0x58] sm:$0xf0] }
  0x6d   : > { %1610 = vmatpush.bf16.msrb.mxu1 %v4346_v25  ;;  %v4134_v25 = vor.u32 %v5444_v10, %v4131_v11  ;;  %v4062_v37 = vor.u32 %v5426_v22, %v4059_v23  ;;  %v4254_v10 = vor.u32 %v5474_v58, %v4251_v59  ;;  %v5456_v11 = vld [vmem:[#allocation2 + $0x144] sm:$0xf]  ;;  %v4035_v22 = vld [vmem:[#allocation2 + $0x28] sm:$0xf0] }
  0x6e   : > { %1623 = vmatpush.bf16.msrb.mxu2 %v4410_v42  ;;  %v4126_v42 = vor.u32 %v5442_v27, %v4123_v29  ;;  %v5436_v23 = vld [vmem:[#allocation2 + $0xa4] sm:$0xf]  ;;  %v4171_v29 = vld [vmem:[#allocation2 + $0x138] sm:$0xf0]  ;;  %v4019_v59 = vld [vmem:[#allocation2 + $0x8] sm:$0xf0] }
  0x6f   : > { %1636 = vmatpush.bf16.msrb.mxu3 %v4474_v44  ;;  %v5424_v44 = vld [vmem:[#allocation2 + $0x44] sm:$0xf] }
  0x70   : > { %1598 = vmatpush.bf16.msrb.mxu0 %v4274_v36  ;;  %v4270_v36 = vor.u32 %v5478_v17, %v4267_v21  ;;  %v5472_v17 = vld [vmem:[#allocation2 + $0x1c4] sm:$0xf] }
  0x71   : > { %1611 = vmatpush.bf16.msrb.mxu1 %v4338_v38  ;;  %v5460_v38 = vld [vmem:[#allocation2 + $0x164] sm:$0xf] }
  0x72   : > { %1624 = vmatpush.bf16.msrb.mxu2 %v4402_v47  ;;  %v5440_v47 = vld [vmem:[#allocation2 + $0xc4] sm:$0xf] }
  0x73   : > { %1637 = vmatpush.bf16.msrb.mxu3 %v4466_v50  ;;  %v4118_v61 = vor.u32 %v5440_v47, %v4115_v48  ;;  %v5416_v58 = vld [vmem:[#allocation2 + $0x4] sm:$0xf] }
  0xa8   : > { %v638_v54 = vpop.f32.mrf.mxu0 }
  0xa9   : > { %v639_v55 = vadd.f32 %v638_v54, %v529_v52  ;;  %v651_v26 = vpop.f32.mrf.mxu1  ;;  %v4198_v52 = vor.u32 %v5460_v38, %v4195_v39 }
  0xaa   : > { %v652_v56 = vadd.f32 %v651_v26, %v530_v53  ;;  %v5458_v53 = vld [vmem:[#allocation2 + $0x154] sm:$0xf]  ;;  %v4262_v26 = vor.u32 %v5476_v40, %v4259_v43 }
  0xab   : > { %vm733_vm1 = vcmp.gt.f32.partialorder %v639_v55, 0.0  ;;  %v741_v60 = vmul.f32 0.01, %v639_v55  ;;  %v4190_v6 = vor.u32 %v5458_v53, %v4187_v57  ;;  %v5434_v43 = vld [vmem:[#allocation2 + $0x94] sm:$0xf] }
  0xac   : > { %vm734_vm2 = vcmp.gt.f32.partialorder %v652_v56, 0.0  ;;  %v742_v62 = vmul.f32 0.01, %v652_v56  ;;  %v4163_v53 = vld [vmem:[#allocation2 + $0x128] sm:$0xf0] }
  0xad   : > { %v749_v0 = vsel %vm733_vm1, %v639_v55, %v741_v60  ;;  %v4227_v57 = vld [vmem:[#allocation2 + $0x1a8] sm:$0xf0] }
  0xae   : > { %v6241_v3 = vpack.c.bf16 %v749_v0, %v749_v0  ;;  %v750_v4 = vsel %vm734_vm2, %v652_v56, %v742_v62  ;;  %v4054_v56 = vor.u32 %v5424_v44, %v4051_v45  ;;  %v5422_v62 = vld [vmem:[#allocation2 + $0x34] sm:$0xf]  ;;  %v4091_v45 = vld [vmem:[#allocation2 + $0x98] sm:$0xf0] }
  0xaf   : > { %v6243_v8 = vpack.c.bf16 %v750_v4, %v750_v4  ;;  %v5438_v0 = vld [vmem:[#allocation2 + $0xb4] sm:$0xf] }
  0xb0   : > { %v664_v9 = vpop.f32.mrf.mxu2  ;;  %v640_v14 = vpop.f32.mrf.mxu0  ;;  %1547 = vmatmul.bf16.vlgmr.msra.gmra.mxu0 %v6241_v3 }
  0xb1   : > { %v665_v12 = vadd.f32 %v664_v9, %v531_v63  ;;  %v677_v13 = vpop.f32.mrf.mxu3  ;;  %v653_v19 = vpop.f32.mrf.mxu1  ;;  %1560 = vmatmul.bf16.vlgmr.msra.gmra.mxu1 %v6243_v8  ;;  %1643 = vmatpush.bf16.msra.mxu0 %v4078_v2  ;;  %v4043_v63 = vld [vmem:[#allocation2 + $0x38] sm:$0xf0]  ;;  %v536_v9 = vperm.slane %v6235_v51, 7 }
  0xb2   : > { %v678_v18 = vadd.f32 %v677_v13, %v532_v1  ;;  %1656 = vmatpush.bf16.msra.mxu1 %v4142_v5  ;;  %v4107_v2 = vld [vmem:[#allocation2 + $0xb8] sm:$0xf0]  ;;  %v535_v5 = vperm.slane %v6235_v51, 6  ;;  %v4046_v15 = vor.u32 %v5422_v62, %v4043_v63  ;;  %v5420_v19 = vld [vmem:[#allocation2 + $0x24] sm:$0xf] }
  0xb3   : > { %vm735_vm3 = vcmp.gt.f32.partialorder %v665_v12, 0.0  ;;  %v743_v24 = vmul.f32 0.01, %v665_v12  ;;  %v4110_v16 = vor.u32 %v5438_v0, %v4107_v2  ;;  %v4038_v40 = vor.u32 %v5420_v19, %v4035_v22  ;;  %v4083_v62 = vld [vmem:[#allocation2 + $0x88] sm:$0xf0] }
  0xb4   : > { %vm736_vm4 = vcmp.gt.f32.partialorder %v678_v18, 0.0  ;;  %v744_v28 = vmul.f32 0.01, %v678_v18  ;;  %v5494_v63 = vld [vmem:[#allocation2 + $0x274] sm:$0xf] }
  0xb5   : > { %v751_v30 = vsel %vm735_vm3, %v665_v12, %v743_v24  ;;  %1644 = vmatpush.bf16.msra.mxu0 %v4070_v20  ;;  %v4179_v12 = vld [vmem:[#allocation2 + $0x148] sm:$0xf0]  ;;  %v4331_v2 = vld [vmem:[#allocation2 + $0x278] sm:$0xf0] }
  0xb6   : > { %v6249_v34 = vpack.c.bf16 %v751_v30, %v751_v30  ;;  %v752_v35 = vsel %vm736_vm4, %v678_v18, %v744_v28  ;;  %1657 = vmatpush.bf16.msra.mxu1 %v4134_v25  ;;  %v4243_v18 = vld [vmem:[#allocation2 + $0x1c8] sm:$0xf0]  ;;  %v4182_v27 = vor.u32 %v5456_v11, %v4179_v12  ;;  %v5454_v28 = vld [vmem:[#allocation2 + $0x134] sm:$0xf] }
  0xb7   : > { %v6251_v41 = vpack.c.bf16 %v752_v35, %v752_v35  ;;  %v4099_v24 = vld [vmem:[#allocation2 + $0xa8] sm:$0xf0]  ;;  %v5470_v30 = vld [vmem:[#allocation2 + $0x1b4] sm:$0xf]  ;;  %v4235_v35 = vld [vmem:[#allocation2 + $0x1b8] sm:$0xf0]  ;;  %v4174_v47 = vor.u32 %v5454_v28, %v4171_v29 }
  0xb8   : > { %v666_v46 = vpop.f32.mrf.mxu2  ;;  %1573 = vmatmul.bf16.vlgmr.msra.gmra.mxu2 %v6249_v34  ;;  %v690_v50 = vpop.f32.mrf.mxu0  ;;  %v5466_v12 = vld [vmem:[#allocation2 + $0x194] sm:$0xf]  ;;  %v4323_v19 = vld [vmem:[#allocation2 + $0x268] sm:$0xf0]  ;;  %v4459_v29 = vld [vmem:[#allocation2 + $0x378] sm:$0xf0] }
  0xb9   : > { %v679_v49 = vpop.f32.mrf.mxu3  ;;  %1586 = vmatmul.bf16.vlgmr.msra.gmra.mxu3 %v6251_v41  ;;  %1669 = vmatpush.bf16.msra.mxu2 %v4206_v31  ;;  %v691_v54 = vadd.f32 %v690_v50, %v533_v32  ;;  %v703_v55 = vpop.f32.mrf.mxu1  ;;  %v4238_v50 = vor.u32 %v5470_v30, %v4235_v35  ;;  %v4387_v22 = vld [vmem:[#allocation2 + $0x2e8] sm:$0xf0]  ;;  %v5526_v28 = vld [vmem:[#allocation2 + $0x374] sm:$0xf] }
  0xba   : > { %1682 = vmatpush.bf16.msra.mxu3 %v4270_v36  ;;  %1645 = vmatpush.bf16.msra.mxu0 %v4062_v37  ;;  %v704_v60 = vadd.f32 %v703_v55, %v534_v33  ;;  %v4246_v33 = vor.u32 %v5472_v17, %v4243_v18  ;;  %v5418_v36 = vld [vmem:[#allocation2 + $0x14] sm:$0xf]  ;;  %v4027_v37 = vld [vmem:[#allocation2 + $0x18] sm:$0xf0]  ;;  %v5492_v17 = vld [vmem:[#allocation2 + $0x264] sm:$0xf] }
  0xbb   : > { %1658 = vmatpush.bf16.msra.mxu1 %v4126_v42  ;;  %vm737_vm5 = vcmp.gt.f32.partialorder %v691_v54, 0.0  ;;  %v745_v1 = vmul.f32 0.01, %v691_v54  ;;  %v4102_v42 = vor.u32 %v5436_v23, %v4099_v24  ;;  %v5448_v24 = vld [vmem:[#allocation2 + $0x104] sm:$0xf]  ;;  %v4326_v30 = vor.u32 %v5492_v17, %v4323_v19 }
  0xbc   : > { %vm738_vm6 = vcmp.gt.f32.partialorder %v704_v60, 0.0  ;;  %v746_v4 = vmul.f32 0.01, %v704_v60  ;;  %v5490_v35 = vld [vmem:[#allocation2 + $0x254] sm:$0xf] }
  0xbd   : > { %1670 = vmatpush.bf16.msra.mxu2 %v4198_v52  ;;  %v753_v7 = vsel %vm737_vm5, %v691_v54, %v745_v1  ;;  %v5452_v52 = vld [vmem:[#allocation2 + $0x124] sm:$0xf]  ;;  %v5518_v17 = vld [vmem:[#allocation2 + $0x334] sm:$0xf] }
  0xbe   : > { %1683 = vmatpush.bf16.msra.mxu3 %v4262_v26  ;;  %1646 = vmatpush.bf16.msra.mxu0 %v4054_v56  ;;  %v6257_v13 = vpack.c.bf16 %v753_v7, %v753_v7  ;;  %v754_v14 = vsel %vm738_vm6, %v704_v60, %v746_v4  ;;  %v5468_v54 = vld [vmem:[#allocation2 + $0x1a4] sm:$0xf]  ;;  %v4030_v26 = vor.u32 %v5418_v36, %v4027_v37  ;;  %v5510_v4 = vld [vmem:[#allocation2 + $0x2f4] sm:$0xf]  ;;  %v4315_v37 = vld [vmem:[#allocation2 + $0x258] sm:$0xf0] }
  0xbf   : > { %1659 = vmatpush.bf16.msra.mxu1 %v4118_v61  ;;  %v6259_v20 = vpack.c.bf16 %v754_v14, %v754_v14  ;;  %v4094_v56 = vor.u32 %v5434_v43, %v4091_v45  ;;  %v5432_v61 = vld [vmem:[#allocation2 + $0x84] sm:$0xf]  ;;  %v4166_v0 = vor.u32 %v5452_v52, %v4163_v53  ;;  %v5450_v7 = vld [vmem:[#allocation2 + $0x114] sm:$0xf]  ;;  %v4219_v14 = vld [vmem:[#allocation2 + $0x198] sm:$0xf0] }
  0xc0   : > { %v716_v21 = vpop.f32.mrf.mxu2  ;;  %1599 = vmatmul.bf16.vlgmr.msrb.gmra.mxu0 %v6257_v13  ;;  %v692_v31 = vpop.f32.mrf.mxu0  ;;  %v4086_v11 = vor.u32 %v5432_v61, %v4083_v62  ;;  %v4222_v23 = vor.u32 %v5466_v12, %v4219_v14  ;;  %v4451_v45 = vld [vmem:[#allocation2 + $0x368] sm:$0xf0]  ;;  %v5488_v52 = vld [vmem:[#allocation2 + $0x244] sm:$0xf]  ;;  %v4507_v61 = vld [vmem:[#allocation2 + $0x3d8] sm:$0xf0] }
  0xc1   : > { %v717_v25 = vadd.f32 %v716_v21, %v535_v5  ;;  %v729_v51 = vpop.f32.mrf.mxu3  ;;  %1671 = vmatpush.bf16.msra.mxu2 %v4190_v6  ;;  %1612 = vmatmul.bf16.vlgmr.msrb.gmra.mxu1 %v6259_v20  ;;  %v705_v38 = vpop.f32.mrf.mxu1  ;;  %v4395_v5 = vld [vmem:[#allocation2 + $0x2f8] sm:$0xf0]  ;;  %v4230_v6 = vor.u32 %v5468_v54, %v4227_v57  ;;  %v5508_v21 = vld [vmem:[#allocation2 + $0x2e4] sm:$0xf]  ;;  %v4307_v53 = vld [vmem:[#allocation2 + $0x248] sm:$0xf0] }
  0xc2   : > { %v730_v32 = vadd.f32 %v729_v51, %v536_v9  ;;  %1684 = vmatpush.bf16.msra.mxu3 %v4254_v10  ;;  %1647 = vmatpush.bf16.msra.mxu0 %v4046_v15  ;;  %v4155_v9 = vld [vmem:[#allocation2 + $0x118] sm:$0xf0]  ;;  %v4022_v10 = vor.u32 %v5416_v58, %v4019_v59  ;;  %v4334_v15 = vor.u32 %v5494_v63, %v4331_v2  ;;  %v5464_v51 = vld [vmem:[#allocation2 + $0x184] sm:$0xf]  ;;  %v5506_v38 = vld [vmem:[#allocation2 + $0x2d4] sm:$0xf] }
  0xc3   : > { %vm739_vm7 = vcmp.gt.f32.partialorder %v717_v25, 0.0  ;;  %v747_v39 = vmul.f32 0.01, %v717_v25  ;;  %1660 = vmatpush.bf16.msra.mxu1 %v4110_v16  ;;  %v4398_v16 = vor.u32 %v5510_v4, %v4395_v5  ;;  %v4158_v18 = vor.u32 %v5450_v7, %v4155_v9  ;;  %v5504_v54 = vld [vmem:[#allocation2 + $0x2c4] sm:$0xf] }
  0xc4   : > { %vm740_vm8 = vcmp.gt.f32.partialorder %v730_v32, 0.0  ;;  %v748_v44 = vmul.f32 0.01, %v730_v32  ;;  %v4390_v31 = vor.u32 %v5508_v21, %v4387_v22  ;;  %v4443_v57 = vld [vmem:[#allocation2 + $0x358] sm:$0xf0]  ;;  %v4310_v58 = vor.u32 %v5488_v52, %v4307_v53 }
  0xc5   : > { %v755_v46 = vsel %vm739_vm7, %v717_v25, %v747_v39  ;;  %1672 = vmatpush.bf16.msra.mxu2 %v4182_v27  ;;  %v4147_v25 = vld [vmem:[#allocation2 + $0x108] sm:$0xf0]  ;;  %v4379_v39 = vld [vmem:[#allocation2 + $0x2d8] sm:$0xf0]  ;;  %v5486_v62 = vld [vmem:[#allocation2 + $0x234] sm:$0xf] }
  0xc6   : > { %v6263_v48 = vpack.c.bf16 %v755_v46, %v755_v46  ;;  %v756_v49 = vsel %vm740_vm8, %v730_v32, %v748_v44  ;;  %1685 = vmatpush.bf16.msra.mxu3 %v4246_v33  ;;  %1648 = vmatpush.bf16.msra.mxu0 %v4038_v40  ;;  %v4211_v27 = vld [vmem:[#allocation2 + $0x188] sm:$0xf0]  ;;  %v5542_v32 = vld [vmem:[#allocation2 + $0x3f4] sm:$0xf]  ;;  %v4523_v33 = vld [vmem:[#allocation2 + $0x3f8] sm:$0xf0]  ;;  %v4150_v36 = vor.u32 %v5448_v24, %v4147_v25 }
  0xc7   : > { %v6265_v55 = vpack.c.bf16 %v756_v49, %v756_v49  ;;  %1661 = vmatpush.bf16.msra.mxu1 %v4102_v42  ;;  %v4214_v40 = vor.u32 %v5464_v51, %v4211_v27  ;;  %v4462_v42 = vor.u32 %v5526_v28, %v4459_v29  ;;  %v4526_v43 = vor.u32 %v5542_v32, %v4523_v33  ;;  %v5524_v44 = vld [vmem:[#allocation2 + $0x364] sm:$0xf]  ;;  %v4299_v63 = vld [vmem:[#allocation2 + $0x238] sm:$0xf0]  ;;  %v4291_v14 = vld [vmem:[#allocation2 + $0x228] sm:$0xf0] }
  0xc8   : > { %1625 = vmatmul.bf16.vlgmr.msrb.gmra.mxu2 %v6263_v48  ;;  %v718_v60 = vpop.f32.mrf.mxu2  ;;  %v4318_v46 = vor.u32 %v5490_v35, %v4315_v37  ;;  %v5540_v49 = vld [vmem:[#allocation2 + $0x3e4] sm:$0xf]  ;;  %v4302_v7 = vor.u32 %v5486_v62, %v4299_v63  ;;  %v5534_v22 = vld [vmem:[#allocation2 + $0x3b4] sm:$0xf]  ;;  %v4283_v25 = vld [vmem:[#allocation2 + $0x218] sm:$0xf0] }
  0xc9   : > { %1638 = vmatmul.bf16.vlgmr.msrb.gmra.mxu3 %v6265_v55  ;;  %1673 = vmatpush.bf16.msra.mxu2 %v4174_v47  ;;  %v731_v1 = vpop.f32.mrf.mxu3  ;;  %v4382_v47 = vor.u32 %v5506_v38, %v4379_v39  ;;  %v5538_v60 = vld [vmem:[#allocation2 + $0x3d4] sm:$0xf]  ;;  %v5520_v5 = vld [vmem:[#allocation2 + $0x344] sm:$0xf]  ;;  %v4347_v27 = vld [vmem:[#allocation2 + $0x298] sm:$0xf0] }
  0xca   : > { %1686 = vmatpush.bf16.msra.mxu3 %v4238_v50  ;;  %1649 = vmatpush.bf16.msra.mxu0 %v4030_v26  ;;  %v4515_v50 = vld [vmem:[#allocation2 + $0x3e8] sm:$0xf0]  ;;  %v4363_v1 = vld [vmem:[#allocation2 + $0x2b8] sm:$0xf0]  ;;  %v4510_v4 = vor.u32 %v5538_v60, %v4507_v61  ;;  %v5484_v12 = vld [vmem:[#allocation2 + $0x224] sm:$0xf] }
  0xcb   : > { %1662 = vmatpush.bf16.msra.mxu1 %v4094_v56  ;;  %v4371_v26 = vld [vmem:[#allocation2 + $0x2c8] sm:$0xf0]  ;;  %v4518_v56 = vor.u32 %v5540_v49, %v4515_v50  ;;  %v4294_v19 = vor.u32 %v5484_v12, %v4291_v14  ;;  %v5482_v24 = vld [vmem:[#allocation2 + $0x214] sm:$0xf]  ;;  %v5532_v35 = vld [vmem:[#allocation2 + $0x3a4] sm:$0xf] }
  0xcc   : > { %v4374_v59 = vor.u32 %v5504_v54, %v4371_v26  ;;  %v5498_v51 = vld [vmem:[#allocation2 + $0x294] sm:$0xf]  ;;  %v4286_v32 = vor.u32 %v5482_v24, %v4283_v25  ;;  %v5480_v37 = vld [vmem:[#allocation2 + $0x204] sm:$0xf]  ;;  %v4275_v38 = vld [vmem:[#allocation2 + $0x208] sm:$0xf0] }
  0xcd   : > { %1674 = vmatpush.bf16.msra.mxu2 %v4166_v0  ;;  %v5502_v0 = vld [vmem:[#allocation2 + $0x2b4] sm:$0xf]  ;;  %v4350_v33 = vor.u32 %v5498_v51, %v4347_v27  ;;  %v5496_v39 = vld [vmem:[#allocation2 + $0x284] sm:$0xf]  ;;  %v4475_v50 = vld [vmem:[#allocation2 + $0x398] sm:$0xf0] }
  0xce   : > { %1687 = vmatpush.bf16.msra.mxu3 %v4230_v6  ;;  %1650 = vmatpush.bf16.msra.mxu0 %v4022_v10  ;;  %v4435_v6 = vld [vmem:[#allocation2 + $0x348] sm:$0xf0]  ;;  %v4366_v9 = vor.u32 %v5502_v0, %v4363_v1  ;;  %v5536_v10 = vld [vmem:[#allocation2 + $0x3c4] sm:$0xf]  ;;  %v5530_v49 = vld [vmem:[#allocation2 + $0x394] sm:$0xf] }
  0xcf   : > { %1663 = vmatpush.bf16.msra.mxu1 %v4086_v11  ;;  %v4499_v11 = vld [vmem:[#allocation2 + $0x3c8] sm:$0xf0]  ;;  %v4478_v53 = vor.u32 %v5530_v49, %v4475_v50  ;;  %v5512_v54 = vld [vmem:[#allocation2 + $0x304] sm:$0xf]  ;;  %v893_v63 = vld [vmem:[%s6726_s10 + $0x8] sm:$0x3] }
  0xd0   : > { %v4403_v26 = vld [vmem:[#allocation2 + $0x308] sm:$0xf0]  ;;  %v5544_v0 = vld [vmem:[%s6720_s4] sm:$0xff]  ;;  %v895_v1 = vperm.slane %v893_v63, 0  ;;  %v5559_v14 = vld [vmem:[%s6720_s4 + $0x78] sm:$0xff] }
  0xd1   : > { %1675 = vmatpush.bf16.msra.mxu2 %v4158_v18  ;;  %1651 = vmatmul.bf16.vlgmr.msra.gmra.mxu0 %v6241_v3  ;;  %v4454_v3 = vor.u32 %v5524_v44, %v4451_v45  ;;  %v4427_v18 = vld [vmem:[#allocation2 + $0x338] sm:$0xf0]  ;;  %v5514_v44 = vld [vmem:[#allocation2 + $0x314] sm:$0xf]  ;;  %v5545_v61 = vld [vmem:[%s6720_s4 + $0x8] sm:$0xff] }
  0xd2   : > { %1695 = vmatpush.bf16.msrb.mxu0 %v4334_v15  ;;  %1688 = vmatpush.bf16.msra.mxu3 %v4222_v23  ;;  %v4355_v15 = vld [vmem:[#allocation2 + $0x2a8] sm:$0xf0]  ;;  %v4491_v23 = vld [vmem:[#allocation2 + $0x3b8] sm:$0xf0]  ;;  %v4430_v28 = vor.u32 %v5518_v17, %v4427_v18  ;;  %v5556_v27 = vld [vmem:[%s6720_s4 + $0x60] sm:$0xff] }
  0xd3   : > { %1708 = vmatpush.bf16.msrb.mxu1 %v4398_v16  ;;  %v4502_v16 = vor.u32 %v5536_v10, %v4499_v11  ;;  %v4494_v29 = vor.u32 %v5534_v22, %v4491_v23  ;;  %v4411_v45 = vld [vmem:[#allocation2 + $0x318] sm:$0xf0] }
  0xd4   : > { %1664 = vmatmul.bf16.vlgmr.msra.gmra.mxu1 %v6243_v8  ;;  %v5522_v8 = vld [vmem:[#allocation2 + $0x354] sm:$0xf]  ;;  %v4414_v52 = vor.u32 %v5514_v44, %v4411_v45  ;;  %v5552_v44 = vld [vmem:[%s6720_s4 + $0x40] sm:$0xff]  ;;  %v896_v45 = vperm.slane %v893_v63, 1 }
  0xd5   : > { %1676 = vmatpush.bf16.msra.mxu2 %v4150_v36  ;;  %v4446_v2 = vor.u32 %v5522_v8, %v4443_v57  ;;  %v4483_v36 = vld [vmem:[#allocation2 + $0x3a8] sm:$0xf0]  ;;  %v4406_v8 = vor.u32 %v5512_v54, %v4403_v26  ;;  %v1930_v63 = vld [vmem:[%s6721_s5 + $0x70] sm:$0xff] }
  0xd6   : > { %1696 = vmatpush.bf16.msrb.mxu0 %v4326_v30  ;;  %1689 = vmatpush.bf16.msra.mxu3 %v4214_v40  ;;  %v5516_v30 = vld [vmem:[#allocation2 + $0x324] sm:$0xf]  ;;  %v4339_v40 = vld [vmem:[#allocation2 + $0x288] sm:$0xf0] }
  0xd7   : > { %1709 = vmatpush.bf16.msrb.mxu1 %v4390_v31  ;;  %v4419_v31 = vld [vmem:[#allocation2 + $0x328] sm:$0xf0] }
  0xd8   : > { %1677 = vmatmul.bf16.vlgmr.msra.gmra.mxu2 %v6249_v34  ;;  %v5500_v34 = vld [vmem:[#allocation2 + $0x2a4] sm:$0xf] }
  0xd9   : > { %1721 = vmatpush.bf16.msrb.mxu2 %v4462_v42  ;;  %1690 = vmatmul.bf16.vlgmr.msra.gmra.mxu3 %v6251_v41  ;;  %v4438_v41 = vor.u32 %v5520_v5, %v4435_v6  ;;  %v4358_v21 = vor.u32 %v5500_v34, %v4355_v15  ;;  %v4422_v42 = vor.u32 %v5516_v30, %v4419_v31  ;;  %v5555_v31 = vld [vmem:[%s6720_s4 + $0x58] sm:$0xff] }
  0xda   : > { %1734 = vmatpush.bf16.msrb.mxu3 %v4526_v43  ;;  %1697 = vmatpush.bf16.msrb.mxu0 %v4318_v46  ;;  %v4486_v43 = vor.u32 %v5532_v35, %v4483_v36  ;;  %v4278_v46 = vor.u32 %v5480_v37, %v4275_v38  ;;  %v5554_v37 = vld [vmem:[%s6720_s4 + $0x50] sm:$0xff] }
  0xdb   : > { %1710 = vmatpush.bf16.msrb.mxu1 %v4382_v47  ;;  %v4342_v47 = vor.u32 %v5496_v39, %v4339_v40  ;;  %v5553_v40 = vld [vmem:[%s6720_s4 + $0x48] sm:$0xff] }
  0xdd   : > { %1722 = vmatpush.bf16.msrb.mxu2 %v4454_v3  ;;  %v5528_v3 = vld [vmem:[#allocation2 + $0x384] sm:$0xf] }
  0xde   : > { %1735 = vmatpush.bf16.msrb.mxu3 %v4518_v56  ;;  %1698 = vmatpush.bf16.msrb.mxu0 %v4310_v58  ;;  %v4467_v56 = vld [vmem:[#allocation2 + $0x388] sm:$0xf0]  ;;  %v5551_v58 = vld [vmem:[%s6720_s4 + $0x38] sm:$0xff] }
  0xdf   : > { %1711 = vmatpush.bf16.msrb.mxu1 %v4374_v59  ;;  %v4470_v57 = vor.u32 %v5528_v3, %v4467_v56  ;;  %v5550_v59 = vld [vmem:[%s6720_s4 + $0x30] sm:$0xff] }
  0xe1   : > { %1723 = vmatpush.bf16.msrb.mxu2 %v4446_v2 }
  0xe2   : > { %1736 = vmatpush.bf16.msrb.mxu3 %v4510_v4  ;;  %1699 = vmatpush.bf16.msrb.mxu0 %v4302_v7 }
  0xe3   : > { %1712 = vmatpush.bf16.msrb.mxu1 %v4366_v9 }
  0xe5   : > { %1724 = vmatpush.bf16.msrb.mxu2 %v4438_v41 }
  0xe6   : > { %1737 = vmatpush.bf16.msrb.mxu3 %v4502_v16  ;;  %1700 = vmatpush.bf16.msrb.mxu0 %v4294_v19  ;;  %v5558_v16 = vld [vmem:[%s6720_s4 + $0x70] sm:$0xff]  ;;  %v5557_v19 = vld [vmem:[%s6720_s4 + $0x68] sm:$0xff] }
  0xe7   : > { %1713 = vmatpush.bf16.msrb.mxu1 %v4358_v21 }
  0xe9   : > { %1725 = vmatpush.bf16.msrb.mxu2 %v4430_v28 }
  0xea   : > { %1738 = vmatpush.bf16.msrb.mxu3 %v4494_v29  ;;  %1701 = vmatpush.bf16.msrb.mxu0 %v4286_v32 }
  0xeb   : > { %1714 = vmatpush.bf16.msrb.mxu1 %v4350_v33 }
  0xed   : > { %1726 = vmatpush.bf16.msrb.mxu2 %v4422_v42 }
  0xee   : > { %1739 = vmatpush.bf16.msrb.mxu3 %v4486_v43  ;;  %1702 = vmatpush.bf16.msrb.mxu0 %v4278_v46 }
  0xef   : > { %1715 = vmatpush.bf16.msrb.mxu1 %v4342_v47 }
  0xf1   : > { %1727 = vmatpush.bf16.msrb.mxu2 %v4414_v52  ;;  %1703 = vmatmul.bf16.vlgmr.msrb.gmra.mxu0 %v6257_v13  ;;  %v5549_v13 = vld [vmem:[%s6720_s4 + $0x28] sm:$0xff] }
  0xf2   : > { %1740 = vmatpush.bf16.msrb.mxu3 %v4478_v53  ;;  %1716 = vmatmul.bf16.vlgmr.msrb.gmra.mxu1 %v6259_v20  ;;  %v5548_v20 = vld [vmem:[%s6720_s4 + $0x20] sm:$0xff] }
  0xf3   : > { %1887 = vmatpush.bf16.msra.mxu0 %v5551_v58  ;;  %1900 = vmatpush.bf16.msra.mxu1 %v5559_v14  ;;  %v1920_v14 = vld [vmem:[%s6721_s5 + $0x20] sm:$0xff] }
  0xf5   : > { %1728 = vmatpush.bf16.msrb.mxu2 %v4406_v8 }
  0xf6   : > { %1741 = vmatpush.bf16.msrb.mxu3 %v4470_v57 }
  0xf7   : > { %1888 = vmatpush.bf16.msra.mxu0 %v5550_v59  ;;  %1901 = vmatpush.bf16.msra.mxu1 %v5558_v16  ;;  %v1916_v16 = vld [vmem:[%s6721_s5] sm:$0xff] }
  0xf8   : > { %1729 = vmatmul.bf16.vlgmr.msrb.gmra.mxu2 %v6263_v48  ;;  %v5547_v48 = vld [vmem:[%s6720_s4 + $0x18] sm:$0xff] }
  0xf9   : > { %1742 = vmatmul.bf16.vlgmr.msrb.gmra.mxu3 %v6265_v55  ;;  %v5546_v55 = vld [vmem:[%s6720_s4 + $0x10] sm:$0xff]  ;;  %1950 = vmatpush.msra.mxu2 %v1930_v63 }
  0xfb   : > { %1889 = vmatpush.bf16.msra.mxu0 %v5549_v13  ;;  %1902 = vmatpush.bf16.msra.mxu1 %v5557_v19 }
  0xff   : > { %1890 = vmatpush.bf16.msra.mxu0 %v5548_v20  ;;  %1903 = vmatpush.bf16.msra.mxu1 %v5556_v27 }
 0x103   : > { %1891 = vmatpush.bf16.msra.mxu0 %v5547_v48  ;;  %1904 = vmatpush.bf16.msra.mxu1 %v5555_v31 }
 0x107   : > { %1892 = vmatpush.bf16.msra.mxu0 %v5546_v55  ;;  %1905 = vmatpush.bf16.msra.mxu1 %v5554_v37  ;;  %v5564_v37 = vld [vmem:[%s6723_s7 + $0x24] sm:$0xf] }
 0x10b   : > { %1893 = vmatpush.bf16.msra.mxu0 %v5545_v61  ;;  %1906 = vmatpush.bf16.msra.mxu1 %v5553_v40 }
 0x10f   : > { %1894 = vmatpush.bf16.msra.mxu0 %v5544_v0  ;;  %1907 = vmatpush.bf16.msra.mxu1 %v5552_v44  ;;  %v1931_v0 = vld [vmem:[%s6721_s5 + $0x78] sm:$0xff] }
 0x110   : > { %1970 = vmatpush.msra.mxu3 %v1931_v0  ;;  %v4854_v0 = vld [vmem:[#allocation5 + $0x1c0] sm:$0xf] }
 0x12d   : > { %v1548_v60 = vpop.f32.mrf.mxu0 }
 0x12e   : > { %v1561_v62 = vpop.f32.mrf.mxu1  ;;  %v1549_v5 = vadd.f32 %v1548_v60, %v895_v1  ;;  %v1928_v1 = vld [vmem:[%s6721_s5 + $0x60] sm:$0xff] }
 0x12f   : > { %1951 = vmatpush.msra.mxu2 %v1928_v1  ;;  %v5628_v1 = vld [vmem:[#allocation5 + $0x1dc] sm:$0xf0] }
 0x130   : > { %v1562_v7 = vadd.f32 %v1561_v62, %v1549_v5  ;;  %v1927_v5 = vld [vmem:[%s6721_s5 + $0x58] sm:$0xff] }
 0x135   : > { %v1550_v2 = vpop.f32.mrf.mxu0 }
 0x136   : > { %v1563_v4 = vpop.f32.mrf.mxu1  ;;  %v1929_v2 = vld [vmem:[%s6721_s5 + $0x68] sm:$0xff] }
 0x137   : > { %v1926_v4 = vld [vmem:[%s6721_s5 + $0x50] sm:$0xff]  ;;  %1971 = vmatpush.msra.mxu3 %v1929_v2  ;;  %v5110_v2 = vld [vmem:[#allocation5 + $0x3c0] sm:$0xf] }
 0x138   : > { %1952 = vmatpush.msra.mxu2 %v1926_v4  ;;  %v4855_v4 = vor.u32 %v5628_v1, %v4854_v0  ;;  %v5584_v0 = vld [vmem:[#allocation5 + $0x84] sm:$0xf] }
 0x139   : > { %1972 = vmatpush.msra.mxu3 %v1927_v5  ;;  %v5692_v5 = vld [vmem:[#allocation5 + $0x3dc] sm:$0xf0]  ;;  %v4696_v1 = vld [vmem:[#allocation5 + $0xa0] sm:$0xf0] }
 0x13a   : > { %2896 = vmatpush.bf16.msrb.mxu0 %v4855_v4  ;;  %v4952_v4 = vld [vmem:[#allocation5 + $0x2a0] sm:$0xf0] }
 0x13b   : > { %v1574_v6 = vpop.f32.mrf.mxu2 }
 0x13c   : > { %v1587_v9 = vpop.f32.mrf.mxu3  ;;  %v1575_v10 = vadd.f32 %v1574_v6, %v1562_v7  ;;  %v1924_v6 = vld [vmem:[%s6721_s5 + $0x40] sm:$0xff]  ;;  %v1925_v7 = vld [vmem:[%s6721_s5 + $0x48] sm:$0xff] }
 0x13d   : > { %v1600_v11 = vpop.f32.mrf.mxu0  ;;  %1953 = vmatpush.msra.mxu2 %v1924_v6  ;;  %1973 = vmatpush.msra.mxu3 %v1925_v7  ;;  %v5624_v6 = vld [vmem:[#allocation5 + $0x1c4] sm:$0xf] }
 0x13e   : > { %v1613_v12 = vpop.f32.mrf.mxu1  ;;  %v1588_v34 = vadd.f32 %v1587_v9, %v1575_v10  ;;  %v1922_v9 = vld [vmem:[%s6721_s5 + $0x30] sm:$0xff]  ;;  %v1923_v10 = vld [vmem:[%s6721_s5 + $0x38] sm:$0xff]  ;;  %v4856_v7 = vld [vmem:[#allocation5 + $0x1e0] sm:$0xf0] }
 0x13f   : > { %1954 = vmatpush.msra.mxu2 %v1922_v9  ;;  %1974 = vmatpush.msra.mxu3 %v1923_v10  ;;  %v5111_v9 = vor.u32 %v5692_v5, %v5110_v2  ;;  %v4859_v10 = vor.u32 %v5624_v6, %v4856_v7  ;;  %v5648_v2 = vld [vmem:[#allocation5 + $0x284] sm:$0xf]  ;;  %v5825_v5 = vld [vmem:[%s6726_s10 + $0xd] ss:$0 sm:$0xff] }
 0x140   : > { %v1601_v17 = vadd.f32 %v1600_v11, %v1588_v34  ;;  %v1921_v34 = vld [vmem:[%s6721_s5 + $0x28] sm:$0xff] }
 0x141   : > { %1955 = vmatpush.msra.mxu2 %v1920_v14  ;;  %1975 = vmatpush.msra.mxu3 %v1921_v34  ;;  %v4822_v14 = vld [vmem:[#allocation5 + $0x180] sm:$0xf] }
 0x142   : > { %v1614_v22 = vadd.f32 %v1613_v12, %v1601_v17  ;;  %v1917_v17 = vld [vmem:[%s6721_s5 + $0x8] sm:$0xff]  ;;  %2909 = vmatpush.bf16.msrb.mxu1 %v5111_v9  ;;  %v4699_v9 = vor.u32 %v5584_v0, %v4696_v1 }
 0x143   : > { %v1576_v15 = vpop.f32.mrf.mxu2  ;;  %v5054_v0 = vld [vmem:[#allocation5 + $0x348] sm:$0xf] }
 0x144   : > { %v1589_v41 = vpop.f32.mrf.mxu3  ;;  %v1918_v15 = vld [vmem:[%s6721_s5 + $0x10] sm:$0xff] }
 0x145   : > { %v1602_v18 = vpop.f32.mrf.mxu0  ;;  %v1919_v41 = vld [vmem:[%s6721_s5 + $0x18] sm:$0xff]  ;;  %1956 = vmatpush.msra.mxu2 %v1918_v15  ;;  %v5620_v15 = vld [vmem:[#allocation5 + $0x19c] sm:$0xf0] }
 0x146   : > { %v1615_v21 = vpop.f32.mrf.mxu1  ;;  %1976 = vmatpush.msra.mxu3 %v1919_v41  ;;  %v5824_v18 = vld [vmem:[%s6726_s10 + $0xa] ss:$0 sm:$0xff]  ;;  %v5078_v41 = vld [vmem:[#allocation5 + $0x380] sm:$0xf] }
 0x147   : > { %1957 = vmatpush.msra.mxu2 %v1916_v16  ;;  %v5684_v16 = vld [vmem:[#allocation5 + $0x39c] sm:$0xf0] }
 0x148   : > { %1977 = vmatpush.msra.mxu3 %v1917_v17  ;;  %v4823_v17 = vor.u32 %v5620_v15, %v4822_v14  ;;  %v4955_v14 = vor.u32 %v5648_v2, %v4952_v4  ;;  %v5576_v15 = vld [vmem:[#allocation5 + $0x44] sm:$0xf]  ;;  %v5677_v2 = vld [vmem:[#allocation5 + $0x364] sm:$0xf0]  ;;  %v5609_v4 = vld [vmem:[#allocation5 + $0x14c] sm:$0xf] }
 0x14a   : > { %2897 = vmatpush.bf16.msrb.mxu0 %v4823_v17  ;;  %v4920_v17 = vld [vmem:[#allocation5 + $0x260] sm:$0xf0] }
 0x14b   : > { %v1626_v23 = vpop.f32.mrf.mxu2 }
 0x14c   : > { %v1627_v24 = vadd.f32 %v1626_v23, %v1614_v22  ;;  %v1639_v25 = vpop.f32.mrf.mxu3 }
 0x14e   : > { %v1640_v51 = vadd.f32 %v1639_v25, %v1627_v24  ;;  %v1652_v28 = vpop.f32.mrf.mxu0 }
 0x14f   : > { %v1653_v49 = vadd.f32 %v1652_v28, %v896_v45  ;;  %v4620_v28 = vld [vmem:[%s6723_s7 + $0x30] sm:$0xf] }
 0x150   : > { %vm1747_vm9 = vcmp.gt.f32.partialorder %v1640_v51, 0.0  ;;  %v1749_v29 = vmul.f32 0.01, %v1640_v51 }
 0x151   : > { %v1665_v30 = vpop.f32.mrf.mxu1 }
 0x152   : > { %v1751_v32 = vsel %vm1747_vm9, %v1640_v51, %v1749_v29  ;;  %v1666_v50 = vadd.f32 %v1665_v30, %v1653_v49  ;;  %v1989_v51 = vld [vmem:[%s6722_s6] sm:$0xf]  ;;  %v5567_v29 = vld [vmem:[%s6723_s7 + $0x34] sm:$0xf0]  ;;  %v5566_v30 = vld [vmem:[%s6723_s7 + $0x34] sm:$0xf] }
 0x153   : > { %v1753_v33 = vpack.c.bf16 %v1751_v32, %v1751_v32  ;;  %v1628_v35 = vpop.f32.mrf.mxu2  ;;  %v2000_v27 = vsel %vm1998_vm13, %v1989_v51, 0  ;;  %v4621_v31 = vor.u32 %v5567_v29, %v4620_v28  ;;  %v4622_v32 = vld [vmem:[%s6723_s7 + $0x38] sm:$0xf0]  ;;  %v5612_v51 = vld [vmem:[#allocation5 + $0x15c] sm:$0xf0] }
 0x154   : > { %v1641_v36 = vpop.f32.mrf.mxu3  ;;  %2009 = vmatpush.bf16.msrb.mxu2 %v2000_v27  ;;  %v5565_v35 = vld [vmem:[%s6723_s7 + $0x24] sm:$0xf0]  ;;  %v5046_v28 = vld [vmem:[#allocation5 + $0x340] sm:$0xf] }
 0x155   : > { %1895 = vmatmul.bf16.vlgmr.msra.gmra.mxu0 %v1753_v33  ;;  %v4612_v33 = vld [vmem:[%s6723_s7 + $0x20] sm:$0xf]  ;;  %v4625_v36 = vor.u32 %v5566_v30, %v4622_v32  ;;  %2080 = vmatpush.bf16.msrb.mxu3 %v4621_v31  ;;  %v5608_v30 = vld [vmem:[#allocation5 + $0x144] sm:$0xf] }
 0x156   : > { %v1654_v38 = vpop.f32.mrf.mxu0  ;;  %v5676_v29 = vld [vmem:[#allocation5 + $0x35c] sm:$0xf0]  ;;  %v4792_v32 = vld [vmem:[#allocation5 + $0x160] sm:$0xf0] }
 0x157   : > { %v4614_v38 = vld [vmem:[%s6723_s7 + $0x28] sm:$0xf0] }
 0x158   : > { %v4617_v40 = vor.u32 %v5564_v37, %v4614_v38  ;;  %v4795_v37 = vor.u32 %v5608_v30, %v4792_v32  ;;  %v4758_v38 = vld [vmem:[#allocation5 + $0x100] sm:$0xf]  ;;  %v4632_v30 = vld [vmem:[#allocation5 + $0x20] sm:$0xf0] }
 0x159   : > { %v1667_v39 = vpop.f32.mrf.mxu1  ;;  %v4888_v32 = vld [vmem:[#allocation5 + $0x220] sm:$0xf0] }
 0x15a   : > { %v4613_v39 = vor.u32 %v5565_v35, %v4612_v33  ;;  %v5672_v33 = vld [vmem:[#allocation5 + $0x344] sm:$0xf] }
 0x15b   : > { %v1678_v42 = vpop.f32.mrf.mxu2  ;;  %v5048_v35 = vld [vmem:[#allocation5 + $0x360] sm:$0xf0] }
 0x15c   : > { %v1691_v43 = vpop.f32.mrf.mxu3  ;;  %v1679_v53 = vadd.f32 %v1678_v42, %v1666_v50  ;;  %v1932_v42 = vld [vmem:[%s6726_s10 + $0xb] sm:$0x3]  ;;  %2081 = vmatpush.bf16.msrb.mxu3 %v4613_v39  ;;  %v5604_v39 = vld [vmem:[#allocation5 + $0x11c] sm:$0xf0] }
 0x15d   : > { %v1935_v44 = vperm.slane %v1932_v42, 1 }
 0x15e   : > { %v1692_v26 = vadd.f32 %v1691_v43, %v1679_v53  ;;  %v1934_v43 = vperm.slane %v1932_v42, 0  ;;  %v1982_v53 = vld [vmem:[%s499_s22] sm:$0xff]  ;;  %v5051_v42 = vor.u32 %v5672_v33, %v5048_v35  ;;  %v4862_v33 = vld [vmem:[#allocation5 + $0x1c8] sm:$0xf] }
 0x15f   : > { %v5629_v35 = vld [vmem:[#allocation5 + $0x1e4] sm:$0xf0] }
 0x163   : > { %v1680_v46 = vpop.f32.mrf.mxu2 }
 0x164   : > { %v1693_v47 = vpop.f32.mrf.mxu3 }
 0x16e   : > { %v1704_v52 = vpop.f32.mrf.mxu0 }
 0x16f   : > { %v1717_v54 = vpop.f32.mrf.mxu1  ;;  %v1705_v3 = vadd.f32 %v1704_v52, %v1692_v26 }
 0x171   : > { %v1718_v57 = vadd.f32 %v1717_v54, %v1705_v3 }
 0x176   : > { %v1706_v56 = vpop.f32.mrf.mxu0 }
 0x177   : > { %v1719_v8 = vpop.f32.mrf.mxu1 }
 0x178   : > { %v4604_v8 = vld [vmem:[%s6723_s7 + $0x10] sm:$0xf] }
 0x17b   : > { %v1730_v58 = vpop.f32.mrf.mxu2 }
 0x17c   : > { %v1731_v59 = vadd.f32 %v1730_v58, %v1718_v57  ;;  %v1743_v13 = vpop.f32.mrf.mxu3  ;;  %v5563_v57 = vld [vmem:[%s6723_s7 + $0x14] sm:$0xf0]  ;;  %v5562_v58 = vld [vmem:[%s6723_s7 + $0x14] sm:$0xf] }
 0x17e   : > { %v1744_v20 = vadd.f32 %v1743_v13, %v1731_v59  ;;  %v4605_v59 = vor.u32 %v5563_v57, %v4604_v8  ;;  %v4606_v13 = vld [vmem:[%s6723_s7 + $0x18] sm:$0xf0]  ;;  %v5592_v8 = vld [vmem:[#allocation5 + $0xc4] sm:$0xf] }
 0x17f   : > { %v4728_v57 = vld [vmem:[#allocation5 + $0xe0] sm:$0xf0] }
 0x180   : > { %vm1748_vm10 = vcmp.gt.f32.partialorder %v1744_v20, 0.0  ;;  %v1750_v48 = vmul.f32 0.01, %v1744_v20  ;;  %2082 = vmatpush.bf16.msrb.mxu3 %v4605_v59  ;;  %v4984_v59 = vld [vmem:[#allocation5 + $0x2e0] sm:$0xf0] }
 0x182   : > { %v1752_v55 = vsel %vm1748_vm10, %v1744_v20, %v1750_v48  ;;  %v4609_v20 = vor.u32 %v5562_v58, %v4606_v13  ;;  %v4596_v48 = vld [vmem:[%s6723_s7] sm:$0xf]  ;;  %v5656_v58 = vld [vmem:[#allocation5 + $0x2c4] sm:$0xf] }
 0x183   : > { %v1754_v60 = vpack.c.bf16 %v1752_v55, %v1752_v55  ;;  %v1732_v61 = vpop.f32.mrf.mxu2  ;;  %v5561_v55 = vld [vmem:[%s6723_s7 + $0x4] sm:$0xf0] }
 0x184   : > { %v1745_v62 = vpop.f32.mrf.mxu3  ;;  %v4597_v61 = vor.u32 %v5561_v55, %v4596_v48  ;;  %v4731_v48 = vor.u32 %v5592_v8, %v4728_v57  ;;  %v4694_v55 = vld [vmem:[#allocation5 + $0x80] sm:$0xf] }
 0x185   : > { %1908 = vmatmul.bf16.vlgmr.msra.gmra.mxu1 %v1754_v60  ;;  %v5560_v60 = vld [vmem:[%s6723_s7 + $0x4] sm:$0xf]  ;;  %v4598_v62 = vld [vmem:[%s6723_s7 + $0x8] sm:$0xf0] }
 0x186   : > { %v4601_v63 = vor.u32 %v5560_v60, %v4598_v62  ;;  %2083 = vmatpush.bf16.msrb.mxu3 %v4597_v61  ;;  %v5588_v60 = vld [vmem:[#allocation5 + $0x9c] sm:$0xf0]  ;;  %v4987_v62 = vor.u32 %v5656_v58, %v4984_v59  ;;  %v5685_v58 = vld [vmem:[#allocation5 + $0x3a4] sm:$0xf0]  ;;  %v5617_v59 = vld [vmem:[#allocation5 + $0x18c] sm:$0xf] }
 0x187   : > { %v4950_v61 = vld [vmem:[#allocation5 + $0x280] sm:$0xf]  ;;  %v4695_v6 = vor.u32 %v5588_v60, %v4694_v55 }
 0x1d2   : > { %v1896_v11 = vpop.f32.mrf.mxu0 }
 0x1d3   : > { %v1897_v19 = vadd.f32 %v5824_v18, %v1896_v11  ;;  %v5688_v11 = vld [vmem:[#allocation5 + $0x3c4] sm:$0xf]  ;;  %v5079_v18 = vor.u32 %v5684_v16, %v5078_v41 }
 0x1d4   : > { %v4664_v41 = vld [vmem:[#allocation5 + $0x60] sm:$0xf0] }
 0x1d5   : > { %2910 = vmatpush.bf16.msrb.mxu1 %v5079_v18  ;;  %v5640_v16 = vld [vmem:[#allocation5 + $0x244] sm:$0xf] }
 0x1da   : > { %v1898_v12 = vpop.f32.mrf.mxu0 }
 0x1db   : > { %v5112_v12 = vld [vmem:[#allocation5 + $0x3e0] sm:$0xf0] }
 0x1dc   : > { %v5115_v34 = vor.u32 %v5688_v11, %v5112_v12  ;;  %v5580_v11 = vld [vmem:[#allocation5 + $0x5c] sm:$0xf0] }
 0x1dd   : > { %v4918_v12 = vld [vmem:[#allocation5 + $0x240] sm:$0xf] }
 0x202   : > { %v1909_v21 = vpop.f32.mrf.mxu1 }
 0x203   : > { %v1910_v22 = vadd.f32 %v1909_v21, %v1897_v19  ;;  %v5616_v19 = vld [vmem:[#allocation5 + $0x184] sm:$0xf] }
 0x204   : > { %v4824_v21 = vld [vmem:[#allocation5 + $0x1a0] sm:$0xf0] }
 0x205   : > { %vm1913_vm11 = vcmp.gt.f32.partialorder %v1910_v22, 0.0  ;;  %v1914_v23 = vmul.f32 0.01, %v1910_v22 }
 0x207   : > { %v1915_v24 = vsel %vm1913_vm11, %v1910_v22, %v1914_v23  ;;  %v5680_v22 = vld [vmem:[#allocation5 + $0x384] sm:$0xf]  ;;  %v4827_v23 = vor.u32 %v5616_v19, %v4824_v21  ;;  %v4630_v19 = vld [vmem:[#allocation5] sm:$0xf] }
 0x208   : > { %4591 = vmatmul.msk.f32.vlgmr.msra.gmra.mxu2 %vm1938_vm12, %v1915_v24  ;;  %4592 = vmatmul.msk.f32.vlgmr.msra.gmra.mxu3 %vm1938_vm12, %v1915_v24  ;;  %v5080_v24 = vld [vmem:[#allocation5 + $0x3a0] sm:$0xf0] }
 0x209   : > { %2093 = vmatpush.bf16.msra.mxu2 %v4625_v36  ;;  %2922 = vmatpush.bf16.msra.mxu3 %v4859_v10  ;;  %v5083_v27 = vor.u32 %v5680_v22, %v5080_v24  ;;  %v5047_v36 = vor.u32 %v5676_v29, %v5046_v28  ;;  %v4662_v10 = vld [vmem:[#allocation5 + $0x40] sm:$0xf]  ;;  %v4923_v28 = vor.u32 %v5640_v16, %v4920_v17  ;;  %v5568_v29 = vld [vmem:[#allocation5 + $0x4] sm:$0xf]  ;;  %v5601_v16 = vld [vmem:[#allocation5 + $0x10c] sm:$0xf] }
 0x20a   : > { %v1911_v25 = vpop.f32.mrf.mxu1  ;;  %v4663_v18 = vor.u32 %v5580_v11, %v4662_v10  ;;  %v5572_v24 = vld [vmem:[#allocation5 + $0x1c] sm:$0xf0]  ;;  %v5055_v10 = vor.u32 %v5677_v2, %v5054_v0  ;;  %v4768_v17 = vld [vmem:[#allocation5 + $0x128] sm:$0xf0] }
 0x20b   : > { %v4790_v25 = vld [vmem:[#allocation5 + $0x140] sm:$0xf]  ;;  %2911 = vmatpush.bf16.msrb.mxu1 %v5047_v36  ;;  %v5569_v0 = vld [vmem:[#allocation5 + $0xc] sm:$0xf] }
 0x20c   : > { %v4791_v31 = vor.u32 %v5612_v51, %v4790_v25  ;;  %v4886_v25 = vld [vmem:[#allocation5 + $0x200] sm:$0xf] }
 0x20d   : > { %2094 = vmatpush.bf16.msra.mxu2 %v4617_v40  ;;  %2923 = vmatpush.bf16.msra.mxu3 %v4827_v23  ;;  %v5014_v40 = vld [vmem:[#allocation5 + $0x300] sm:$0xf]  ;;  %v4667_v23 = vor.u32 %v5576_v15, %v4664_v41  ;;  %v5669_v41 = vld [vmem:[#allocation5 + $0x324] sm:$0xf0] }
 0x20e   : > { %2898 = vmatpush.bf16.msrb.mxu0 %v4791_v31  ;;  %v5636_v51 = vld [vmem:[#allocation5 + $0x21c] sm:$0xf0]  ;;  %v5632_v31 = vld [vmem:[#allocation5 + $0x204] sm:$0xf] }
 0x211   : > { %2095 = vmatpush.bf16.msra.mxu2 %v4609_v20  ;;  %2924 = vmatpush.bf16.msra.mxu3 %v4795_v37  ;;  %v4631_v37 = vor.u32 %v5572_v24, %v4630_v19  ;;  %v5024_v19 = vld [vmem:[#allocation5 + $0x328] sm:$0xf0]  ;;  %v4734_v24 = vld [vmem:[#allocation5 + $0xc8] sm:$0xf] }
 0x215   : > { %2096 = vmatpush.bf16.msra.mxu2 %v4601_v63  ;;  %v5652_v63 = vld [vmem:[#allocation5 + $0x29c] sm:$0xf0] }
 0x216   : > { %v4951_v7 = vor.u32 %v5652_v63, %v4950_v61  ;;  %v5613_v63 = vld [vmem:[#allocation5 + $0x164] sm:$0xf0] }
 0x28b   : > { %v1959_v45 = vpop.f32.mrf.mxu2  ;;  %v1979_v46 = vpop.f32.mrf.mxu3 }
 0x28c   : > { %v1960_v47 = vadd.f32 %v1959_v45, %v1934_v43  ;;  %v1980_v49 = vadd.f32 %v1979_v46, %v1935_v44  ;;  %v5668_v43 = vld [vmem:[#allocation5 + $0x31c] sm:$0xf0]  ;;  %v5600_v44 = vld [vmem:[#allocation5 + $0x104] sm:$0xf] }
 0x28d   : > { %v4760_v45 = vld [vmem:[#allocation5 + $0x120] sm:$0xf0] }
 0x28e   : > { %v1983_v50 = vmul.f32 0.5, %v1980_v49  ;;  %3757 = vst.msk [vmem:[%s503_s23] sm:$0xff] %vm1994_vm14, %v1960_v47  ;;  %v5664_v46 = vld [vmem:[#allocation5 + $0x304] sm:$0xf]  ;;  %s5903_s23 = sshra.s32 %s3783_s20, 4  ;;  %s5904_s23 = int_to_ptr.hbm [resolvable:$true] %s5903_s23 }
 0x28f   : > { %3758 = vst.msk [vmem:[%s507_s15] sm:$0xff] %vm1994_vm14, %v1980_v49  ;;  %v4759_v49 = vor.u32 %v5604_v39, %v4758_v38  ;;  %v5118_v38 = vld [vmem:[#allocation5 + $0x3c8] sm:$0xf]  ;;  %s477_s15 = sand.u32 1, %s5951_s26   ;;  %s5905_s3 = scalar_lea.hbm %s5904_s23, 8 }
 0x290   : > { %v1984_v52 = vmul.f32 1.442695, %v1983_v50  ;;  %v5015_v50 = vor.u32 %v5668_v43, %v5014_v40  ;;  %v5693_v39 = vld [vmem:[#allocation5 + $0x3e4] sm:$0xf0]  ;;  %v5625_v40 = vld [vmem:[#allocation5 + $0x1cc] sm:$0xf]  ;;  %p5906_p0 = scmp.ne.s32.totalorder %s5904_s23, %s5905_s3  ;;  %p5910_p3 = scmp.lt.s32.totalorder %s5904_s23, %s6727_s11 }
 0x291   : > { %2899 = vmatpush.bf16.msrb.mxu0 %v4759_v49  ;;  %s3938_s21 = sshll.u32 %s477_s15, 3  ;;  %s3760_s29 = scalar_lea.sflag [#allocation4], %s477_s15 }
 0x292   : > { %5827 = vpow2.f32 %v1984_v52  ;;  %v4763_v52 = vor.u32 %v5600_v44, %v4760_v45  ;;  %2912 = vmatpush.bf16.msrb.mxu1 %v5015_v50  ;;  %v4887_v44 = vor.u32 %v5636_v51, %v4886_v25  ;;  %v4635_v45 = vor.u32 %v5568_v29, %v4632_v30  ;;  %v5597_v25 = vld [vmem:[#allocation5 + $0xe4] sm:$0xf0]  ;;  %v5593_v29 = vld [vmem:[#allocation5 + $0xcc] sm:$0xf]  ;;  %s479_s17 = scalar_lea.vmem [#allocation7], %s3938_s21  ;;  %p5907_p1 = pnand %p5906_p0, %p6075_p5 }
 0x293   : > { %v4891_v50 = vor.u32 %v5632_v31, %v4888_v32  ;;  %v4990_v51 = vld [vmem:[#allocation5 + $0x2c8] sm:$0xf]  ;;  %v4736_v30 = vld [vmem:[#allocation5 + $0xe8] sm:$0xf0]  ;;  %s3780_s19 = sshll.u32 %s479_s17, 4  ;;  %p5911_p4 = scmp.lt.s32.totalorder %s5909_s16, %s5905_s3  ;;  %s3781_s19 = int_to_ptr.vmem [resolvable:$true] %s3780_s19 }
 0x294   : > { %2925 = vmatpush.bf16.msra.mxu3 %v4763_v52  ;;  %v4863_v52 = vor.u32 %v5629_v35, %v4862_v33  ;;  %v5657_v31 = vld [vmem:[#allocation5 + $0x2cc] sm:$0xf]  ;;  %v4735_v33 = vor.u32 %v5597_v25, %v4734_v24  ;;  %v5690_v24 = vld [vmem:[#allocation5 + $0x3d4] sm:$0xf]  ;;  %p5908_p2 = pneg %p5907_p1 }
 0x295   : > { %v4992_v32 = vld [vmem:[#allocation5 + $0x2e8] sm:$0xf0]  ;;  %v5128_v25 = vld [vmem:[#allocation5 + $0x3f0] sm:$0xf0]  ;;  %p5912_p7 = por %p5911_p4, %p5910_p3 }
 0x297   : > { %p5913_p8 = pnand %p5912_p7, %p5908_p2 }
 0x298   : > { %v5828_v54 = vpop.eup %5827  ;;  %2926 = vmatpush.bf16.msra.mxu3 %v4731_v48  ;;  %v5088_v48 = vld [vmem:[#allocation5 + $0x3a8] sm:$0xf0] }
 0x299   : > { %v1986_v26 = vmul.f32 %v5828_v54, %v1982_v53  ;;  %v4726_v53 = vld [vmem:[#allocation5 + $0xc0] sm:$0xf] }
 0x29a   : > { %v5596_v54 = vld [vmem:[#allocation5 + $0xdc] sm:$0xf0] }
 0x29b   : > { %v1987_v3 = vadd.f32 %v1986_v26, %v1960_v47  ;;  %v5016_v47 = vld [vmem:[#allocation5 + $0x320] sm:$0xf0]  ;;  %v4982_v26 = vld [vmem:[#allocation5 + $0x2c0] sm:$0xf]  ;;  %v4727_v13 = vor.u32 %v5596_v54, %v4726_v53  ;;  %v5119_v53 = vor.u32 %v5693_v39, %v5118_v38  ;;  %v5589_v38 = vld [vmem:[#allocation5 + $0xa4] sm:$0xf0] }
 0x29c   : > { %2927 = vmatpush.bf16.msra.mxu3 %v4699_v9  ;;  %v4958_v39 = vld [vmem:[#allocation5 + $0x288] sm:$0xf] }
 0x29d   : > { %v1988_v56 = vpack.c.bf16 %v1987_v3, %v1987_v3  ;;  %v5019_v3 = vor.u32 %v5664_v46, %v5016_v47  ;;  %2900 = vmatpush.bf16.msrb.mxu0 %v4727_v13  ;;  %v5689_v46 = vld [vmem:[#allocation5 + $0x3cc] sm:$0xf] }
 0x29e   : > { %v5120_v47 = vld [vmem:[#allocation5 + $0x3e8] sm:$0xf0] }
 0x29f   : > { %4593 = vmatmul.msk.bf16.vlgmr.msrb.gmra.mxu2 %vm1994_vm14, %v1988_v56  ;;  %v5660_v56 = vld [vmem:[#allocation5 + $0x2dc] sm:$0xf0]  ;;  %v5123_v57 = vor.u32 %v5689_v46, %v5120_v47  ;;  %v4832_v13 = vld [vmem:[#allocation5 + $0x1a8] sm:$0xf0] }
 0x2a0   : > { %2935 = vmatpush.bf16.msrb.mxu2 %v5115_v34  ;;  %v4983_v20 = vor.u32 %v5660_v56, %v4982_v26  ;;  %v5644_v34 = vld [vmem:[#allocation5 + $0x25c] sm:$0xf0]  ;;  %2928 = vmatpush.bf16.msra.mxu3 %v4667_v23  ;;  %v4830_v26 = vld [vmem:[#allocation5 + $0x188] sm:$0xf]  ;;  %v4835_v61 = vor.u32 %v5617_v59, %v4832_v13  ;;  %v4771_v23 = vor.u32 %v5601_v16, %v4768_v17  ;;  %v4960_v46 = vld [vmem:[#allocation5 + $0x2a8] sm:$0xf0] }
 0x2a1   : > { %2901 = vmatpush.bf16.msrb.mxu0 %v4695_v6  ;;  %v4919_v22 = vor.u32 %v5644_v34, %v4918_v12  ;;  %v5086_v56 = vld [vmem:[#allocation5 + $0x388] sm:$0xf]  ;;  %v5673_v6 = vld [vmem:[#allocation5 + $0x34c] sm:$0xf]  ;;  %v5630_v16 = vld [vmem:[#allocation5 + $0x1ec] sm:$0xf0] }
 0x2a2   : > { %2913 = vmatpush.bf16.msrb.mxu1 %v4983_v20  ;;  %v5681_v20 = vld [vmem:[#allocation5 + $0x38c] sm:$0xf]  ;;  %v5087_v60 = vor.u32 %v5685_v58, %v5086_v56  ;;  %v4766_v12 = vld [vmem:[#allocation5 + $0x108] sm:$0xf]  ;;  %v5126_v17 = vld [vmem:[#allocation5 + $0x3d0] sm:$0xf] }
 0x2a3   : > { %v5091_v1 = vor.u32 %v5681_v20, %v5088_v48  ;;  %v5022_v34 = vld [vmem:[#allocation5 + $0x308] sm:$0xf]  ;;  %v5641_v13 = vld [vmem:[#allocation5 + $0x24c] sm:$0xf] }
 0x2a4   : > { %2936 = vmatpush.bf16.msrb.mxu2 %v5083_v27  ;;  %2929 = vmatpush.bf16.msra.mxu3 %v4635_v45  ;;  %v5649_v45 = vld [vmem:[#allocation5 + $0x28c] sm:$0xf]  ;;  %v5645_v56 = vld [vmem:[#allocation5 + $0x264] sm:$0xf0] }
 0x2a5   : > { %2902 = vmatpush.bf16.msrb.mxu0 %v4663_v18  ;;  %v5665_v18 = vld [vmem:[#allocation5 + $0x30c] sm:$0xf] }
 0x2a6   : > { %2914 = vmatpush.bf16.msrb.mxu1 %v4951_v7  ;;  %v5056_v7 = vld [vmem:[#allocation5 + $0x368] sm:$0xf0] }
 0x2a7   : > { %v5059_v15 = vor.u32 %v5673_v6, %v5056_v7  ;;  %v4928_v20 = vld [vmem:[#allocation5 + $0x268] sm:$0xf0] }
 0x2a8   : > { %2937 = vmatpush.bf16.msrb.mxu2 %v5051_v42  ;;  %v4864_v42 = vld [vmem:[#allocation5 + $0x1e8] sm:$0xf0]  ;;  %v4931_v48 = vor.u32 %v5641_v13, %v4928_v20  ;;  %v4774_v13 = vld [vmem:[#allocation5 + $0x110] sm:$0xf] }
 0x2a9   : > { %2903 = vmatpush.bf16.msrb.mxu0 %v4631_v37  ;;  %v4867_v54 = vor.u32 %v5625_v40, %v4864_v42  ;;  %v4702_v37 = vld [vmem:[#allocation5 + $0x88] sm:$0xf]  ;;  %v4995_v40 = vor.u32 %v5657_v31, %v4992_v32  ;;  %v4896_v6 = vld [vmem:[#allocation5 + $0x228] sm:$0xf0]  ;;  %v4838_v32 = vld [vmem:[#allocation5 + $0x190] sm:$0xf] }
 0x2aa   : > { %2915 = vmatpush.bf16.msrb.mxu1 %v4919_v22  ;;  %v5023_v22 = vor.u32 %v5669_v41, %v5022_v34  ;;  %v5653_v42 = vld [vmem:[#allocation5 + $0x2a4] sm:$0xf0]  ;;  %v4703_v47 = vor.u32 %v5589_v38, %v4702_v37  ;;  %v4870_v41 = vld [vmem:[#allocation5 + $0x1d0] sm:$0xf] }
 0x2ab   : > { %v5094_v37 = vld [vmem:[#allocation5 + $0x390] sm:$0xf] }
 0x2ac   : > { %2938 = vmatpush.bf16.msrb.mxu2 %v5019_v3  ;;  %v5621_v3 = vld [vmem:[#allocation5 + $0x1a4] sm:$0xf0]  ;;  %v5686_v38 = vld [vmem:[#allocation5 + $0x3ac] sm:$0xf0] }
 0x2ad   : > { %2948 = vmatpush.bf16.msra.mxu0 %v4863_v52  ;;  %v4831_v55 = vor.u32 %v5621_v3, %v4830_v26  ;;  %v4963_v52 = vor.u32 %v5649_v45, %v4960_v46  ;;  %v4926_v26 = vld [vmem:[#allocation5 + $0x248] sm:$0xf]  ;;  %v5096_v45 = vld [vmem:[#allocation5 + $0x3b0] sm:$0xf0]  ;;  %v5606_v20 = vld [vmem:[#allocation5 + $0x12c] sm:$0xf0] }
 0x2ae   : > { %2916 = vmatpush.bf16.msrb.mxu1 %v4887_v44  ;;  %v4704_v44 = vld [vmem:[#allocation5 + $0xa8] sm:$0xf0]  ;;  %v4927_v58 = vor.u32 %v5645_v56, %v4926_v26  ;;  %v5678_v26 = vld [vmem:[#allocation5 + $0x36c] sm:$0xf0]  ;;  %v4808_v56 = vld [vmem:[#allocation5 + $0x170] sm:$0xf0] }
 0x2b0   : > { %2939 = vmatpush.bf16.msrb.mxu2 %v4987_v62  ;;  %v4798_v62 = vld [vmem:[#allocation5 + $0x148] sm:$0xf] }
 0x2b1   : > { %2949 = vmatpush.bf16.msra.mxu0 %v4831_v55  ;;  %v4799_v9 = vor.u32 %v5613_v63, %v4798_v62  ;;  %v4638_v55 = vld [vmem:[#allocation5 + $0x8] sm:$0xf] }
 0x2b2   : > { %2961 = vmatpush.bf16.msra.mxu1 %v5119_v53  ;;  %v4670_v53 = vld [vmem:[#allocation5 + $0x48] sm:$0xf] }
 0x2b3   : > { %v5637_v63 = vld [vmem:[#allocation5 + $0x224] sm:$0xf0] }
 0x2b4   : > { %2940 = vmatpush.bf16.msrb.mxu2 %v4955_v14  ;;  %v5605_v14 = vld [vmem:[#allocation5 + $0x124] sm:$0xf0] }
 0x2b5   : > { %2950 = vmatpush.bf16.msra.mxu0 %v4799_v9  ;;  %v2027_v9 = vld [vmem:[%s6726_s10 + $0xe] sm:$0x3] }
 0x2b6   : > { %2962 = vmatpush.bf16.msra.mxu1 %v5087_v60  ;;  %v5573_v60 = vld [vmem:[#allocation5 + $0x24] sm:$0xf0] }
 0x2b7   : > { %v4639_v62 = vor.u32 %v5573_v60, %v4638_v55  ;;  %v5030_v60 = vld [vmem:[#allocation5 + $0x310] sm:$0xf] }
 0x2b8   : > { %2941 = vmatpush.bf16.msrb.mxu2 %v4923_v28  ;;  %v5661_v28 = vld [vmem:[#allocation5 + $0x2e4] sm:$0xf0] }
 0x2b9   : > { %v4991_v35 = vor.u32 %v5661_v28, %v4990_v51 }
 0x2ba   : > { %2963 = vmatpush.bf16.msra.mxu1 %v5055_v10  ;;  %v2029_v10 = vperm.slane %v2027_v9, 0 }
 0x2bc   : > { %2942 = vmatpush.bf16.msrb.mxu2 %v4891_v50 }
 0x2be   : > { %2964 = vmatpush.bf16.msra.mxu1 %v5023_v22 }
 0x2c2   : > { %2965 = vmatpush.bf16.msra.mxu1 %v4991_v35 }
 0x322   : > { %v2011_v21 = vpop.f32.mrf.mxu2 }
 0x323   : > { %v2012_v27 = vadd.f32 %v5825_v5, %v2011_v21  ;;  %v4800_v5 = vld [vmem:[#allocation5 + $0x168] sm:$0xf0]  ;;  %v4767_v21 = vor.u32 %v5605_v14, %v4766_v12 }
 0x324   : > { %v4803_v11 = vor.u32 %v5609_v4, %v4800_v5  ;;  %v5633_v5 = vld [vmem:[#allocation5 + $0x20c] sm:$0xf] }
 0x325   : > { %vm2015_vm15 = vcmp.gt.f32.partialorder %v2012_v27, 0.0  ;;  %v2016_v36 = vmul.f32 0.01, %v2012_v27  ;;  %2951 = vmatpush.bf16.msra.mxu0 %v4767_v21  ;;  %v4899_v7 = vor.u32 %v5633_v5, %v4896_v6  ;;  %v4742_v5 = vld [vmem:[#allocation5 + $0xd0] sm:$0xf] }
 0x326   : > { %v5598_v6 = vld [vmem:[#allocation5 + $0xec] sm:$0xf0] }
 0x327   : > { %v2017_v43 = vsel %vm2015_vm15, %v2012_v27, %v2016_v36  ;;  %v5027_v27 = vor.u32 %v5665_v18, %v5024_v19  ;;  %v4739_v36 = vor.u32 %v5593_v29, %v4736_v30  ;;  %v5694_v18 = vld [vmem:[#allocation5 + $0x3ec] sm:$0xf0]  ;;  %v5626_v19 = vld [vmem:[#allocation5 + $0x1d4] sm:$0xf]  ;;  %v4871_v30 = vor.u32 %v5630_v16, %v4870_v41 }
 0x328   : > { %v2018_v49 = vpack.c.bf16 %v2017_v43, %v2017_v43  ;;  %v5585_v43 = vld [vmem:[#allocation5 + $0x8c] sm:$0xf]  ;;  %v5127_v31 = vor.u32 %v5694_v18, %v5126_v17  ;;  %v4743_v41 = vor.u32 %v5598_v6, %v4742_v5  ;;  %v4710_v17 = vld [vmem:[#allocation5 + $0x90] sm:$0xf] }
 0x329   : > { %2952 = vmatpush.bf16.msra.mxu0 %v4735_v33  ;;  %v4707_v50 = vor.u32 %v5585_v43, %v4704_v44  ;;  %v5622_v33 = vld [vmem:[#allocation5 + $0x1ac] sm:$0xf0]  ;;  %v4840_v43 = vld [vmem:[#allocation5 + $0x1b0] sm:$0xf0] }
 0x32a   : > { %v2013_v8 = vpop.f32.mrf.mxu2  ;;  %4626 = vmatmul.msk.bf16.vlgmr.msrb.gmra.mxu3 %vm1938_vm12, %v2018_v49  ;;  %4627 = vmatmul.msk.bf16.vlgmr.msra.gmra.mxu2 %vm1938_vm12, %v2018_v49  ;;  %v4959_v49 = vor.u32 %v5653_v42, %v4958_v39  ;;  %v5618_v39 = vld [vmem:[#allocation5 + $0x194] sm:$0xf]  ;;  %v4839_v46 = vor.u32 %v5622_v33, %v4838_v32  ;;  %v5590_v18 = vld [vmem:[#allocation5 + $0xac] sm:$0xf0] }
 0x32b   : > { %2974 = vmatpush.bf16.msrb.mxu3 %v4867_v54  ;;  %2987 = vmatpush.bf16.msra.mxu2 %v5123_v57  ;;  %v5581_v54 = vld [vmem:[#allocation5 + $0x64] sm:$0xf0]  ;;  %v5577_v8 = vld [vmem:[#allocation5 + $0x4c] sm:$0xf]  ;;  %v5682_v44 = vld [vmem:[#allocation5 + $0x394] sm:$0xf] }
 0x32c   : > { %2966 = vmatpush.bf16.msra.mxu1 %v4959_v49  ;;  %v4671_v3 = vor.u32 %v5581_v54, %v4670_v53  ;;  %v4672_v57 = vld [vmem:[#allocation5 + $0x68] sm:$0xf0]  ;;  %v4806_v49 = vld [vmem:[#allocation5 + $0x150] sm:$0xf]  ;;  %v5099_v53 = vor.u32 %v5682_v44, %v5096_v45 }
 0x32d   : > { %2953 = vmatpush.bf16.msra.mxu0 %v4703_v47  ;;  %v4675_v59 = vor.u32 %v5577_v8, %v4672_v57  ;;  %v5095_v47 = vor.u32 %v5686_v38, %v5094_v37  ;;  %v5062_v54 = vld [vmem:[#allocation5 + $0x350] sm:$0xf]  ;;  %v5674_v8 = vld [vmem:[#allocation5 + $0x354] sm:$0xf] }
 0x32e   : > { %v5064_v57 = vld [vmem:[#allocation5 + $0x370] sm:$0xf0]  ;;  %v4678_v32 = vld [vmem:[#allocation5 + $0x50] sm:$0xf] }
 0x32f   : > { %2975 = vmatpush.bf16.msrb.mxu3 %v4835_v61  ;;  %2988 = vmatpush.bf16.msra.mxu2 %v5091_v1  ;;  %v4894_v61 = vld [vmem:[#allocation5 + $0x208] sm:$0xf]  ;;  %v4640_v1 = vld [vmem:[#allocation5 + $0x28] sm:$0xf0]  ;;  %v5067_v55 = vor.u32 %v5674_v8, %v5064_v57  ;;  %v5582_v33 = vld [vmem:[#allocation5 + $0x6c] sm:$0xf0] }
 0x330   : > { %2967 = vmatpush.bf16.msra.mxu1 %v4927_v58  ;;  %v4895_v2 = vor.u32 %v5637_v63, %v4894_v61  ;;  %v4643_v4 = vor.u32 %v5569_v0, %v4640_v1  ;;  %v5670_v61 = vld [vmem:[#allocation5 + $0x32c] sm:$0xf0]  ;;  %v4776_v63 = vld [vmem:[#allocation5 + $0x130] sm:$0xf0]  ;;  %v4679_v45 = vor.u32 %v5582_v33, %v4678_v32  ;;  %v4878_v8 = vld [vmem:[#allocation5 + $0x1d8] sm:$0xf] }
 0x331   : > { %2954 = vmatpush.bf16.msra.mxu0 %v4671_v3  ;;  %v5610_v3 = vld [vmem:[#allocation5 + $0x154] sm:$0xf]  ;;  %v4934_v37 = vld [vmem:[#allocation5 + $0x250] sm:$0xf]  ;;  %v5631_v57 = vld [vmem:[#allocation5 + $0x1f4] sm:$0xf0] }
 0x332   : > { %v5666_v0 = vld [vmem:[#allocation5 + $0x314] sm:$0xf]  ;;  %v5646_v38 = vld [vmem:[#allocation5 + $0x26c] sm:$0xf0] }
 0x333   : > { %2976 = vmatpush.bf16.msrb.mxu3 %v4803_v11  ;;  %2989 = vmatpush.bf16.msra.mxu2 %v5059_v15  ;;  %v2030_v11 = vperm.slane %v2027_v9, 1  ;;  %v5032_v1 = vld [vmem:[#allocation5 + $0x330] sm:$0xf0]  ;;  %v4646_v44 = vld [vmem:[#allocation5 + $0x10] sm:$0xf] }
 0x334   : > { %2968 = vmatpush.bf16.msra.mxu1 %v4895_v2  ;;  %v4775_v2 = vor.u32 %v5606_v20, %v4774_v13  ;;  %v5035_v9 = vor.u32 %v5666_v0, %v5032_v1  ;;  %v5627_v13 = vld [vmem:[#allocation5 + $0x1dc] sm:$0xf]  ;;  %v4879_v0 = vor.u32 %v5631_v57, %v4878_v8  ;;  %v4718_v8 = vld [vmem:[#allocation5 + $0x98] sm:$0xf] }
 0x335   : > { %2955 = vmatpush.bf16.msra.mxu0 %v4639_v62  ;;  %v5602_v62 = vld [vmem:[#allocation5 + $0x114] sm:$0xf]  ;;  %v5591_v57 = vld [vmem:[#allocation5 + $0xb4] sm:$0xf0] }
 0x337   : > { %2977 = vmatpush.bf16.msrb.mxu3 %v4771_v23  ;;  %2990 = vmatpush.bf16.msra.mxu2 %v5027_v27  ;;  %v4872_v23 = vld [vmem:[#allocation5 + $0x1f0] sm:$0xf0] }
 0x338   : > { %v4875_v35 = vor.u32 %v5626_v19, %v4872_v23  ;;  %v5654_v23 = vld [vmem:[#allocation5 + $0x2ac] sm:$0xf0] }
 0x33b   : > { %2978 = vmatpush.bf16.msrb.mxu3 %v4739_v36  ;;  %2991 = vmatpush.bf16.msra.mxu2 %v4995_v40  ;;  %v5131_v36 = vor.u32 %v5690_v24, %v5128_v25  ;;  %v5586_v24 = vld [vmem:[#allocation5 + $0x94] sm:$0xf] }
 0x33c   : > { %v4712_v25 = vld [vmem:[#allocation5 + $0xb0] sm:$0xf0] }
 0x33f   : > { %2979 = vmatpush.bf16.msrb.mxu3 %v4707_v50  ;;  %2992 = vmatpush.bf16.msra.mxu2 %v4963_v52  ;;  %v5614_v50 = vld [vmem:[#allocation5 + $0x16c] sm:$0xf0]  ;;  %v4843_v52 = vor.u32 %v5618_v39, %v4840_v43  ;;  %v5578_v39 = vld [vmem:[#allocation5 + $0x54] sm:$0xf] }
 0x340   : > { %v4807_v58 = vor.u32 %v5614_v50, %v4806_v49  ;;  %v4936_v43 = vld [vmem:[#allocation5 + $0x270] sm:$0xf0]  ;;  %v4902_v49 = vld [vmem:[#allocation5 + $0x210] sm:$0xf] }
 0x341   : > { %v5638_v50 = vld [vmem:[#allocation5 + $0x22c] sm:$0xf0] }
 0x343   : > { %2980 = vmatpush.bf16.msrb.mxu3 %v4675_v59  ;;  %2993 = vmatpush.bf16.msra.mxu2 %v4931_v48  ;;  %v5063_v59 = vor.u32 %v5678_v26, %v5062_v54  ;;  %v4811_v48 = vor.u32 %v5610_v3, %v4808_v56  ;;  %v5570_v54 = vld [vmem:[#allocation5 + $0x14] sm:$0xf] }
 0x344   : > { %v4648_v26 = vld [vmem:[#allocation5 + $0x30] sm:$0xf0] }
 0x345   : > { %v5634_v3 = vld [vmem:[#allocation5 + $0x214] sm:$0xf] }
 0x346   : > { %v4904_v56 = vld [vmem:[#allocation5 + $0x230] sm:$0xf0] }
 0x347   : > { %2981 = vmatpush.bf16.msrb.mxu3 %v4643_v4  ;;  %2994 = vmatpush.bf16.msra.mxu2 %v4899_v7  ;;  %v5031_v4 = vor.u32 %v5670_v61, %v5030_v60  ;;  %v4779_v7 = vor.u32 %v5602_v62, %v4776_v63  ;;  %v5691_v60 = vld [vmem:[#allocation5 + $0x3dc] sm:$0xf]  ;;  %v4651_v62 = vor.u32 %v5570_v54, %v4648_v26 }
 0x348   : > { %v5136_v61 = vld [vmem:[#allocation5 + $0x3f8] sm:$0xf0]  ;;  %v4907_v63 = vor.u32 %v5634_v3, %v4904_v56 }
 0x349   : > { %v5139_v6 = vor.u32 %v5691_v60, %v5136_v61  ;;  %v5659_v54 = vld [vmem:[#allocation5 + $0x2dc] sm:$0xf] }
 0x34a   : > { %v5008_v26 = vld [vmem:[#allocation5 + $0x2f8] sm:$0xf0] }
 0x34b   : > { %v5651_v60 = vld [vmem:[#allocation5 + $0x29c] sm:$0xf] }
 0x34c   : > { %v4976_v61 = vld [vmem:[#allocation5 + $0x2b8] sm:$0xf0] }
 0x3ad   : > { %v2085_v12 = vpop.f32.mrf.mxu3  ;;  %v2098_v14 = vpop.f32.mrf.mxu2 }
 0x3ae   : > { %v2086_v34 = vadd.f32 %v2085_v12, %v2029_v10  ;;  %v2099_v15 = vadd.f32 %v2098_v14, %v2030_v11  ;;  %v4998_v10 = vld [vmem:[#allocation5 + $0x2d0] sm:$0xf]  ;;  %v5594_v12 = vld [vmem:[#allocation5 + $0xd4] sm:$0xf] }
 0x3af   : > { %v5662_v11 = vld [vmem:[#allocation5 + $0x2ec] sm:$0xf0]  ;;  %v4744_v14 = vld [vmem:[#allocation5 + $0xf0] sm:$0xf0] }
 0x3b0   : > { %vm2102_vm1 = vcmp.gt.f32.partialorder %v2086_v34, 0.0  ;;  %v2104_v21 = vmul.f32 0.01, %v2086_v34  ;;  %vm2103_vm2 = vcmp.gt.f32.partialorder %v2099_v15, 0.0  ;;  %v2105_v22 = vmul.f32 0.01, %v2099_v15 }
 0x3b1   : > { %v4999_v16 = vor.u32 %v5662_v11, %v4998_v10  ;;  %v4747_v19 = vor.u32 %v5594_v12, %v4744_v14  ;;  %v5619_v10 = vld [vmem:[#allocation5 + $0x19c] sm:$0xf] }
 0x3b2   : > { %v2106_v51 = vsel %vm2102_vm1, %v2086_v34, %v2104_v21  ;;  %v2107_v27 = vsel %vm2103_vm2, %v2099_v15, %v2105_v22  ;;  %v5658_v34 = vld [vmem:[#allocation5 + $0x2d4] sm:$0xf]  ;;  %v4966_v22 = vld [vmem:[#allocation5 + $0x290] sm:$0xf]  ;;  %v4848_v11 = vld [vmem:[#allocation5 + $0x1b8] sm:$0xf0] }
 0x3b3   : > { %v6455_v28 = vpack.c.bf16 %v2106_v51, %v2106_v51  ;;  %v6457_v29 = vpack.c.bf16 %v2107_v27, %v2107_v27  ;;  %v5000_v15 = vld [vmem:[#allocation5 + $0x2f0] sm:$0xf0]  ;;  %v5683_v12 = vld [vmem:[#allocation5 + $0x39c] sm:$0xf] }
 0x3b4   : > { %v5003_v21 = vor.u32 %v5658_v34, %v5000_v15  ;;  %v5650_v51 = vld [vmem:[#allocation5 + $0x294] sm:$0xf]  ;;  %v5104_v14 = vld [vmem:[#allocation5 + $0x3b8] sm:$0xf0] }
 0x3b5   : > { %v2087_v40 = vpop.f32.mrf.mxu3  ;;  %v2100_v42 = vpop.f32.mrf.mxu2  ;;  %2904 = vmatmul.bf16.vlgmr.msrb.gmra.mxu0 %v6455_v28  ;;  %2917 = vmatmul.bf16.vlgmr.msrb.gmra.mxu1 %v6457_v29  ;;  %v4968_v27 = vld [vmem:[#allocation5 + $0x2b0] sm:$0xf0] }
 0x3b6   : > { %2930 = vmatmul.bf16.vlgmr.msra.gmra.mxu3 %v6455_v28  ;;  %2943 = vmatmul.bf16.vlgmr.msrb.gmra.mxu2 %v6457_v29  ;;  %v4680_v40 = vld [vmem:[#allocation5 + $0x70] sm:$0xf0] }
 0x3b7   : > { %3000 = vmatpush.bf16.msrb.mxu0 %v4871_v30  ;;  %3013 = vmatpush.bf16.msrb.mxu1 %v5127_v31  ;;  %v4711_v30 = vor.u32 %v5590_v18, %v4710_v17  ;;  %v4967_v31 = vor.u32 %v5654_v23, %v4966_v22  ;;  %v5642_v42 = vld [vmem:[#allocation5 + $0x254] sm:$0xf]  ;;  %v4851_v17 = vor.u32 %v5619_v10, %v4848_v11  ;;  %v5611_v22 = vld [vmem:[#allocation5 + $0x15c] sm:$0xf] }
 0x3b8   : > { %3026 = vmatpush.bf16.msra.mxu3 %v4875_v35  ;;  %3039 = vmatpush.bf16.msrb.mxu2 %v5131_v36  ;;  %v4715_v35 = vor.u32 %v5586_v24, %v4712_v25  ;;  %v4971_v36 = vor.u32 %v5650_v51, %v4968_v27  ;;  %v5107_v18 = vor.u32 %v5683_v12, %v5104_v14  ;;  %v4816_v23 = vld [vmem:[#allocation5 + $0x178] sm:$0xf0] }
 0x3b9   : > { %v5675_v24 = vld [vmem:[#allocation5 + $0x35c] sm:$0xf]  ;;  %v4819_v32 = vor.u32 %v5611_v22, %v4816_v23 }
 0x3ba   : > { %v5072_v25 = vld [vmem:[#allocation5 + $0x378] sm:$0xf0] }
 0x3bb   : > { %3001 = vmatpush.bf16.msrb.mxu0 %v4839_v46  ;;  %3014 = vmatpush.bf16.msrb.mxu1 %v5095_v47  ;;  %v4935_v46 = vor.u32 %v5646_v38, %v4934_v37  ;;  %v5574_v47 = vld [vmem:[#allocation5 + $0x2c] sm:$0xf0]  ;;  %v5075_v33 = vor.u32 %v5675_v24, %v5072_v25  ;;  %v5603_v37 = vld [vmem:[#allocation5 + $0x11c] sm:$0xf] }
 0x3bc   : > { %3027 = vmatpush.bf16.msra.mxu3 %v4843_v52  ;;  %3040 = vmatpush.bf16.msrb.mxu2 %v5099_v53  ;;  %v4683_v52 = vor.u32 %v5578_v39, %v4680_v40  ;;  %v4939_v53 = vor.u32 %v5642_v42, %v4936_v43  ;;  %v4647_v20 = vor.u32 %v5574_v47, %v4646_v44  ;;  %v4784_v38 = vld [vmem:[#allocation5 + $0x138] sm:$0xf0]  ;;  %v4750_v44 = vld [vmem:[#allocation5 + $0xd8] sm:$0xf] }
 0x3bd   : > { %v5667_v39 = vld [vmem:[#allocation5 + $0x31c] sm:$0xf] }
 0x3be   : > { %v5040_v40 = vld [vmem:[#allocation5 + $0x338] sm:$0xf0] }
 0x3bf   : > { %3002 = vmatpush.bf16.msrb.mxu0 %v4807_v58  ;;  %3015 = vmatpush.bf16.msrb.mxu1 %v5063_v59  ;;  %v5134_v58 = vld [vmem:[#allocation5 + $0x3d8] sm:$0xf]  ;;  %v5043_v47 = vor.u32 %v5667_v39, %v5040_v40  ;;  %v5643_v10 = vld [vmem:[#allocation5 + $0x25c] sm:$0xf]  ;;  %v5698_v40 = vld [vmem:[%s6725_s9 + $0x10] sm:$0xff] }
 0x3c0   : > { %3028 = vmatpush.bf16.msra.mxu3 %v4811_v48  ;;  %3041 = vmatpush.bf16.msrb.mxu2 %v5067_v55  ;;  %v5695_v59 = vld [vmem:[#allocation5 + $0x3f4] sm:$0xf0]  ;;  %v4903_v48 = vor.u32 %v5638_v50, %v4902_v49  ;;  %v4880_v55 = vld [vmem:[#allocation5 + $0x1f8] sm:$0xf0] }
 0x3c1   : > { %v5135_v1 = vor.u32 %v5695_v59, %v5134_v58  ;;  %v4883_v5 = vor.u32 %v5627_v13, %v4880_v55  ;;  %v5006_v49 = vld [vmem:[#allocation5 + $0x2d8] sm:$0xf]  ;;  %v5011_v59 = vor.u32 %v5659_v54, %v5008_v26  ;;  %v4720_v55 = vld [vmem:[#allocation5 + $0xb8] sm:$0xf0] }
 0x3c2   : > { %v5663_v50 = vld [vmem:[#allocation5 + $0x2f4] sm:$0xf0]  ;;  %v4944_v11 = vld [vmem:[#allocation5 + $0x278] sm:$0xf0] }
 0x3c3   : > { %3003 = vmatpush.bf16.msrb.mxu0 %v4775_v2  ;;  %3016 = vmatpush.bf16.msrb.mxu1 %v5031_v4  ;;  %v4846_v2 = vld [vmem:[#allocation5 + $0x198] sm:$0xf]  ;;  %v5007_v56 = vor.u32 %v5663_v50, %v5006_v49  ;;  %v5635_v22 = vld [vmem:[#allocation5 + $0x21c] sm:$0xf]  ;;  %v5696_v49 = vld [vmem:[%s6725_s9] sm:$0xff] }
 0x3c4   : > { %3029 = vmatpush.bf16.msra.mxu3 %v4779_v7  ;;  %3042 = vmatpush.bf16.msrb.mxu2 %v5035_v9  ;;  %v5623_v4 = vld [vmem:[#allocation5 + $0x1b4] sm:$0xf0]  ;;  %v4912_v23 = vld [vmem:[#allocation5 + $0x238] sm:$0xf0]  ;;  %v5716_v50 = vld [vmem:[%s6725_s9 + $0xa0] sm:$0xff] }
 0x3c5   : > { %2956 = vmatmul.bf16.vlgmr.msra.gmra.mxu0 %v6455_v28  ;;  %2969 = vmatmul.bf16.vlgmr.msra.gmra.mxu1 %v6457_v29  ;;  %v5102_v7 = vld [vmem:[#allocation5 + $0x398] sm:$0xf]  ;;  %v4847_v34 = vor.u32 %v5623_v4, %v4846_v2  ;;  %v4979_v4 = vor.u32 %v5651_v60, %v4976_v61  ;;  %v5712_v60 = vld [vmem:[%s6725_s9 + $0x80] sm:$0xff] }
 0x3c6   : > { %2982 = vmatmul.bf16.vlgmr.msrb.gmra.mxu3 %v6455_v28  ;;  %2995 = vmatmul.bf16.vlgmr.msra.gmra.mxu2 %v6457_v29  ;;  %v5687_v9 = vld [vmem:[#allocation5 + $0x3b4] sm:$0xf0]  ;;  %v5732_v61 = vld [vmem:[%s6725_s9 + $0x120] sm:$0xff] }
 0x3c7   : > { %3004 = vmatpush.bf16.msrb.mxu0 %v4743_v41  ;;  %3017 = vmatpush.bf16.msrb.mxu1 %v4999_v16  ;;  %v5103_v15 = vor.u32 %v5687_v9, %v5102_v7  ;;  %v4814_v41 = vld [vmem:[#allocation5 + $0x158] sm:$0xf]  ;;  %v5579_v7 = vld [vmem:[#allocation5 + $0x5c] sm:$0xf] }
 0x3c8   : > { %3030 = vmatpush.bf16.msra.mxu3 %v4747_v19  ;;  %3043 = vmatpush.bf16.msrb.mxu2 %v5003_v21  ;;  %v5615_v16 = vld [vmem:[#allocation5 + $0x174] sm:$0xf0]  ;;  %v4688_v9 = vld [vmem:[#allocation5 + $0x78] sm:$0xf0] }
 0x3c9   : > { %v5070_v19 = vld [vmem:[#allocation5 + $0x358] sm:$0xf]  ;;  %v4815_v51 = vor.u32 %v5615_v16, %v4814_v41  ;;  %v4691_v41 = vor.u32 %v5579_v7, %v4688_v9  ;;  %v4947_v16 = vor.u32 %v5643_v10, %v4944_v11 }
 0x3ca   : > { %v5679_v21 = vld [vmem:[#allocation5 + $0x374] sm:$0xf0] }
 0x3cb   : > { %3005 = vmatpush.bf16.msrb.mxu0 %v4711_v30  ;;  %3018 = vmatpush.bf16.msrb.mxu1 %v4967_v31  ;;  %v5071_v27 = vor.u32 %v5679_v21, %v5070_v19  ;;  %v4782_v30 = vld [vmem:[#allocation5 + $0x118] sm:$0xf]  ;;  %v5571_v19 = vld [vmem:[#allocation5 + $0x1c] sm:$0xf] }
 0x3cc   : > { %3031 = vmatpush.bf16.msra.mxu3 %v4715_v35  ;;  %3044 = vmatpush.bf16.msrb.mxu2 %v4971_v36  ;;  %v5607_v31 = vld [vmem:[#allocation5 + $0x134] sm:$0xf0]  ;;  %v4656_v21 = vld [vmem:[#allocation5 + $0x38] sm:$0xf0] }
 0x3cd   : > { %v5038_v35 = vld [vmem:[#allocation5 + $0x318] sm:$0xf]  ;;  %v4783_v42 = vor.u32 %v5607_v31, %v4782_v30 }
 0x3ce   : > { %v5671_v36 = vld [vmem:[#allocation5 + $0x334] sm:$0xf0] }
 0x3cf   : > { %3006 = vmatpush.bf16.msrb.mxu0 %v4679_v45  ;;  %3019 = vmatpush.bf16.msrb.mxu1 %v4935_v46  ;;  %v5039_v43 = vor.u32 %v5671_v36, %v5038_v35  ;;  %v5599_v45 = vld [vmem:[#allocation5 + $0xf4] sm:$0xf0]  ;;  %v4787_v46 = vor.u32 %v5603_v37, %v4784_v38  ;;  %v5710_v35 = vld [vmem:[%s6725_s9 + $0x70] sm:$0xff]  ;;  %v5701_v37 = vld [vmem:[%s6725_s9 + $0x28] sm:$0xff] }
 0x3d0   : > { %3032 = vmatpush.bf16.msra.mxu3 %v4683_v52  ;;  %3045 = vmatpush.bf16.msrb.mxu2 %v4939_v53  ;;  %v5595_v52 = vld [vmem:[#allocation5 + $0xdc] sm:$0xf]  ;;  %v4751_v3 = vor.u32 %v5599_v45, %v4750_v44  ;;  %v4974_v13 = vld [vmem:[#allocation5 + $0x298] sm:$0xf]  ;;  %v5718_v36 = vld [vmem:[%s6725_s9 + $0xb0] sm:$0xff] }
 0x3d1   : > { %v4752_v53 = vld [vmem:[#allocation5 + $0xf8] sm:$0xf0]  ;;  %v5709_v38 = vld [vmem:[%s6725_s9 + $0x68] sm:$0xff] }
 0x3d2   : > { %v4755_v58 = vor.u32 %v5595_v52, %v4752_v53  ;;  %v5703_v30 = vld [vmem:[%s6725_s9 + $0x38] sm:$0xff]  ;;  %v5697_v44 = vld [vmem:[%s6725_s9 + $0x8] sm:$0xff] }
 0x3d3   : > { %3007 = vmatpush.bf16.msrb.mxu0 %v4647_v20  ;;  %3020 = vmatpush.bf16.msrb.mxu1 %v4903_v48  ;;  %v5655_v20 = vld [vmem:[#allocation5 + $0x2b4] sm:$0xf0]  ;;  %v5587_v48 = vld [vmem:[#allocation5 + $0x9c] sm:$0xf]  ;;  %v5717_v45 = vld [vmem:[%s6725_s9 + $0xa8] sm:$0xff] }
 0x3d4   : > { %3033 = vmatpush.bf16.msra.mxu3 %v4651_v62  ;;  %3046 = vmatpush.bf16.msrb.mxu2 %v4907_v63  ;;  %v4719_v62 = vor.u32 %v5591_v57, %v4718_v8  ;;  %v4975_v63 = vor.u32 %v5655_v20, %v4974_v13  ;;  %v4723_v2 = vor.u32 %v5587_v48, %v4720_v55  ;;  %v5711_v31 = vld [vmem:[%s6725_s9 + $0x78] sm:$0xff]  ;;  %v5705_v52 = vld [vmem:[%s6725_s9 + $0x48] sm:$0xff]  ;;  %v5714_v8 = vld [vmem:[%s6725_s9 + $0x90] sm:$0xff] }
 0x3d5   : > { %v5699_v39 = vld [vmem:[%s6725_s9 + $0x18] sm:$0xff]  ;;  %v5725_v53 = vld [vmem:[%s6725_s9 + $0xe8] sm:$0xff]  ;;  %v5734_v57 = vld [vmem:[%s6725_s9 + $0x130] sm:$0xff] }
 0x3d6   : > { %3008 = vmatmul.bf16.vlgmr.msrb.gmra.mxu0 %v6455_v28  ;;  %3021 = vmatmul.bf16.vlgmr.msrb.gmra.mxu1 %v6457_v29  ;;  %v5715_v54 = vld [vmem:[%s6725_s9 + $0x98] sm:$0xff]  ;;  %v5713_v13 = vld [vmem:[%s6725_s9 + $0x88] sm:$0xff]  ;;  %v5722_v48 = vld [vmem:[%s6725_s9 + $0xd0] sm:$0xff] }
 0x3d7   : > { %3052 = vmatpush.bf16.msra.mxu0 %v4879_v0  ;;  %3065 = vmatpush.bf16.msra.mxu1 %v5135_v1  ;;  %v4686_v0 = vld [vmem:[#allocation5 + $0x58] sm:$0xf]  ;;  %v5733_v20 = vld [vmem:[%s6725_s9 + $0x128] sm:$0xff]  ;;  %v5742_v55 = vld [vmem:[%s6725_s9 + $0x170] sm:$0xff] }
 0x3d8   : > { %3078 = vmatpush.bf16.msrb.mxu3 %v4883_v5  ;;  %3091 = vmatpush.bf16.msra.mxu2 %v5139_v6  ;;  %v5583_v1 = vld [vmem:[#allocation5 + $0x74] sm:$0xf0] }
 0x3d9   : > { %3034 = vmatmul.bf16.vlgmr.msra.gmra.mxu3 %v6455_v28  ;;  %3047 = vmatmul.bf16.vlgmr.msrb.gmra.mxu2 %v6457_v29  ;;  %v4942_v5 = vld [vmem:[#allocation5 + $0x258] sm:$0xf]  ;;  %v4687_v12 = vor.u32 %v5583_v1, %v4686_v0  ;;  %v5741_v0 = vld [vmem:[%s6725_s9 + $0x168] sm:$0xff] }
 0x3da   : > { %v5647_v6 = vld [vmem:[#allocation5 + $0x274] sm:$0xf0] }
 0x3db   : > { %3053 = vmatpush.bf16.msra.mxu0 %v4847_v34  ;;  %3066 = vmatpush.bf16.msra.mxu1 %v5103_v15  ;;  %v4943_v14 = vor.u32 %v5647_v6, %v4942_v5  ;;  %v4654_v34 = vld [vmem:[#allocation5 + $0x18] sm:$0xf]  ;;  %v5740_v5 = vld [vmem:[%s6725_s9 + $0x160] sm:$0xff]  ;;  %v5730_v6 = vld [vmem:[%s6725_s9 + $0x110] sm:$0xff] }
 0x3dc   : > { %3079 = vmatpush.bf16.msrb.mxu3 %v4851_v17  ;;  %3092 = vmatpush.bf16.msra.mxu2 %v5107_v18  ;;  %v5575_v15 = vld [vmem:[#allocation5 + $0x34] sm:$0xf0] }
 0x3dd   : > { %v4910_v17 = vld [vmem:[#allocation5 + $0x218] sm:$0xf]  ;;  %v4655_v24 = vor.u32 %v5575_v15, %v4654_v34  ;;  %v5729_v15 = vld [vmem:[%s6725_s9 + $0x108] sm:$0xff] }
 0x3de   : > { %v5639_v18 = vld [vmem:[#allocation5 + $0x234] sm:$0xf0] }
 0x3df   : > { %3054 = vmatpush.bf16.msra.mxu0 %v4815_v51  ;;  %3067 = vmatpush.bf16.msra.mxu1 %v5071_v27  ;;  %v4911_v25 = vor.u32 %v5639_v18, %v4910_v17  ;;  %v4659_v51 = vor.u32 %v5571_v19, %v4656_v21  ;;  %v4915_v27 = vor.u32 %v5635_v22, %v4912_v23  ;;  %v5735_v26 = vld [vmem:[%s6725_s9 + $0x138] sm:$0xff]  ;;  %v5738_v18 = vld [vmem:[%s6725_s9 + $0x150] sm:$0xff] }
 0x3e0   : > { %3080 = vmatpush.bf16.msrb.mxu3 %v4819_v32  ;;  %3093 = vmatpush.bf16.msra.mxu2 %v5075_v33  ;;  %v5719_v32 = vld [vmem:[%s6725_s9 + $0xb8] sm:$0xff]  ;;  %v5702_v33 = vld [vmem:[%s6725_s9 + $0x30] sm:$0xff] }
 0x3e3   : > { %3055 = vmatpush.bf16.msra.mxu0 %v4783_v42  ;;  %3068 = vmatpush.bf16.msra.mxu1 %v5039_v43  ;;  %v5707_v42 = vld [vmem:[%s6725_s9 + $0x58] sm:$0xff] }
 0x3e4   : > { %3081 = vmatpush.bf16.msrb.mxu3 %v4787_v46  ;;  %3094 = vmatpush.bf16.msra.mxu2 %v5043_v47  ;;  %v5727_v43 = vld [vmem:[%s6725_s9 + $0xf8] sm:$0xff]  ;;  %v5706_v46 = vld [vmem:[%s6725_s9 + $0x50] sm:$0xff] }
 0x3e5   : > { %v5726_v47 = vld [vmem:[%s6725_s9 + $0xf0] sm:$0xff] }
 0x3e7   : > { %3056 = vmatpush.bf16.msra.mxu0 %v4751_v3  ;;  %3069 = vmatpush.bf16.msra.mxu1 %v5007_v56  ;;  %v5704_v3 = vld [vmem:[%s6725_s9 + $0x40] sm:$0xff] }
 0x3e8   : > { %3082 = vmatpush.bf16.msrb.mxu3 %v4755_v58  ;;  %3095 = vmatpush.bf16.msra.mxu2 %v5011_v59  ;;  %v5724_v56 = vld [vmem:[%s6725_s9 + $0xe0] sm:$0xff]  ;;  %v5723_v58 = vld [vmem:[%s6725_s9 + $0xd8] sm:$0xff] }
 0x3e9   : > { %v5743_v59 = vld [vmem:[%s6725_s9 + $0x178] sm:$0xff] }
 0x3eb   : > { %3057 = vmatpush.bf16.msra.mxu0 %v4719_v62  ;;  %3070 = vmatpush.bf16.msra.mxu1 %v4975_v63  ;;  %v6586_v62 = vld [vmem:[%s6726_s10 + $0x10] sm:$0xff]  ;;  %v5721_v63 = vld [vmem:[%s6725_s9 + $0xc8] sm:$0xff] }
 0x3ec   : > { %3083 = vmatpush.bf16.msrb.mxu3 %v4723_v2  ;;  %3096 = vmatpush.bf16.msra.mxu2 %v4979_v4  ;;  %v2240_v1 = vperm.slane %v6586_v62, 0  ;;  %v5731_v2 = vld [vmem:[%s6725_s9 + $0x118] sm:$0xff]  ;;  %v5720_v4 = vld [vmem:[%s6725_s9 + $0xc0] sm:$0xff] }
 0x3ef   : > { %3058 = vmatpush.bf16.msra.mxu0 %v4687_v12  ;;  %3071 = vmatpush.bf16.msra.mxu1 %v4943_v14  ;;  %v5739_v12 = vld [vmem:[%s6725_s9 + $0x158] sm:$0xff]  ;;  %v2241_v14 = vperm.slane %v6586_v62, 1 }
 0x3f0   : > { %3084 = vmatpush.bf16.msrb.mxu3 %v4691_v41  ;;  %3097 = vmatpush.bf16.msra.mxu2 %v4947_v16 }
 0x3f3   : > { %3059 = vmatpush.bf16.msra.mxu0 %v4655_v24  ;;  %3072 = vmatpush.bf16.msra.mxu1 %v4911_v25  ;;  %v5728_v24 = vld [vmem:[%s6725_s9 + $0x100] sm:$0xff]  ;;  %v5751_v25 = vld [vmem:[%s6725_s9 + $0x1b8] sm:$0xff] }
 0x3f4   : > { %3085 = vmatpush.bf16.msrb.mxu3 %v4659_v51  ;;  %3098 = vmatpush.bf16.msra.mxu2 %v4915_v27  ;;  %v5737_v27 = vld [vmem:[%s6725_s9 + $0x148] sm:$0xff] }
 0x3f6   : > { %3060 = vmatmul.bf16.vlgmr.msra.gmra.mxu0 %v6455_v28  ;;  %3073 = vmatmul.bf16.vlgmr.msra.gmra.mxu1 %v6457_v29 }
 0x3f7   : > { %3652 = vmatpush.bf16.msrb.mxu0 %v5703_v30  ;;  %3665 = vmatpush.bf16.msrb.mxu1 %v5711_v31  ;;  %v2242_v31 = vperm.slane %v6586_v62, 2 }
 0x3f8   : > { %3086 = vmatmul.bf16.vlgmr.msrb.gmra.mxu3 %v6455_v28  ;;  %3099 = vmatmul.bf16.vlgmr.msra.gmra.mxu2 %v6457_v29  ;;  %v5700_v28 = vld [vmem:[%s6725_s9 + $0x20] sm:$0xff] }
 0x3f9   : > { %3678 = vmatpush.bf16.msra.mxu3 %v5719_v32  ;;  %v5708_v29 = vld [vmem:[%s6725_s9 + $0x60] sm:$0xff]  ;;  %3691 = vmatpush.bf16.msrb.mxu2 %v5727_v43  ;;  %v5750_v32 = vld [vmem:[%s6725_s9 + $0x1b0] sm:$0xff] }
 0x3fb   : > { %3653 = vmatpush.bf16.msrb.mxu0 %v5702_v33  ;;  %3666 = vmatpush.bf16.msrb.mxu1 %v5710_v35 }
 0x3fd   : > { %3679 = vmatpush.bf16.msra.mxu3 %v5718_v36  ;;  %3692 = vmatpush.bf16.msrb.mxu2 %v5726_v47 }
 0x3ff   : > { %3654 = vmatpush.bf16.msrb.mxu0 %v5701_v37  ;;  %3667 = vmatpush.bf16.msrb.mxu1 %v5709_v38  ;;  %v5736_v38 = vld [vmem:[%s6725_s9 + $0x140] sm:$0xff] }
 0x401   : > { %3680 = vmatpush.bf16.msra.mxu3 %v5717_v45  ;;  %3693 = vmatpush.bf16.msrb.mxu2 %v5725_v53  ;;  %v5748_v45 = vld [vmem:[%s6725_s9 + $0x1a0] sm:$0xff] }
 0x403   : > { %3655 = vmatpush.bf16.msrb.mxu0 %v5700_v28  ;;  %3668 = vmatpush.bf16.msrb.mxu1 %v5708_v29  ;;  %v5759_v28 = vld [vmem:[%s6725_s9 + $0x1f8] sm:$0xff] }
 0x405   : > { %3681 = vmatpush.bf16.msra.mxu3 %v5716_v50  ;;  %3694 = vmatpush.bf16.msrb.mxu2 %v5724_v56 }
 0x407   : > { %3656 = vmatpush.bf16.msrb.mxu0 %v5699_v39  ;;  %3669 = vmatpush.bf16.msrb.mxu1 %v5707_v42  ;;  %v5749_v42 = vld [vmem:[%s6725_s9 + $0x1a8] sm:$0xff] }
 0x409   : > { %3682 = vmatpush.bf16.msra.mxu3 %v5715_v54  ;;  %3695 = vmatpush.bf16.msrb.mxu2 %v5723_v58  ;;  %v5747_v54 = vld [vmem:[%s6725_s9 + $0x198] sm:$0xff] }
 0x40b   : > { %3657 = vmatpush.bf16.msrb.mxu0 %v5698_v40  ;;  %3670 = vmatpush.bf16.msrb.mxu1 %v5706_v46  ;;  %v2243_v46 = vperm.slane %v6586_v62, 3 }
 0x40d   : > { %3683 = vmatpush.bf16.msra.mxu3 %v5714_v8  ;;  %3696 = vmatpush.bf16.msrb.mxu2 %v5722_v48 }
 0x40f   : > { %3658 = vmatpush.bf16.msrb.mxu0 %v5697_v44  ;;  %3671 = vmatpush.bf16.msrb.mxu1 %v5705_v52  ;;  %v5758_v44 = vld [vmem:[%s6725_s9 + $0x1f0] sm:$0xff] }
 0x411   : > { %3684 = vmatpush.bf16.msra.mxu3 %v5713_v13  ;;  %3697 = vmatpush.bf16.msrb.mxu2 %v5721_v63  ;;  %v5755_v63 = vld [vmem:[%s6725_s9 + $0x1d8] sm:$0xff] }
 0x413   : > { %3659 = vmatpush.bf16.msrb.mxu0 %v5696_v49  ;;  %3672 = vmatpush.bf16.msrb.mxu1 %v5704_v3  ;;  %v5757_v49 = vld [vmem:[%s6725_s9 + $0x1e8] sm:$0xff] }
 0x415   : > { %3685 = vmatpush.bf16.msra.mxu3 %v5712_v60  ;;  %3698 = vmatpush.bf16.msrb.mxu2 %v5720_v4 }
 0x417   : > { %3704 = vmatpush.bf16.msra.mxu0 %v5735_v26  ;;  %3717 = vmatpush.bf16.msra.mxu1 %v5743_v59  ;;  %v5746_v59 = vld [vmem:[%s6725_s9 + $0x190] sm:$0xff] }
 0x419   : > { %3730 = vmatpush.bf16.msrb.mxu3 %v5751_v25  ;;  %3743 = vmatpush.bf16.msra.mxu2 %v5759_v28 }
 0x41b   : > { %3705 = vmatpush.bf16.msra.mxu0 %v5734_v57  ;;  %3718 = vmatpush.bf16.msra.mxu1 %v5742_v55  ;;  %v5756_v57 = vld [vmem:[%s6725_s9 + $0x1e0] sm:$0xff] }
 0x41d   : > { %3731 = vmatpush.bf16.msrb.mxu3 %v5750_v32  ;;  %3744 = vmatpush.bf16.msra.mxu2 %v5758_v44 }
 0x41f   : > { %3706 = vmatpush.bf16.msra.mxu0 %v5733_v20  ;;  %3719 = vmatpush.bf16.msra.mxu1 %v5741_v0  ;;  %v5745_v0 = vld [vmem:[%s6725_s9 + $0x188] sm:$0xff] }
 0x421   : > { %3732 = vmatpush.bf16.msrb.mxu3 %v5749_v42  ;;  %3745 = vmatpush.bf16.msra.mxu2 %v5757_v49 }
 0x423   : > { %3707 = vmatpush.bf16.msra.mxu0 %v5732_v61  ;;  %3720 = vmatpush.bf16.msra.mxu1 %v5740_v5  ;;  %v2244_v61 = vperm.slane %v6586_v62, 4  ;;  %v5754_v5 = vld [vmem:[%s6725_s9 + $0x1d0] sm:$0xff] }
 0x425   : > { %3733 = vmatpush.bf16.msrb.mxu3 %v5748_v45  ;;  %3746 = vmatpush.bf16.msra.mxu2 %v5756_v57 }
 0x427   : > { %3708 = vmatpush.bf16.msra.mxu0 %v5731_v2  ;;  %3721 = vmatpush.bf16.msra.mxu1 %v5739_v12 }
 0x429   : > { %3734 = vmatpush.bf16.msrb.mxu3 %v5747_v54  ;;  %3747 = vmatpush.bf16.msra.mxu2 %v5755_v63 }
 0x42b   : > { %3709 = vmatpush.bf16.msra.mxu0 %v5730_v6  ;;  %3722 = vmatpush.bf16.msra.mxu1 %v5738_v18  ;;  %v5752_v18 = vld [vmem:[%s6725_s9 + $0x1c0] sm:$0xff] }
 0x42d   : > { %3735 = vmatpush.bf16.msrb.mxu3 %v5746_v59  ;;  %3748 = vmatpush.bf16.msra.mxu2 %v5754_v5  ;;  %v5826_v59 = vld [vmem:[%s6726_s10 + $0x18] ss:$0 sm:$0xff] }
 0x42f   : > { %3710 = vmatpush.bf16.msra.mxu0 %v5729_v15  ;;  %3723 = vmatpush.bf16.msra.mxu1 %v5737_v27 }
 0x431   : > { %3736 = vmatpush.bf16.msrb.mxu3 %v5745_v0 }
 0x432   : > { %v2905_v7 = vpop.f32.mrf.mxu0  ;;  %v2918_v9 = vpop.f32.mrf.mxu1 }
 0x433   : > { %v2906_v10 = vadd.f32 %v2905_v7, %v2240_v1  ;;  %3711 = vmatpush.bf16.msra.mxu0 %v5728_v24  ;;  %3724 = vmatpush.bf16.msra.mxu1 %v5736_v38  ;;  %v5744_v7 = vld [vmem:[%s6725_s9 + $0x180] sm:$0xff] }
 0x435   : > { %v2919_v11 = vadd.f32 %v2918_v9, %v2906_v10  ;;  %v2245_v9 = vperm.slane %v6586_v62, 5  ;;  %3737 = vmatpush.bf16.msrb.mxu3 %v5744_v7 }
 0x437   : > { %vm3104_vm3 = vcmp.gt.f32.partialorder %v2919_v11, 0.0  ;;  %v3112_v34 = vmul.f32 0.01, %v2919_v11 }
 0x439   : > { %v3120_v41 = vsel %vm3104_vm3, %v2919_v11, %v3112_v34  ;;  %v2931_v16 = vpop.f32.mrf.mxu3  ;;  %v2944_v17 = vpop.f32.mrf.mxu2  ;;  %v5753_v11 = vld [vmem:[%s6725_s9 + $0x1c8] sm:$0xff] }
 0x43a   : > { %v3128_v19 = vpack.c.bf16 %v3120_v41, %v3120_v41  ;;  %v2932_v21 = vadd.f32 %v2931_v16, %v2241_v14  ;;  %v2907_v22 = vpop.f32.mrf.mxu0  ;;  %v2920_v23 = vpop.f32.mrf.mxu1  ;;  %3749 = vmatpush.bf16.msra.mxu2 %v5753_v11 }
 0x43c   : > { %v2945_v51 = vadd.f32 %v2944_v17, %v2932_v21  ;;  %3660 = vmatmul.bf16.vlgmr.msrb.gmra.mxu0 %v3128_v19 }
 0x43e   : > { %vm3105_vm4 = vcmp.gt.f32.partialorder %v2945_v51, 0.0  ;;  %v3113_v30 = vmul.f32 0.01, %v2945_v51  ;;  %3750 = vmatpush.bf16.msra.mxu2 %v5752_v18 }
 0x440   : > { %v3121_v33 = vsel %vm3105_vm4, %v2945_v51, %v3113_v30  ;;  %v2246_v51 = vperm.slane %v6586_v62, 6 }
 0x441   : > { %v3129_v35 = vpack.c.bf16 %v3121_v33, %v3121_v33  ;;  %v2933_v36 = vpop.f32.mrf.mxu3  ;;  %v2946_v37 = vpop.f32.mrf.mxu2  ;;  %v2247_v33 = vperm.slane %v6586_v62, 7 }
 0x442   : > { %v2957_v29 = vpop.f32.mrf.mxu0  ;;  %v2970_v39 = vpop.f32.mrf.mxu1 }
 0x443   : > { %v2958_v40 = vadd.f32 %v2957_v29, %v2242_v31  ;;  %3673 = vmatmul.bf16.vlgmr.msrb.gmra.mxu1 %v3129_v35 }
 0x445   : > { %v2971_v43 = vadd.f32 %v2970_v39, %v2958_v40 }
 0x447   : > { %vm3106_vm5 = vcmp.gt.f32.partialorder %v2971_v43, 0.0  ;;  %v3114_v47 = vmul.f32 0.01, %v2971_v43 }
 0x449   : > { %v3122_v50 = vsel %vm3106_vm5, %v2971_v43, %v3114_v47  ;;  %v2983_v52 = vpop.f32.mrf.mxu3  ;;  %v2996_v53 = vpop.f32.mrf.mxu2 }
 0x44a   : > { %v3130_v26 = vpack.c.bf16 %v3122_v50, %v3122_v50  ;;  %v2984_v3 = vadd.f32 %v2983_v52, %v2243_v46  ;;  %v2959_v56 = vpop.f32.mrf.mxu0  ;;  %v2972_v8 = vpop.f32.mrf.mxu1 }
 0x44c   : > { %v2997_v58 = vadd.f32 %v2996_v53, %v2984_v3  ;;  %3686 = vmatmul.bf16.vlgmr.msra.gmra.mxu3 %v3130_v26 }
 0x44e   : > { %vm3107_vm6 = vcmp.gt.f32.partialorder %v2997_v58, 0.0  ;;  %v3115_v13 = vmul.f32 0.01, %v2997_v58 }
 0x450   : > { %v3123_v20 = vsel %vm3107_vm6, %v2997_v58, %v3115_v13 }
 0x451   : > { %v3131_v48 = vpack.c.bf16 %v3123_v20, %v3123_v20  ;;  %v2985_v55 = vpop.f32.mrf.mxu3  ;;  %v2998_v60 = vpop.f32.mrf.mxu2 }
 0x453   : > { %3699 = vmatmul.bf16.vlgmr.msrb.gmra.mxu2 %v3131_v48  ;;  %v3009_v1 = vpop.f32.mrf.mxu0  ;;  %v3022_v2 = vpop.f32.mrf.mxu1 }
 0x454   : > { %v3010_v4 = vadd.f32 %v3009_v1, %v2244_v61 }
 0x456   : > { %v3023_v6 = vadd.f32 %v3022_v2, %v3010_v4 }
 0x458   : > { %vm3108_vm7 = vcmp.gt.f32.partialorder %v3023_v6, 0.0  ;;  %v3116_v10 = vmul.f32 0.01, %v3023_v6 }
 0x45a   : > { %v3124_v12 = vsel %vm3108_vm7, %v3023_v6, %v3116_v10 }
 0x45b   : > { %v3132_v15 = vpack.c.bf16 %v3124_v12, %v3124_v12  ;;  %v3011_v16 = vpop.f32.mrf.mxu0  ;;  %v3024_v17 = vpop.f32.mrf.mxu1 }
 0x45c   : > { %v3035_v14 = vpop.f32.mrf.mxu3  ;;  %v3048_v34 = vpop.f32.mrf.mxu2 }
 0x45d   : > { %v3036_v41 = vadd.f32 %v3035_v14, %v2245_v9  ;;  %3712 = vmatmul.bf16.vlgmr.msra.gmra.mxu0 %v3132_v15 }
 0x45f   : > { %v3049_v19 = vadd.f32 %v3048_v34, %v3036_v41 }
 0x461   : > { %vm3109_vm8 = vcmp.gt.f32.partialorder %v3049_v19, 0.0  ;;  %v3117_v21 = vmul.f32 0.01, %v3049_v19 }
 0x463   : > { %v3125_v22 = vsel %vm3109_vm8, %v3049_v19, %v3117_v21 }
 0x464   : > { %v3133_v23 = vpack.c.bf16 %v3125_v22, %v3125_v22  ;;  %v3037_v24 = vpop.f32.mrf.mxu3  ;;  %v3050_v25 = vpop.f32.mrf.mxu2 }
 0x466   : > { %3725 = vmatmul.bf16.vlgmr.msra.gmra.mxu1 %v3133_v23 }
 0x473   : > { %v3061_v27 = vpop.f32.mrf.mxu0  ;;  %v3074_v30 = vpop.f32.mrf.mxu1 }
 0x474   : > { %v3062_v31 = vadd.f32 %v3061_v27, %v2246_v51 }
 0x476   : > { %v3075_v32 = vadd.f32 %v3074_v30, %v3062_v31 }
 0x478   : > { %vm3110_vm9 = vcmp.gt.f32.partialorder %v3075_v32, 0.0  ;;  %v3118_v35 = vmul.f32 0.01, %v3075_v32 }
 0x47a   : > { %v3126_v36 = vsel %vm3110_vm9, %v3075_v32, %v3118_v35 }
 0x47b   : > { %v3087_v37 = vpop.f32.mrf.mxu3  ;;  %v3100_v38 = vpop.f32.mrf.mxu2  ;;  %v3134_v28 = vpack.c.bf16 %v3126_v36, %v3126_v36 }
 0x47c   : > { %v3088_v29 = vadd.f32 %v3087_v37, %v2247_v33  ;;  %v3063_v39 = vpop.f32.mrf.mxu0  ;;  %v3076_v40 = vpop.f32.mrf.mxu1 }
 0x47d   : > { %3738 = vmatmul.bf16.vlgmr.msrb.gmra.mxu3 %v3134_v28 }
 0x47e   : > { %v3101_v42 = vadd.f32 %v3100_v38, %v3088_v29 }
 0x480   : > { %vm3111_vm10 = vcmp.gt.f32.partialorder %v3101_v42, 0.0  ;;  %v3119_v43 = vmul.f32 0.01, %v3101_v42 }
 0x482   : > { %v3127_v44 = vsel %vm3111_vm10, %v3101_v42, %v3119_v43 }
 0x483   : > { %v3135_v45 = vpack.c.bf16 %v3127_v44, %v3127_v44  ;;  %v3089_v46 = vpop.f32.mrf.mxu3  ;;  %v3102_v47 = vpop.f32.mrf.mxu2 }
 0x485   : > { %3751 = vmatmul.bf16.vlgmr.msra.gmra.mxu2 %v3135_v45 }
 0x4b9   : > { %v3661_v49 = vpop.f32.mrf.mxu0 }
 0x4ba   : > { %v3662_v13 = vadd.f32 %v5826_v59, %v3661_v49 }
 0x4c0   : > { %v3674_v62 = vpop.f32.mrf.mxu1 }
 0x4c1   : > { %v3663_v50 = vpop.f32.mrf.mxu0  ;;  %v3675_v20 = vadd.f32 %v3674_v62, %v3662_v13 }
 0x4c8   : > { %v3676_v52 = vpop.f32.mrf.mxu1 }
 0x4cf   : > { %v3687_v53 = vpop.f32.mrf.mxu3 }
 0x4d0   : > { %v3688_v48 = vadd.f32 %v3687_v53, %v3675_v20 }
 0x4d6   : > { %v3700_v54 = vpop.f32.mrf.mxu2 }
 0x4d7   : > { %v3689_v26 = vpop.f32.mrf.mxu3  ;;  %v3701_v55 = vadd.f32 %v3700_v54, %v3688_v48 }
 0x4da   : > { %v3713_v3 = vpop.f32.mrf.mxu0 }
 0x4db   : > { %v3714_v61 = vadd.f32 %v3713_v3, %v3701_v55 }
 0x4de   : > { %v3702_v56 = vpop.f32.mrf.mxu2 }
 0x4e2   : > { %v3715_v57 = vpop.f32.mrf.mxu0 }
 0x4e3   : > { %v3726_v8 = vpop.f32.mrf.mxu1 }
 0x4e4   : > { %v3727_v63 = vadd.f32 %v3726_v8, %v3714_v61 }
 0x4eb   : > { %v3728_v58 = vpop.f32.mrf.mxu1 }
 0x500   : > { %v3739_v60 = vpop.f32.mrf.mxu3 }
 0x501   : > { %v3740_v0 = vadd.f32 %v3739_v60, %v3727_v63 }
 0x508   : > { %v3752_v1 = vpop.f32.mrf.mxu2  ;;  %v3741_v4 = vpop.f32.mrf.mxu3 }
 0x509   : > { %v3753_v2 = vadd.f32 %v3752_v1, %v3740_v0 }
 0x50b   : > { %3756 = vst.msk [vmem:[%s479_s17] sm:$0xff] %vm625_vm0, %v3753_v2 }
 0x50c   : > { %5916 = shalt.err (!%p5913_p8)
}
 0x50d   : > { %5768 = dma.vmem_to_hbm [thread:$0]  (%p6075_p5), %s3781_s19, 128, %s3783_s20, %s3760_s29  }
 0x510   : > { %v3754_v5 = vpop.f32.mrf.mxu2 }
 0x511 PF: > { %p5785_p9 = scmp.ge.s32.totalorder %s5959_s28, 2  ;;  %s3800_s27 = sand.u32 1, %s5947_s25  }
 0x512   : > { %s3801_s14 = scalar_lea.sflag [#allocation4], %s3800_s27 }
 0x513   : > { %p5778_p10 = pnand %p5785_p9, %p6079_p6 }
 0x515   : > { %p5779_p11 = pneg %p5778_p10 }
 0x517   : > { %5942 = dma.done.wait (%p5779_p11), %s3801_s14, 128  }
 0x518   : > { %5944 = vsyncadd (%p5779_p11), %s3801_s14, 4294967168  ;;  %s6744_s28 = sld [smem:[#allocation12_spill]]  ;;  %s6747_s25 = smov %s5951_s26 }
 0x519   : > { %s6745_s17 = sld [smem:[#allocation11_spill]] }
 0x51a   : > { %s6746_s27 = sld [smem:[#allocation13_spill]] }
 0x51e   : > { %p26_p12 = scmp.ge.s32.totalorder %s6744_s28, 4  }
 0x51f   : > { %s6748_s26 = smov %s6745_s17 }
 0x520   :  { %28 = sbr.rel (!%p26_p12) target bundleno = 7 (0x7), region = 135 }
 0x525   :  { %3821 = vsyncpa [#allocation3], 1 }
 0x526   :  { %3823 = vsyncpa [#allocation3 + $0x1], 1 }
 0x527   :  { %3824 = vsyncpa [#allocation6], 1 }
 0x528   :  { %3825 = vsyncpa [#allocation4], 1 }
 0x529   :  { %3827 = vsyncpa [#allocation4 + $0x1], 1 }

</bundles_post_ra>
